<compile_context>
chip_gen: v7x
topology: tpu7x:2x2x1
jax: 0.10.0
libtpu: 0.0.40
codegen_flags: <defaults>
</compile_context>

<pallas_src>
import jax
import jax.numpy as jnp
from jax.experimental import pallas as pl
from jax.experimental.pallas import tpu as pltpu

# ---------------- configuration (small, consistent with the module) ----------
IMG = 16          # img_size
PATCH = 4         # patch_size
C_IN = 4          # in_channels
EMBED = 32        # embed_dim
LAYERS = 2        # num_layers
HEADS = 4         # num_heads
FF = 2048         # nn.TransformerEncoderLayer default dim_feedforward
EPS = 1e-5        # default layer_norm_eps

N_SIDE = IMG // PATCH
N_PATCH = N_SIDE * N_SIDE            # 16
K_PATCH = C_IN * PATCH * PATCH       # 64  (conv-as-matmul contraction dim)
HEAD_DIM = EMBED // HEADS            # 8
OUT_DIM = PATCH * PATCH * C_IN       # 64  (decoder output dim)
DEC_PAD = 128                        # decoder output padded to full 128-lane stores


# ---------------- fused Pallas kernel (one batch element per grid step) ------
def _vit_fused_kernel(p_ref, wpe_ref, pe_ref,
                      wqkv_ref, wo_ref, w1_ref, b1_ref, w2_ref, vec_ref,
                      wdec_ref, bdec_ref, o_ref):
    f32 = jnp.float32
    bf16 = jnp.bfloat16

    # --- patch embedding (Conv2d stride=patch as matmul) + pos embedding -----
    x = jnp.dot(p_ref[...].astype(bf16), wpe_ref[...], preferred_element_type=f32)
    x = x + pe_ref[...]                                   # pe = pos_embedding + conv bias

    for li in range(LAYERS):                              # static unroll; weights stay in VMEM
        wqkv = wqkv_ref[li]                               # (E, 3E) bf16, 1/sqrt(D) folded into Q
        w1 = w1_ref[li]                                   # (E, FF) bf16
        w2 = w2_ref[li]                                   # (FF, E) bf16
        b1 = b1_ref[li]                                   # (1, FF) f32
        vec = vec_ref[li]                                 # (9, E)  f32 packed small vectors

        # --- multi-head self-attention ---------------------------------------
        qkv = jnp.dot(x.astype(bf16), wqkv, preferred_element_type=f32)   # (N, 3E)
        q = qkv[:, 0 * EMBED:1 * EMBED] + vec[0:1]
        k = qkv[:, 1 * EMBED:2 * EMBED] + vec[1:2]
        v = qkv[:, 2 * EMBED:3 * EMBED] + vec[2:3]

        qb = q.astype(bf16)
        kT = k.T.astype(bf16)                             # single (E, N) transpose per layer
        vb = v.astype(bf16)

        # Output projection folded into the head loop: attn @ Wo == sum_h head_h @ Wo_h.
        # Removes the cross-lane concat and the separate out-proj matmul.
        attn = jnp.zeros((N_PATCH, EMBED), f32)
        for h in range(HEADS):
            sl = slice(h * HEAD_DIM, (h + 1) * HEAD_DIM)
            s = jnp.dot(qb[:, sl], kT[sl, :], preferred_element_type=f32)  # (N, N)
            s = s - jnp.max(s, axis=-1, keepdims=True)
            pexp = jnp.exp(s)
            pexp = pexp * pl.reciprocal(jnp.sum(pexp, axis=-1, keepdims=True),
                                        approx=True)
            hv = jnp.dot(pexp.astype(bf16), vb[:, sl], preferred_element_type=f32)
            wo_h = wo_ref[li * HEADS + h]                  # (D, E) bf16
            attn = attn + jnp.dot(hv.astype(bf16), wo_h, preferred_element_type=f32)
        attn = attn + vec[3:4]                             # out-proj bias

        # --- residual + LayerNorm1 (post-norm encoder layer) ------------------
        h1 = x + attn
        mu1 = jnp.mean(h1, axis=-1, keepdims=True)
        var1 = jnp.mean((h1 - mu1) ** 2, axis=-1, keepdims=True)
        h1 = (h1 - mu1) * jax.lax.rsqrt(var1 + EPS) * vec[4:5] + vec[5:6]

        # --- feed-forward (ReLU) ----------------------------------------------
        f = jnp.dot(h1.astype(bf16), w1, preferred_element_type=f32) + b1    # (N, FF)
        f = jnp.maximum(f, 0.0)
        f = jnp.dot(f.astype(bf16), w2, preferred_element_type=f32) + vec[6:7]

        # --- residual + LayerNorm2 ---------------------------------------------
        h2 = h1 + f
        mu2 = jnp.mean(h2, axis=-1, keepdims=True)
        var2 = jnp.mean((h2 - mu2) ** 2, axis=-1, keepdims=True)
        x = (h2 - mu2) * jax.lax.rsqrt(var2 + EPS) * vec[7:8] + vec[8:9]

    # --- decoder linear, lane-padded to 128 for unmasked stores ---------------
    y = jnp.dot(x.astype(bf16), wdec_ref[...], preferred_element_type=f32) + bdec_ref[...]
    o_ref[...] = y                                         # (N, 128) f32


# ---------------- pallas_call wrapper -----------------------------------------
def _fused_forward_call(patches, params):
    B = patches.shape[0]
    return pl.pallas_call(
        _vit_fused_kernel,
        out_shape=jax.ShapeDtypeStruct((B, N_PATCH, DEC_PAD), jnp.float32),
        grid=(B,),
        in_specs=[
            pl.BlockSpec((None, N_PATCH, K_PATCH), lambda b: (b, 0, 0)),       # patches
            pl.BlockSpec((K_PATCH, EMBED), lambda b: (0, 0)),                  # patch-embed W (bf16)
            pl.BlockSpec((N_PATCH, EMBED), lambda b: (0, 0)),                  # pos + conv bias
            pl.BlockSpec((LAYERS, EMBED, 3 * EMBED), lambda b: (0, 0, 0)),     # Wqkv (bf16)
            pl.BlockSpec((LAYERS * HEADS, HEAD_DIM, EMBED), lambda b: (0, 0, 0)),  # Wo per head (bf16)
            pl.BlockSpec((LAYERS, EMBED, FF), lambda b: (0, 0, 0)),            # W1 (bf16)
            pl.BlockSpec((LAYERS, 1, FF), lambda b: (0, 0, 0)),                # b1
            pl.BlockSpec((LAYERS, FF, EMBED), lambda b: (0, 0, 0)),            # W2 (bf16)
            pl.BlockSpec((LAYERS, 9, EMBED), lambda b: (0, 0, 0)),             # packed small vectors
            pl.BlockSpec((EMBED, DEC_PAD), lambda b: (0, 0)),                  # decoder W (padded, bf16)
            pl.BlockSpec((1, DEC_PAD), lambda b: (0, 0)),                      # decoder b (padded)
        ],
        out_specs=pl.BlockSpec((None, N_PATCH, DEC_PAD), lambda b: (b, 0, 0)),
        compiler_params=pltpu.CompilerParams(dimension_semantics=("parallel",)),
    )(patches, params["w_patch"], params["pos_bias"],
      params["wqkv"], params["wo"], params["w1"], params["b1"], params["w2"],
      params["vec"], params["w_dec"], params["b_dec"])


# ---------------- parameter construction (deterministic) ----------------------
def init_params(key):
    def nrm(k, shape, scale=0.05):
        return scale * jax.random.normal(k, shape, dtype=jnp.float32)

    keys = jax.random.split(key, 8 + LAYERS)
    # Conv2d(C_IN, EMBED, kernel=PATCH, stride=PATCH) as matmul:
    # weight [E, C, P, P] -> [E, K] -> transpose -> [K, E]
    w_conv = nrm(keys[0], (EMBED, C_IN, PATCH, PATCH))
    w_patch = w_conv.reshape(EMBED, K_PATCH).T                 # (K, E)
    b_patch = nrm(keys[1], (EMBED,))
    pos = nrm(keys[2], (N_PATCH, EMBED))                       # pos_embedding (squeezed)
    pos_bias = pos + b_patch[None, :]                          # fold conv bias into pos add

    scale = 1.0 / (HEAD_DIM ** 0.5)
    ones_e = jnp.ones((EMBED,), jnp.float32)
    zeros_e = jnp.zeros((EMBED,), jnp.float32)

    wqkv_l, wo_l, w1_l, b1_l, w2_l, vec_l = [], [], [], [], [], []
    for li in range(LAYERS):
        lk = jax.random.split(keys[3 + li], 8)
        in_proj_w = nrm(lk[0], (3 * EMBED, EMBED))             # PyTorch in_proj_weight layout
        in_proj_b = nrm(lk[4], (3 * EMBED,))
        out_proj_w = nrm(lk[1], (EMBED, EMBED))
        lin1_w = nrm(lk[2], (FF, EMBED))
        lin2_w = nrm(lk[3], (EMBED, FF))
        bo = nrm(lk[5], (EMBED,))
        b1 = nrm(lk[6], (FF,))
        b2 = nrm(lk[7], (EMBED,))

        wqkv = in_proj_w.T                                     # (E, 3E)
        wqkv = wqkv.at[:, :EMBED].multiply(scale)              # fold 1/sqrt(head_dim) into Q
        bq = in_proj_b[:EMBED] * scale
        bk = in_proj_b[EMBED:2 * EMBED]
        bv = in_proj_b[2 * EMBED:]

        # packed small vectors: [bq, bk, bv, bo, ln1w, ln1b, b2, ln2w, ln2b]
        vec = jnp.stack([bq, bk, bv, bo, ones_e, zeros_e, b2, ones_e, zeros_e], axis=0)

        wqkv_l.append(wqkv.astype(jnp.bfloat16))
        wo_l.append(out_proj_w.T.reshape(HEADS, HEAD_DIM, EMBED).astype(jnp.bfloat16))
        w1_l.append(lin1_w.T.astype(jnp.bfloat16))             # (E, FF)
        b1_l.append(b1.reshape(1, FF))
        w2_l.append(lin2_w.T.astype(jnp.bfloat16))             # (FF, E)
        vec_l.append(vec)

    dec_w = nrm(keys[3 + LAYERS], (OUT_DIM, EMBED))            # nn.Linear layout
    dec_b = nrm(keys[4 + LAYERS], (OUT_DIM,))
    w_dec = jnp.zeros((EMBED, DEC_PAD), jnp.float32).at[:, :OUT_DIM].set(dec_w.T)
    b_dec = jnp.zeros((1, DEC_PAD), jnp.float32).at[0, :OUT_DIM].set(dec_b)

    return dict(
        w_patch=w_patch.astype(jnp.bfloat16),
        pos_bias=pos_bias,
        wqkv=jnp.stack(wqkv_l),                                # (L, E, 3E) bf16
        wo=jnp.concatenate(wo_l, axis=0),                      # (L*H, D, E) bf16
        w1=jnp.stack(w1_l),                                    # (L, E, FF) bf16
        b1=jnp.stack(b1_l),                                    # (L, 1, FF) f32
        w2=jnp.stack(w2_l),                                    # (L, FF, E) bf16
        vec=jnp.stack(vec_l),                                  # (L, 9, E)  f32
        w_dec=w_dec.astype(jnp.bfloat16),                      # (E, 128)   bf16 (zero-padded)
        b_dec=b_dec,                                           # (1, 128)   f32 (zero-padded)
    )


# ---------------- full forward -------------------------------------------------
@jax.jit
def vit_autoencoder_forward(x, params):
    # x: (B, C, H, W) float32, NCHW like PyTorch
    B = x.shape[0]
    # Conv2d(stride=patch) == extract non-overlapping patches, flatten (C,P,P)
    patches = x.reshape(B, C_IN, N_SIDE, PATCH, N_SIDE, PATCH)
    patches = patches.transpose(0, 2, 4, 1, 3, 5).reshape(B, N_PATCH, K_PATCH)

    dec = _fused_forward_call(patches, params)                 # (B, N, 128)
    dec = dec[:, :, :OUT_DIM]                                  # drop lane padding

    # exact replica of the PyTorch view/permute chain
    dec = dec.reshape(B, N_PATCH, PATCH, PATCH, C_IN)
    dec = dec.transpose(0, 4, 1, 2, 3)                         # (B, C, N, P, P)
    dec = dec.reshape(B, C_IN, N_SIDE, N_SIDE, PATCH, PATCH)
    dec = dec.transpose(0, 1, 2, 4, 3, 5)                      # (B, C, ns, P, ns, P)
    return dec.reshape(B, C_IN, IMG, IMG)


# ---------------- main ----------------------------------------------------------
if __name__ == "__main__":
    key = jax.random.PRNGKey(0)
    pkey, xkey = jax.random.split(key)
    params = init_params(pkey)
    x = jax.random.normal(xkey, (2, C_IN, IMG, IMG), dtype=jnp.float32)

    out = vit_autoencoder_forward(x, params)
    jax.block_until_ready(out)
    assert out.shape == (2, C_IN, IMG, IMG), out.shape
    assert out.dtype == jnp.float32
    print("KERNEL_OK")
</pallas_src>

<mosaic_0001>
module attributes {stable_mosaic.version = 11 : i64} {
  func.func @_vit_fused_kernel(%arg0: i32, %arg1: memref<1x16x64xf32, #tpu.memory_space<vmem>>, %arg2: memref<64x32xbf16, #tpu.memory_space<vmem>>, %arg3: memref<16x32xf32, #tpu.memory_space<vmem>>, %arg4: memref<2x32x96xbf16, #tpu.memory_space<vmem>>, %arg5: memref<8x8x32xbf16, #tpu.memory_space<vmem>>, %arg6: memref<2x32x2048xbf16, #tpu.memory_space<vmem>>, %arg7: memref<2x1x2048xf32, #tpu.memory_space<vmem>>, %arg8: memref<2x2048x32xbf16, #tpu.memory_space<vmem>>, %arg9: memref<2x9x32xf32, #tpu.memory_space<vmem>>, %arg10: memref<32x128xbf16, #tpu.memory_space<vmem>>, %arg11: memref<1x128xf32, #tpu.memory_space<vmem>>, %arg12: memref<1x16x128xf32, #tpu.memory_space<vmem>>) attributes {dimension_semantics = [#tpu.dimension_semantics<parallel>], iteration_bounds = array<i64: 2>, scalar_prefetch = 0 : i64, scratch_operands = 0 : i64, tpu.core_type = #tpu.core_type<tc>, window_params = [{transform_indices = @transform_0, window_bounds = array<i64: 1, 16, 64>}, {pipeline_mode = #tpu.pipeline_mode<synchronous>, transform_indices = @transform_1, window_bounds = array<i64: 64, 32>}, {pipeline_mode = #tpu.pipeline_mode<synchronous>, transform_indices = @transform_2, window_bounds = array<i64: 16, 32>}, {pipeline_mode = #tpu.pipeline_mode<synchronous>, transform_indices = @transform_3, window_bounds = array<i64: 2, 32, 96>}, {pipeline_mode = #tpu.pipeline_mode<synchronous>, transform_indices = @transform_4, window_bounds = array<i64: 8, 8, 32>}, {pipeline_mode = #tpu.pipeline_mode<synchronous>, transform_indices = @transform_5, window_bounds = array<i64: 2, 32, 2048>}, {pipeline_mode = #tpu.pipeline_mode<synchronous>, transform_indices = @transform_6, window_bounds = array<i64: 2, 1, 2048>}, {pipeline_mode = #tpu.pipeline_mode<synchronous>, transform_indices = @transform_7, window_bounds = array<i64: 2, 2048, 32>}, {pipeline_mode = #tpu.pipeline_mode<synchronous>, transform_indices = @transform_8, window_bounds = array<i64: 2, 9, 32>}, {pipeline_mode = #tpu.pipeline_mode<synchronous>, transform_indices = @transform_9, window_bounds = array<i64: 32, 128>}, {pipeline_mode = #tpu.pipeline_mode<synchronous>, transform_indices = @transform_10, window_bounds = array<i64: 1, 128>}, {transform_indices = @transform_11, window_bounds = array<i64: 1, 16, 128>}]} {
    %c0 = arith.constant 0 : index
    %c0_0 = arith.constant 0 : index
    %c0_1 = arith.constant 0 : index
    %0 = vector.load %arg1[%c0, %c0_0, %c0_1] : memref<1x16x64xf32, #tpu.memory_space<vmem>>, vector<1x16x64xf32>
    %1 = vector.shape_cast %0 : vector<1x16x64xf32> to vector<16x64xf32>
    %2 = arith.truncf %1 : vector<16x64xf32> to vector<16x64xbf16>
    %c0_2 = arith.constant 0 : index
    %c0_3 = arith.constant 0 : index
    %3 = vector.load %arg2[%c0_2, %c0_3] : memref<64x32xbf16, #tpu.memory_space<vmem>>, vector<64x32xbf16>
    %cst = arith.constant dense<0.000000e+00> : vector<16x32xf32>
    %4 = tpu.matmul %2, %3, %cst {dimension_numbers = #tpu.dot_dimension_numbers<[1], [0], [0], [1], [0, 0, 1, 1], [], []>} : vector<16x64xbf16>, vector<64x32xbf16>, vector<16x32xf32> -> vector<16x32xf32>
    %c0_4 = arith.constant 0 : index
    %c0_5 = arith.constant 0 : index
    %5 = vector.load %arg3[%c0_4, %c0_5] : memref<16x32xf32, #tpu.memory_space<vmem>>, vector<16x32xf32>
    %6 = arith.addf %4, %5 : vector<16x32xf32>
    %c0_6 = arith.constant 0 : index
    %c0_7 = arith.constant 0 : index
    %c0_8 = arith.constant 0 : index
    %7 = vector.load %arg4[%c0_6, %c0_7, %c0_8] : memref<2x32x96xbf16, #tpu.memory_space<vmem>>, vector<1x32x96xbf16>
    %8 = vector.shape_cast %7 : vector<1x32x96xbf16> to vector<32x96xbf16>
    %c0_9 = arith.constant 0 : index
    %c0_10 = arith.constant 0 : index
    %c0_11 = arith.constant 0 : index
    %9 = vector.load %arg6[%c0_9, %c0_10, %c0_11] : memref<2x32x2048xbf16, #tpu.memory_space<vmem>>, vector<1x32x2048xbf16>
    %10 = vector.shape_cast %9 : vector<1x32x2048xbf16> to vector<32x2048xbf16>
    %c0_12 = arith.constant 0 : index
    %c0_13 = arith.constant 0 : index
    %c0_14 = arith.constant 0 : index
    %11 = vector.load %arg8[%c0_12, %c0_13, %c0_14] : memref<2x2048x32xbf16, #tpu.memory_space<vmem>>, vector<1x2048x32xbf16>
    %12 = vector.shape_cast %11 : vector<1x2048x32xbf16> to vector<2048x32xbf16>
    %c0_15 = arith.constant 0 : index
    %c0_16 = arith.constant 0 : index
    %c0_17 = arith.constant 0 : index
    %13 = vector.load %arg7[%c0_15, %c0_16, %c0_17] : memref<2x1x2048xf32, #tpu.memory_space<vmem>>, vector<1x1x2048xf32>
    %14 = vector.shape_cast %13 : vector<1x1x2048xf32> to vector<1x2048xf32>
    %c0_18 = arith.constant 0 : index
    %c0_19 = arith.constant 0 : index
    %c0_20 = arith.constant 0 : index
    %15 = vector.load %arg9[%c0_18, %c0_19, %c0_20] : memref<2x9x32xf32, #tpu.memory_space<vmem>>, vector<1x9x32xf32>
    %16 = vector.shape_cast %15 : vector<1x9x32xf32> to vector<9x32xf32>
    %17 = arith.truncf %6 : vector<16x32xf32> to vector<16x32xbf16>
    %cst_21 = arith.constant dense<0.000000e+00> : vector<16x96xf32>
    %18 = tpu.matmul %17, %8, %cst_21 {dimension_numbers = #tpu.dot_dimension_numbers<[1], [0], [0], [1], [0, 0, 1, 1], [], []>} : vector<16x32xbf16>, vector<32x96xbf16>, vector<16x96xf32> -> vector<16x96xf32>
    %19 = vector.extract_strided_slice %18 {offsets = [0, 0], sizes = [16, 32], strides = [1, 1]} : vector<16x96xf32> to vector<16x32xf32>
    %20 = vector.extract_strided_slice %16 {offsets = [0, 0], sizes = [1, 32], strides = [1, 1]} : vector<9x32xf32> to vector<1x32xf32>
    %21 = vector.broadcast %20 : vector<1x32xf32> to vector<16x32xf32>
    %22 = arith.addf %19, %21 : vector<16x32xf32>
    %23 = vector.extract_strided_slice %18 {offsets = [0, 32], sizes = [16, 32], strides = [1, 1]} : vector<16x96xf32> to vector<16x32xf32>
    %24 = vector.extract_strided_slice %16 {offsets = [1, 0], sizes = [1, 32], strides = [1, 1]} : vector<9x32xf32> to vector<1x32xf32>
    %25 = vector.broadcast %24 : vector<1x32xf32> to vector<16x32xf32>
    %26 = arith.addf %23, %25 : vector<16x32xf32>
    %27 = vector.extract_strided_slice %18 {offsets = [0, 64], sizes = [16, 32], strides = [1, 1]} : vector<16x96xf32> to vector<16x32xf32>
    %28 = vector.extract_strided_slice %16 {offsets = [2, 0], sizes = [1, 32], strides = [1, 1]} : vector<9x32xf32> to vector<1x32xf32>
    %29 = vector.broadcast %28 : vector<1x32xf32> to vector<16x32xf32>
    %30 = arith.addf %27, %29 : vector<16x32xf32>
    %31 = arith.truncf %22 : vector<16x32xf32> to vector<16x32xbf16>
    %32 = tpu.transpose %26, [1, 0] : vector<16x32xf32> -> vector<32x16xf32>
    %33 = arith.truncf %32 : vector<32x16xf32> to vector<32x16xbf16>
    %34 = arith.truncf %30 : vector<16x32xf32> to vector<16x32xbf16>
    %cst_22 = arith.constant 0.000000e+00 : f32
    %35 = vector.broadcast %cst_22 : f32 to vector<16x32xf32>
    %36 = vector.extract_strided_slice %31 {offsets = [0, 0], sizes = [16, 8], strides = [1, 1]} : vector<16x32xbf16> to vector<16x8xbf16>
    %37 = vector.extract_strided_slice %33 {offsets = [0, 0], sizes = [8, 16], strides = [1, 1]} : vector<32x16xbf16> to vector<8x16xbf16>
    %cst_23 = arith.constant dense<0.000000e+00> : vector<16x16xf32>
    %38 = tpu.matmul %36, %37, %cst_23 {dimension_numbers = #tpu.dot_dimension_numbers<[1], [0], [0], [1], [0, 0, 1, 1], [], []>} : vector<16x8xbf16>, vector<8x16xbf16>, vector<16x16xf32> -> vector<16x16xf32>
    %cst_24 = arith.constant dense<0xFF800000> : vector<16xf32>
    %39 = vector.multi_reduction <maximumf>, %38, %cst_24 [1] : vector<16x16xf32> to vector<16xf32>
    %40 = vector.shape_cast %39 : vector<16xf32> to vector<16x1xf32>
    %41 = vector.broadcast %40 : vector<16x1xf32> to vector<16x16xf32>
    %42 = arith.subf %38, %41 : vector<16x16xf32>
    %43 = math.exp %42 : vector<16x16xf32>
    %cst_25 = arith.constant dense<0.000000e+00> : vector<16xf32>
    %44 = vector.multi_reduction <add>, %43, %cst_25 [1] : vector<16x16xf32> to vector<16xf32>
    %45 = vector.shape_cast %44 : vector<16xf32> to vector<16x1xf32>
    %46 = tpu.reciprocal %45 {approx = true} : vector<16x1xf32> -> vector<16x1xf32>
    %47 = vector.broadcast %46 : vector<16x1xf32> to vector<16x16xf32>
    %48 = arith.mulf %43, %47 : vector<16x16xf32>
    %49 = arith.truncf %48 : vector<16x16xf32> to vector<16x16xbf16>
    %50 = vector.extract_strided_slice %34 {offsets = [0, 0], sizes = [16, 8], strides = [1, 1]} : vector<16x32xbf16> to vector<16x8xbf16>
    %cst_26 = arith.constant dense<0.000000e+00> : vector<16x8xf32>
    %51 = tpu.matmul %49, %50, %cst_26 {dimension_numbers = #tpu.dot_dimension_numbers<[1], [0], [0], [1], [0, 0, 1, 1], [], []>} : vector<16x16xbf16>, vector<16x8xbf16>, vector<16x8xf32> -> vector<16x8xf32>
    %c0_27 = arith.constant 0 : index
    %c0_28 = arith.constant 0 : index
    %c0_29 = arith.constant 0 : index
    %52 = vector.load %arg5[%c0_27, %c0_28, %c0_29] : memref<8x8x32xbf16, #tpu.memory_space<vmem>>, vector<1x8x32xbf16>
    %53 = vector.shape_cast %52 : vector<1x8x32xbf16> to vector<8x32xbf16>
    %54 = arith.truncf %51 : vector<16x8xf32> to vector<16x8xbf16>
    %cst_30 = arith.constant dense<0.000000e+00> : vector<16x32xf32>
    %55 = tpu.matmul %54, %53, %cst_30 {dimension_numbers = #tpu.dot_dimension_numbers<[1], [0], [0], [1], [0, 0, 1, 1], [], []>} : vector<16x8xbf16>, vector<8x32xbf16>, vector<16x32xf32> -> vector<16x32xf32>
    %56 = arith.addf %35, %55 : vector<16x32xf32>
    %57 = vector.extract_strided_slice %31 {offsets = [0, 8], sizes = [16, 8], strides = [1, 1]} : vector<16x32xbf16> to vector<16x8xbf16>
    %58 = vector.extract_strided_slice %33 {offsets = [8, 0], sizes = [8, 16], strides = [1, 1]} : vector<32x16xbf16> to vector<8x16xbf16>
    %cst_31 = arith.constant dense<0.000000e+00> : vector<16x16xf32>
    %59 = tpu.matmul %57, %58, %cst_31 {dimension_numbers = #tpu.dot_dimension_numbers<[1], [0], [0], [1], [0, 0, 1, 1], [], []>} : vector<16x8xbf16>, vector<8x16xbf16>, vector<16x16xf32> -> vector<16x16xf32>
    %cst_32 = arith.constant dense<0xFF800000> : vector<16xf32>
    %60 = vector.multi_reduction <maximumf>, %59, %cst_32 [1] : vector<16x16xf32> to vector<16xf32>
    %61 = vector.shape_cast %60 : vector<16xf32> to vector<16x1xf32>
    %62 = vector.broadcast %61 : vector<16x1xf32> to vector<16x16xf32>
    %63 = arith.subf %59, %62 : vector<16x16xf32>
    %64 = math.exp %63 : vector<16x16xf32>
    %cst_33 = arith.constant dense<0.000000e+00> : vector<16xf32>
    %65 = vector.multi_reduction <add>, %64, %cst_33 [1] : vector<16x16xf32> to vector<16xf32>
    %66 = vector.shape_cast %65 : vector<16xf32> to vector<16x1xf32>
    %67 = tpu.reciprocal %66 {approx = true} : vector<16x1xf32> -> vector<16x1xf32>
    %68 = vector.broadcast %67 : vector<16x1xf32> to vector<16x16xf32>
    %69 = arith.mulf %64, %68 : vector<16x16xf32>
    %70 = arith.truncf %69 : vector<16x16xf32> to vector<16x16xbf16>
    %71 = vector.extract_strided_slice %34 {offsets = [0, 8], sizes = [16, 8], strides = [1, 1]} : vector<16x32xbf16> to vector<16x8xbf16>
    %cst_34 = arith.constant dense<0.000000e+00> : vector<16x8xf32>
    %72 = tpu.matmul %70, %71, %cst_34 {dimension_numbers = #tpu.dot_dimension_numbers<[1], [0], [0], [1], [0, 0, 1, 1], [], []>} : vector<16x16xbf16>, vector<16x8xbf16>, vector<16x8xf32> -> vector<16x8xf32>
    %c1 = arith.constant 1 : index
    %c0_35 = arith.constant 0 : index
    %c0_36 = arith.constant 0 : index
    %73 = vector.load %arg5[%c1, %c0_35, %c0_36] : memref<8x8x32xbf16, #tpu.memory_space<vmem>>, vector<1x8x32xbf16>
    %74 = vector.shape_cast %73 : vector<1x8x32xbf16> to vector<8x32xbf16>
    %75 = arith.truncf %72 : vector<16x8xf32> to vector<16x8xbf16>
    %cst_37 = arith.constant dense<0.000000e+00> : vector<16x32xf32>
    %76 = tpu.matmul %75, %74, %cst_37 {dimension_numbers = #tpu.dot_dimension_numbers<[1], [0], [0], [1], [0, 0, 1, 1], [], []>} : vector<16x8xbf16>, vector<8x32xbf16>, vector<16x32xf32> -> vector<16x32xf32>
    %77 = arith.addf %56, %76 : vector<16x32xf32>
    %78 = vector.extract_strided_slice %31 {offsets = [0, 16], sizes = [16, 8], strides = [1, 1]} : vector<16x32xbf16> to vector<16x8xbf16>
    %79 = vector.extract_strided_slice %33 {offsets = [16, 0], sizes = [8, 16], strides = [1, 1]} : vector<32x16xbf16> to vector<8x16xbf16>
    %cst_38 = arith.constant dense<0.000000e+00> : vector<16x16xf32>
    %80 = tpu.matmul %78, %79, %cst_38 {dimension_numbers = #tpu.dot_dimension_numbers<[1], [0], [0], [1], [0, 0, 1, 1], [], []>} : vector<16x8xbf16>, vector<8x16xbf16>, vector<16x16xf32> -> vector<16x16xf32>
    %cst_39 = arith.constant dense<0xFF800000> : vector<16xf32>
    %81 = vector.multi_reduction <maximumf>, %80, %cst_39 [1] : vector<16x16xf32> to vector<16xf32>
    %82 = vector.shape_cast %81 : vector<16xf32> to vector<16x1xf32>
    %83 = vector.broadcast %82 : vector<16x1xf32> to vector<16x16xf32>
    %84 = arith.subf %80, %83 : vector<16x16xf32>
    %85 = math.exp %84 : vector<16x16xf32>
    %cst_40 = arith.constant dense<0.000000e+00> : vector<16xf32>
    %86 = vector.multi_reduction <add>, %85, %cst_40 [1] : vector<16x16xf32> to vector<16xf32>
    %87 = vector.shape_cast %86 : vector<16xf32> to vector<16x1xf32>
    %88 = tpu.reciprocal %87 {approx = true} : vector<16x1xf32> -> vector<16x1xf32>
    %89 = vector.broadcast %88 : vector<16x1xf32> to vector<16x16xf32>
    %90 = arith.mulf %85, %89 : vector<16x16xf32>
    %91 = arith.truncf %90 : vector<16x16xf32> to vector<16x16xbf16>
    %92 = vector.extract_strided_slice %34 {offsets = [0, 16], sizes = [16, 8], strides = [1, 1]} : vector<16x32xbf16> to vector<16x8xbf16>
    %cst_41 = arith.constant dense<0.000000e+00> : vector<16x8xf32>
    %93 = tpu.matmul %91, %92, %cst_41 {dimension_numbers = #tpu.dot_dimension_numbers<[1], [0], [0], [1], [0, 0, 1, 1], [], []>} : vector<16x16xbf16>, vector<16x8xbf16>, vector<16x8xf32> -> vector<16x8xf32>
    %c2 = arith.constant 2 : index
    %c0_42 = arith.constant 0 : index
    %c0_43 = arith.constant 0 : index
    %94 = vector.load %arg5[%c2, %c0_42, %c0_43] : memref<8x8x32xbf16, #tpu.memory_space<vmem>>, vector<1x8x32xbf16>
    %95 = vector.shape_cast %94 : vector<1x8x32xbf16> to vector<8x32xbf16>
    %96 = arith.truncf %93 : vector<16x8xf32> to vector<16x8xbf16>
    %cst_44 = arith.constant dense<0.000000e+00> : vector<16x32xf32>
    %97 = tpu.matmul %96, %95, %cst_44 {dimension_numbers = #tpu.dot_dimension_numbers<[1], [0], [0], [1], [0, 0, 1, 1], [], []>} : vector<16x8xbf16>, vector<8x32xbf16>, vector<16x32xf32> -> vector<16x32xf32>
    %98 = arith.addf %77, %97 : vector<16x32xf32>
    %99 = vector.extract_strided_slice %31 {offsets = [0, 24], sizes = [16, 8], strides = [1, 1]} : vector<16x32xbf16> to vector<16x8xbf16>
    %100 = vector.extract_strided_slice %33 {offsets = [24, 0], sizes = [8, 16], strides = [1, 1]} : vector<32x16xbf16> to vector<8x16xbf16>
    %cst_45 = arith.constant dense<0.000000e+00> : vector<16x16xf32>
    %101 = tpu.matmul %99, %100, %cst_45 {dimension_numbers = #tpu.dot_dimension_numbers<[1], [0], [0], [1], [0, 0, 1, 1], [], []>} : vector<16x8xbf16>, vector<8x16xbf16>, vector<16x16xf32> -> vector<16x16xf32>
    %cst_46 = arith.constant dense<0xFF800000> : vector<16xf32>
    %102 = vector.multi_reduction <maximumf>, %101, %cst_46 [1] : vector<16x16xf32> to vector<16xf32>
    %103 = vector.shape_cast %102 : vector<16xf32> to vector<16x1xf32>
    %104 = vector.broadcast %103 : vector<16x1xf32> to vector<16x16xf32>
    %105 = arith.subf %101, %104 : vector<16x16xf32>
    %106 = math.exp %105 : vector<16x16xf32>
    %cst_47 = arith.constant dense<0.000000e+00> : vector<16xf32>
    %107 = vector.multi_reduction <add>, %106, %cst_47 [1] : vector<16x16xf32> to vector<16xf32>
    %108 = vector.shape_cast %107 : vector<16xf32> to vector<16x1xf32>
    %109 = tpu.reciprocal %108 {approx = true} : vector<16x1xf32> -> vector<16x1xf32>
    %110 = vector.broadcast %109 : vector<16x1xf32> to vector<16x16xf32>
    %111 = arith.mulf %106, %110 : vector<16x16xf32>
    %112 = arith.truncf %111 : vector<16x16xf32> to vector<16x16xbf16>
    %113 = vector.extract_strided_slice %34 {offsets = [0, 24], sizes = [16, 8], strides = [1, 1]} : vector<16x32xbf16> to vector<16x8xbf16>
    %cst_48 = arith.constant dense<0.000000e+00> : vector<16x8xf32>
    %114 = tpu.matmul %112, %113, %cst_48 {dimension_numbers = #tpu.dot_dimension_numbers<[1], [0], [0], [1], [0, 0, 1, 1], [], []>} : vector<16x16xbf16>, vector<16x8xbf16>, vector<16x8xf32> -> vector<16x8xf32>
    %c3 = arith.constant 3 : index
    %c0_49 = arith.constant 0 : index
    %c0_50 = arith.constant 0 : index
    %115 = vector.load %arg5[%c3, %c0_49, %c0_50] : memref<8x8x32xbf16, #tpu.memory_space<vmem>>, vector<1x8x32xbf16>
    %116 = vector.shape_cast %115 : vector<1x8x32xbf16> to vector<8x32xbf16>
    %117 = arith.truncf %114 : vector<16x8xf32> to vector<16x8xbf16>
    %cst_51 = arith.constant dense<0.000000e+00> : vector<16x32xf32>
    %118 = tpu.matmul %117, %116, %cst_51 {dimension_numbers = #tpu.dot_dimension_numbers<[1], [0], [0], [1], [0, 0, 1, 1], [], []>} : vector<16x8xbf16>, vector<8x32xbf16>, vector<16x32xf32> -> vector<16x32xf32>
    %119 = arith.addf %98, %118 : vector<16x32xf32>
    %120 = vector.extract_strided_slice %16 {offsets = [3, 0], sizes = [1, 32], strides = [1, 1]} : vector<9x32xf32> to vector<1x32xf32>
    %121 = vector.broadcast %120 : vector<1x32xf32> to vector<16x32xf32>
    %122 = arith.addf %119, %121 : vector<16x32xf32>
    %123 = arith.addf %6, %122 : vector<16x32xf32>
    %cst_52 = arith.constant dense<0.000000e+00> : vector<16xf32>
    %124 = vector.multi_reduction <add>, %123, %cst_52 [1] : vector<16x32xf32> to vector<16xf32>
    %125 = vector.shape_cast %124 : vector<16xf32> to vector<16x1xf32>
    %cst_53 = arith.constant 3.200000e+01 : f32
    %126 = vector.broadcast %cst_53 : f32 to vector<16x1xf32>
    %127 = arith.divf %125, %126 : vector<16x1xf32>
    %128 = vector.broadcast %127 : vector<16x1xf32> to vector<16x32xf32>
    %129 = arith.subf %123, %128 : vector<16x32xf32>
    %130 = arith.mulf %129, %129 : vector<16x32xf32>
    %cst_54 = arith.constant dense<0.000000e+00> : vector<16xf32>
    %131 = vector.multi_reduction <add>, %130, %cst_54 [1] : vector<16x32xf32> to vector<16xf32>
    %132 = vector.shape_cast %131 : vector<16xf32> to vector<16x1xf32>
    %cst_55 = arith.constant 3.200000e+01 : f32
    %133 = vector.broadcast %cst_55 : f32 to vector<16x1xf32>
    %134 = arith.divf %132, %133 : vector<16x1xf32>
    %135 = vector.broadcast %127 : vector<16x1xf32> to vector<16x32xf32>
    %136 = arith.subf %123, %135 : vector<16x32xf32>
    %cst_56 = arith.constant 9.99999974E-6 : f32
    %137 = vector.broadcast %cst_56 : f32 to vector<16x1xf32>
    %138 = arith.addf %134, %137 : vector<16x1xf32>
    %139 = math.rsqrt %138 : vector<16x1xf32>
    %140 = vector.broadcast %139 : vector<16x1xf32> to vector<16x32xf32>
    %141 = arith.mulf %136, %140 : vector<16x32xf32>
    %142 = vector.extract_strided_slice %16 {offsets = [4, 0], sizes = [1, 32], strides = [1, 1]} : vector<9x32xf32> to vector<1x32xf32>
    %143 = vector.broadcast %142 : vector<1x32xf32> to vector<16x32xf32>
    %144 = arith.mulf %141, %143 : vector<16x32xf32>
    %145 = vector.extract_strided_slice %16 {offsets = [5, 0], sizes = [1, 32], strides = [1, 1]} : vector<9x32xf32> to vector<1x32xf32>
    %146 = vector.broadcast %145 : vector<1x32xf32> to vector<16x32xf32>
    %147 = arith.addf %144, %146 : vector<16x32xf32>
    %148 = arith.truncf %147 : vector<16x32xf32> to vector<16x32xbf16>
    %cst_57 = arith.constant dense<0.000000e+00> : vector<16x2048xf32>
    %149 = tpu.matmul %148, %10, %cst_57 {dimension_numbers = #tpu.dot_dimension_numbers<[1], [0], [0], [1], [0, 0, 1, 1], [], []>} : vector<16x32xbf16>, vector<32x2048xbf16>, vector<16x2048xf32> -> vector<16x2048xf32>
    %150 = vector.broadcast %14 : vector<1x2048xf32> to vector<16x2048xf32>
    %151 = arith.addf %149, %150 : vector<16x2048xf32>
    %cst_58 = arith.constant 0.000000e+00 : f32
    %152 = vector.broadcast %cst_58 : f32 to vector<16x2048xf32>
    %153 = arith.maximumf %151, %152 : vector<16x2048xf32>
    %154 = arith.truncf %153 : vector<16x2048xf32> to vector<16x2048xbf16>
    %cst_59 = arith.constant dense<0.000000e+00> : vector<16x32xf32>
    %155 = tpu.matmul %154, %12, %cst_59 {dimension_numbers = #tpu.dot_dimension_numbers<[1], [0], [0], [1], [0, 0, 1, 1], [], []>} : vector<16x2048xbf16>, vector<2048x32xbf16>, vector<16x32xf32> -> vector<16x32xf32>
    %156 = vector.extract_strided_slice %16 {offsets = [6, 0], sizes = [1, 32], strides = [1, 1]} : vector<9x32xf32> to vector<1x32xf32>
    %157 = vector.broadcast %156 : vector<1x32xf32> to vector<16x32xf32>
    %158 = arith.addf %155, %157 : vector<16x32xf32>
    %159 = arith.addf %147, %158 : vector<16x32xf32>
    %cst_60 = arith.constant dense<0.000000e+00> : vector<16xf32>
    %160 = vector.multi_reduction <add>, %159, %cst_60 [1] : vector<16x32xf32> to vector<16xf32>
    %161 = vector.shape_cast %160 : vector<16xf32> to vector<16x1xf32>
    %cst_61 = arith.constant 3.200000e+01 : f32
    %162 = vector.broadcast %cst_61 : f32 to vector<16x1xf32>
    %163 = arith.divf %161, %162 : vector<16x1xf32>
    %164 = vector.broadcast %163 : vector<16x1xf32> to vector<16x32xf32>
    %165 = arith.subf %159, %164 : vector<16x32xf32>
    %166 = arith.mulf %165, %165 : vector<16x32xf32>
    %cst_62 = arith.constant dense<0.000000e+00> : vector<16xf32>
    %167 = vector.multi_reduction <add>, %166, %cst_62 [1] : vector<16x32xf32> to vector<16xf32>
    %168 = vector.shape_cast %167 : vector<16xf32> to vector<16x1xf32>
    %cst_63 = arith.constant 3.200000e+01 : f32
    %169 = vector.broadcast %cst_63 : f32 to vector<16x1xf32>
    %170 = arith.divf %168, %169 : vector<16x1xf32>
    %171 = vector.broadcast %163 : vector<16x1xf32> to vector<16x32xf32>
    %172 = arith.subf %159, %171 : vector<16x32xf32>
    %cst_64 = arith.constant 9.99999974E-6 : f32
    %173 = vector.broadcast %cst_64 : f32 to vector<16x1xf32>
    %174 = arith.addf %170, %173 : vector<16x1xf32>
    %175 = math.rsqrt %174 : vector<16x1xf32>
    %176 = vector.broadcast %175 : vector<16x1xf32> to vector<16x32xf32>
    %177 = arith.mulf %172, %176 : vector<16x32xf32>
    %178 = vector.extract_strided_slice %16 {offsets = [7, 0], sizes = [1, 32], strides = [1, 1]} : vector<9x32xf32> to vector<1x32xf32>
    %179 = vector.broadcast %178 : vector<1x32xf32> to vector<16x32xf32>
    %180 = arith.mulf %177, %179 : vector<16x32xf32>
    %181 = vector.extract_strided_slice %16 {offsets = [8, 0], sizes = [1, 32], strides = [1, 1]} : vector<9x32xf32> to vector<1x32xf32>
    %182 = vector.broadcast %181 : vector<1x32xf32> to vector<16x32xf32>
    %183 = arith.addf %180, %182 : vector<16x32xf32>
    %c1_65 = arith.constant 1 : index
    %c0_66 = arith.constant 0 : index
    %c0_67 = arith.constant 0 : index
    %184 = vector.load %arg4[%c1_65, %c0_66, %c0_67] : memref<2x32x96xbf16, #tpu.memory_space<vmem>>, vector<1x32x96xbf16>
    %185 = vector.shape_cast %184 : vector<1x32x96xbf16> to vector<32x96xbf16>
    %c1_68 = arith.constant 1 : index
    %c0_69 = arith.constant 0 : index
    %c0_70 = arith.constant 0 : index
    %186 = vector.load %arg6[%c1_68, %c0_69, %c0_70] : memref<2x32x2048xbf16, #tpu.memory_space<vmem>>, vector<1x32x2048xbf16>
    %187 = vector.shape_cast %186 : vector<1x32x2048xbf16> to vector<32x2048xbf16>
    %c1_71 = arith.constant 1 : index
    %c0_72 = arith.constant 0 : index
    %c0_73 = arith.constant 0 : index
    %188 = vector.load %arg8[%c1_71, %c0_72, %c0_73] : memref<2x2048x32xbf16, #tpu.memory_space<vmem>>, vector<1x2048x32xbf16>
    %189 = vector.shape_cast %188 : vector<1x2048x32xbf16> to vector<2048x32xbf16>
    %c1_74 = arith.constant 1 : index
    %c0_75 = arith.constant 0 : index
    %c0_76 = arith.constant 0 : index
    %190 = vector.load %arg7[%c1_74, %c0_75, %c0_76] : memref<2x1x2048xf32, #tpu.memory_space<vmem>>, vector<1x1x2048xf32>
    %191 = vector.shape_cast %190 : vector<1x1x2048xf32> to vector<1x2048xf32>
    %c1_77 = arith.constant 1 : index
    %c0_78 = arith.constant 0 : index
    %c0_79 = arith.constant 0 : index
    %192 = vector.load %arg9[%c1_77, %c0_78, %c0_79] : memref<2x9x32xf32, #tpu.memory_space<vmem>>, vector<1x9x32xf32>
    %193 = vector.shape_cast %192 : vector<1x9x32xf32> to vector<9x32xf32>
    %194 = arith.truncf %183 : vector<16x32xf32> to vector<16x32xbf16>
    %cst_80 = arith.constant dense<0.000000e+00> : vector<16x96xf32>
    %195 = tpu.matmul %194, %185, %cst_80 {dimension_numbers = #tpu.dot_dimension_numbers<[1], [0], [0], [1], [0, 0, 1, 1], [], []>} : vector<16x32xbf16>, vector<32x96xbf16>, vector<16x96xf32> -> vector<16x96xf32>
    %196 = vector.extract_strided_slice %195 {offsets = [0, 0], sizes = [16, 32], strides = [1, 1]} : vector<16x96xf32> to vector<16x32xf32>
    %197 = vector.extract_strided_slice %193 {offsets = [0, 0], sizes = [1, 32], strides = [1, 1]} : vector<9x32xf32> to vector<1x32xf32>
    %198 = vector.broadcast %197 : vector<1x32xf32> to vector<16x32xf32>
    %199 = arith.addf %196, %198 : vector<16x32xf32>
    %200 = vector.extract_strided_slice %195 {offsets = [0, 32], sizes = [16, 32], strides = [1, 1]} : vector<16x96xf32> to vector<16x32xf32>
    %201 = vector.extract_strided_slice %193 {offsets = [1, 0], sizes = [1, 32], strides = [1, 1]} : vector<9x32xf32> to vector<1x32xf32>
    %202 = vector.broadcast %201 : vector<1x32xf32> to vector<16x32xf32>
    %203 = arith.addf %200, %202 : vector<16x32xf32>
    %204 = vector.extract_strided_slice %195 {offsets = [0, 64], sizes = [16, 32], strides = [1, 1]} : vector<16x96xf32> to vector<16x32xf32>
    %205 = vector.extract_strided_slice %193 {offsets = [2, 0], sizes = [1, 32], strides = [1, 1]} : vector<9x32xf32> to vector<1x32xf32>
    %206 = vector.broadcast %205 : vector<1x32xf32> to vector<16x32xf32>
    %207 = arith.addf %204, %206 : vector<16x32xf32>
    %208 = arith.truncf %199 : vector<16x32xf32> to vector<16x32xbf16>
    %209 = tpu.transpose %203, [1, 0] : vector<16x32xf32> -> vector<32x16xf32>
    %210 = arith.truncf %209 : vector<32x16xf32> to vector<32x16xbf16>
    %211 = arith.truncf %207 : vector<16x32xf32> to vector<16x32xbf16>
    %cst_81 = arith.constant 0.000000e+00 : f32
    %212 = vector.broadcast %cst_81 : f32 to vector<16x32xf32>
    %213 = vector.extract_strided_slice %208 {offsets = [0, 0], sizes = [16, 8], strides = [1, 1]} : vector<16x32xbf16> to vector<16x8xbf16>
    %214 = vector.extract_strided_slice %210 {offsets = [0, 0], sizes = [8, 16], strides = [1, 1]} : vector<32x16xbf16> to vector<8x16xbf16>
    %cst_82 = arith.constant dense<0.000000e+00> : vector<16x16xf32>
    %215 = tpu.matmul %213, %214, %cst_82 {dimension_numbers = #tpu.dot_dimension_numbers<[1], [0], [0], [1], [0, 0, 1, 1], [], []>} : vector<16x8xbf16>, vector<8x16xbf16>, vector<16x16xf32> -> vector<16x16xf32>
    %cst_83 = arith.constant dense<0xFF800000> : vector<16xf32>
    %216 = vector.multi_reduction <maximumf>, %215, %cst_83 [1] : vector<16x16xf32> to vector<16xf32>
    %217 = vector.shape_cast %216 : vector<16xf32> to vector<16x1xf32>
    %218 = vector.broadcast %217 : vector<16x1xf32> to vector<16x16xf32>
    %219 = arith.subf %215, %218 : vector<16x16xf32>
    %220 = math.exp %219 : vector<16x16xf32>
    %cst_84 = arith.constant dense<0.000000e+00> : vector<16xf32>
    %221 = vector.multi_reduction <add>, %220, %cst_84 [1] : vector<16x16xf32> to vector<16xf32>
    %222 = vector.shape_cast %221 : vector<16xf32> to vector<16x1xf32>
    %223 = tpu.reciprocal %222 {approx = true} : vector<16x1xf32> -> vector<16x1xf32>
    %224 = vector.broadcast %223 : vector<16x1xf32> to vector<16x16xf32>
    %225 = arith.mulf %220, %224 : vector<16x16xf32>
    %226 = arith.truncf %225 : vector<16x16xf32> to vector<16x16xbf16>
    %227 = vector.extract_strided_slice %211 {offsets = [0, 0], sizes = [16, 8], strides = [1, 1]} : vector<16x32xbf16> to vector<16x8xbf16>
    %cst_85 = arith.constant dense<0.000000e+00> : vector<16x8xf32>
    %228 = tpu.matmul %226, %227, %cst_85 {dimension_numbers = #tpu.dot_dimension_numbers<[1], [0], [0], [1], [0, 0, 1, 1], [], []>} : vector<16x16xbf16>, vector<16x8xbf16>, vector<16x8xf32> -> vector<16x8xf32>
    %c4 = arith.constant 4 : index
    %c0_86 = arith.constant 0 : index
    %c0_87 = arith.constant 0 : index
    %229 = vector.load %arg5[%c4, %c0_86, %c0_87] : memref<8x8x32xbf16, #tpu.memory_space<vmem>>, vector<1x8x32xbf16>
    %230 = vector.shape_cast %229 : vector<1x8x32xbf16> to vector<8x32xbf16>
    %231 = arith.truncf %228 : vector<16x8xf32> to vector<16x8xbf16>
    %cst_88 = arith.constant dense<0.000000e+00> : vector<16x32xf32>
    %232 = tpu.matmul %231, %230, %cst_88 {dimension_numbers = #tpu.dot_dimension_numbers<[1], [0], [0], [1], [0, 0, 1, 1], [], []>} : vector<16x8xbf16>, vector<8x32xbf16>, vector<16x32xf32> -> vector<16x32xf32>
    %233 = arith.addf %212, %232 : vector<16x32xf32>
    %234 = vector.extract_strided_slice %208 {offsets = [0, 8], sizes = [16, 8], strides = [1, 1]} : vector<16x32xbf16> to vector<16x8xbf16>
    %235 = vector.extract_strided_slice %210 {offsets = [8, 0], sizes = [8, 16], strides = [1, 1]} : vector<32x16xbf16> to vector<8x16xbf16>
    %cst_89 = arith.constant dense<0.000000e+00> : vector<16x16xf32>
    %236 = tpu.matmul %234, %235, %cst_89 {dimension_numbers = #tpu.dot_dimension_numbers<[1], [0], [0], [1], [0, 0, 1, 1], [], []>} : vector<16x8xbf16>, vector<8x16xbf16>, vector<16x16xf32> -> vector<16x16xf32>
    %cst_90 = arith.constant dense<0xFF800000> : vector<16xf32>
    %237 = vector.multi_reduction <maximumf>, %236, %cst_90 [1] : vector<16x16xf32> to vector<16xf32>
    %238 = vector.shape_cast %237 : vector<16xf32> to vector<16x1xf32>
    %239 = vector.broadcast %238 : vector<16x1xf32> to vector<16x16xf32>
    %240 = arith.subf %236, %239 : vector<16x16xf32>
    %241 = math.exp %240 : vector<16x16xf32>
    %cst_91 = arith.constant dense<0.000000e+00> : vector<16xf32>
    %242 = vector.multi_reduction <add>, %241, %cst_91 [1] : vector<16x16xf32> to vector<16xf32>
    %243 = vector.shape_cast %242 : vector<16xf32> to vector<16x1xf32>
    %244 = tpu.reciprocal %243 {approx = true} : vector<16x1xf32> -> vector<16x1xf32>
    %245 = vector.broadcast %244 : vector<16x1xf32> to vector<16x16xf32>
    %246 = arith.mulf %241, %245 : vector<16x16xf32>
    %247 = arith.truncf %246 : vector<16x16xf32> to vector<16x16xbf16>
    %248 = vector.extract_strided_slice %211 {offsets = [0, 8], sizes = [16, 8], strides = [1, 1]} : vector<16x32xbf16> to vector<16x8xbf16>
    %cst_92 = arith.constant dense<0.000000e+00> : vector<16x8xf32>
    %249 = tpu.matmul %247, %248, %cst_92 {dimension_numbers = #tpu.dot_dimension_numbers<[1], [0], [0], [1], [0, 0, 1, 1], [], []>} : vector<16x16xbf16>, vector<16x8xbf16>, vector<16x8xf32> -> vector<16x8xf32>
    %c5 = arith.constant 5 : index
    %c0_93 = arith.constant 0 : index
    %c0_94 = arith.constant 0 : index
    %250 = vector.load %arg5[%c5, %c0_93, %c0_94] : memref<8x8x32xbf16, #tpu.memory_space<vmem>>, vector<1x8x32xbf16>
    %251 = vector.shape_cast %250 : vector<1x8x32xbf16> to vector<8x32xbf16>
    %252 = arith.truncf %249 : vector<16x8xf32> to vector<16x8xbf16>
    %cst_95 = arith.constant dense<0.000000e+00> : vector<16x32xf32>
    %253 = tpu.matmul %252, %251, %cst_95 {dimension_numbers = #tpu.dot_dimension_numbers<[1], [0], [0], [1], [0, 0, 1, 1], [], []>} : vector<16x8xbf16>, vector<8x32xbf16>, vector<16x32xf32> -> vector<16x32xf32>
    %254 = arith.addf %233, %253 : vector<16x32xf32>
    %255 = vector.extract_strided_slice %208 {offsets = [0, 16], sizes = [16, 8], strides = [1, 1]} : vector<16x32xbf16> to vector<16x8xbf16>
    %256 = vector.extract_strided_slice %210 {offsets = [16, 0], sizes = [8, 16], strides = [1, 1]} : vector<32x16xbf16> to vector<8x16xbf16>
    %cst_96 = arith.constant dense<0.000000e+00> : vector<16x16xf32>
    %257 = tpu.matmul %255, %256, %cst_96 {dimension_numbers = #tpu.dot_dimension_numbers<[1], [0], [0], [1], [0, 0, 1, 1], [], []>} : vector<16x8xbf16>, vector<8x16xbf16>, vector<16x16xf32> -> vector<16x16xf32>
    %cst_97 = arith.constant dense<0xFF800000> : vector<16xf32>
    %258 = vector.multi_reduction <maximumf>, %257, %cst_97 [1] : vector<16x16xf32> to vector<16xf32>
    %259 = vector.shape_cast %258 : vector<16xf32> to vector<16x1xf32>
    %260 = vector.broadcast %259 : vector<16x1xf32> to vector<16x16xf32>
    %261 = arith.subf %257, %260 : vector<16x16xf32>
    %262 = math.exp %261 : vector<16x16xf32>
    %cst_98 = arith.constant dense<0.000000e+00> : vector<16xf32>
    %263 = vector.multi_reduction <add>, %262, %cst_98 [1] : vector<16x16xf32> to vector<16xf32>
    %264 = vector.shape_cast %263 : vector<16xf32> to vector<16x1xf32>
    %265 = tpu.reciprocal %264 {approx = true} : vector<16x1xf32> -> vector<16x1xf32>
    %266 = vector.broadcast %265 : vector<16x1xf32> to vector<16x16xf32>
    %267 = arith.mulf %262, %266 : vector<16x16xf32>
    %268 = arith.truncf %267 : vector<16x16xf32> to vector<16x16xbf16>
    %269 = vector.extract_strided_slice %211 {offsets = [0, 16], sizes = [16, 8], strides = [1, 1]} : vector<16x32xbf16> to vector<16x8xbf16>
    %cst_99 = arith.constant dense<0.000000e+00> : vector<16x8xf32>
    %270 = tpu.matmul %268, %269, %cst_99 {dimension_numbers = #tpu.dot_dimension_numbers<[1], [0], [0], [1], [0, 0, 1, 1], [], []>} : vector<16x16xbf16>, vector<16x8xbf16>, vector<16x8xf32> -> vector<16x8xf32>
    %c6 = arith.constant 6 : index
    %c0_100 = arith.constant 0 : index
    %c0_101 = arith.constant 0 : index
    %271 = vector.load %arg5[%c6, %c0_100, %c0_101] : memref<8x8x32xbf16, #tpu.memory_space<vmem>>, vector<1x8x32xbf16>
    %272 = vector.shape_cast %271 : vector<1x8x32xbf16> to vector<8x32xbf16>
    %273 = arith.truncf %270 : vector<16x8xf32> to vector<16x8xbf16>
    %cst_102 = arith.constant dense<0.000000e+00> : vector<16x32xf32>
    %274 = tpu.matmul %273, %272, %cst_102 {dimension_numbers = #tpu.dot_dimension_numbers<[1], [0], [0], [1], [0, 0, 1, 1], [], []>} : vector<16x8xbf16>, vector<8x32xbf16>, vector<16x32xf32> -> vector<16x32xf32>
    %275 = arith.addf %254, %274 : vector<16x32xf32>
    %276 = vector.extract_strided_slice %208 {offsets = [0, 24], sizes = [16, 8], strides = [1, 1]} : vector<16x32xbf16> to vector<16x8xbf16>
    %277 = vector.extract_strided_slice %210 {offsets = [24, 0], sizes = [8, 16], strides = [1, 1]} : vector<32x16xbf16> to vector<8x16xbf16>
    %cst_103 = arith.constant dense<0.000000e+00> : vector<16x16xf32>
    %278 = tpu.matmul %276, %277, %cst_103 {dimension_numbers = #tpu.dot_dimension_numbers<[1], [0], [0], [1], [0, 0, 1, 1], [], []>} : vector<16x8xbf16>, vector<8x16xbf16>, vector<16x16xf32> -> vector<16x16xf32>
    %cst_104 = arith.constant dense<0xFF800000> : vector<16xf32>
    %279 = vector.multi_reduction <maximumf>, %278, %cst_104 [1] : vector<16x16xf32> to vector<16xf32>
    %280 = vector.shape_cast %279 : vector<16xf32> to vector<16x1xf32>
    %281 = vector.broadcast %280 : vector<16x1xf32> to vector<16x16xf32>
    %282 = arith.subf %278, %281 : vector<16x16xf32>
    %283 = math.exp %282 : vector<16x16xf32>
    %cst_105 = arith.constant dense<0.000000e+00> : vector<16xf32>
    %284 = vector.multi_reduction <add>, %283, %cst_105 [1] : vector<16x16xf32> to vector<16xf32>
    %285 = vector.shape_cast %284 : vector<16xf32> to vector<16x1xf32>
    %286 = tpu.reciprocal %285 {approx = true} : vector<16x1xf32> -> vector<16x1xf32>
    %287 = vector.broadcast %286 : vector<16x1xf32> to vector<16x16xf32>
    %288 = arith.mulf %283, %287 : vector<16x16xf32>
    %289 = arith.truncf %288 : vector<16x16xf32> to vector<16x16xbf16>
    %290 = vector.extract_strided_slice %211 {offsets = [0, 24], sizes = [16, 8], strides = [1, 1]} : vector<16x32xbf16> to vector<16x8xbf16>
    %cst_106 = arith.constant dense<0.000000e+00> : vector<16x8xf32>
    %291 = tpu.matmul %289, %290, %cst_106 {dimension_numbers = #tpu.dot_dimension_numbers<[1], [0], [0], [1], [0, 0, 1, 1], [], []>} : vector<16x16xbf16>, vector<16x8xbf16>, vector<16x8xf32> -> vector<16x8xf32>
    %c7 = arith.constant 7 : index
    %c0_107 = arith.constant 0 : index
    %c0_108 = arith.constant 0 : index
    %292 = vector.load %arg5[%c7, %c0_107, %c0_108] : memref<8x8x32xbf16, #tpu.memory_space<vmem>>, vector<1x8x32xbf16>
    %293 = vector.shape_cast %292 : vector<1x8x32xbf16> to vector<8x32xbf16>
    %294 = arith.truncf %291 : vector<16x8xf32> to vector<16x8xbf16>
    %cst_109 = arith.constant dense<0.000000e+00> : vector<16x32xf32>
    %295 = tpu.matmul %294, %293, %cst_109 {dimension_numbers = #tpu.dot_dimension_numbers<[1], [0], [0], [1], [0, 0, 1, 1], [], []>} : vector<16x8xbf16>, vector<8x32xbf16>, vector<16x32xf32> -> vector<16x32xf32>
    %296 = arith.addf %275, %295 : vector<16x32xf32>
    %297 = vector.extract_strided_slice %193 {offsets = [3, 0], sizes = [1, 32], strides = [1, 1]} : vector<9x32xf32> to vector<1x32xf32>
    %298 = vector.broadcast %297 : vector<1x32xf32> to vector<16x32xf32>
    %299 = arith.addf %296, %298 : vector<16x32xf32>
    %300 = arith.addf %183, %299 : vector<16x32xf32>
    %cst_110 = arith.constant dense<0.000000e+00> : vector<16xf32>
    %301 = vector.multi_reduction <add>, %300, %cst_110 [1] : vector<16x32xf32> to vector<16xf32>
    %302 = vector.shape_cast %301 : vector<16xf32> to vector<16x1xf32>
    %cst_111 = arith.constant 3.200000e+01 : f32
    %303 = vector.broadcast %cst_111 : f32 to vector<16x1xf32>
    %304 = arith.divf %302, %303 : vector<16x1xf32>
    %305 = vector.broadcast %304 : vector<16x1xf32> to vector<16x32xf32>
    %306 = arith.subf %300, %305 : vector<16x32xf32>
    %307 = arith.mulf %306, %306 : vector<16x32xf32>
    %cst_112 = arith.constant dense<0.000000e+00> : vector<16xf32>
    %308 = vector.multi_reduction <add>, %307, %cst_112 [1] : vector<16x32xf32> to vector<16xf32>
    %309 = vector.shape_cast %308 : vector<16xf32> to vector<16x1xf32>
    %cst_113 = arith.constant 3.200000e+01 : f32
    %310 = vector.broadcast %cst_113 : f32 to vector<16x1xf32>
    %311 = arith.divf %309, %310 : vector<16x1xf32>
    %312 = vector.broadcast %304 : vector<16x1xf32> to vector<16x32xf32>
    %313 = arith.subf %300, %312 : vector<16x32xf32>
    %cst_114 = arith.constant 9.99999974E-6 : f32
    %314 = vector.broadcast %cst_114 : f32 to vector<16x1xf32>
    %315 = arith.addf %311, %314 : vector<16x1xf32>
    %316 = math.rsqrt %315 : vector<16x1xf32>
    %317 = vector.broadcast %316 : vector<16x1xf32> to vector<16x32xf32>
    %318 = arith.mulf %313, %317 : vector<16x32xf32>
    %319 = vector.extract_strided_slice %193 {offsets = [4, 0], sizes = [1, 32], strides = [1, 1]} : vector<9x32xf32> to vector<1x32xf32>
    %320 = vector.broadcast %319 : vector<1x32xf32> to vector<16x32xf32>
    %321 = arith.mulf %318, %320 : vector<16x32xf32>
    %322 = vector.extract_strided_slice %193 {offsets = [5, 0], sizes = [1, 32], strides = [1, 1]} : vector<9x32xf32> to vector<1x32xf32>
    %323 = vector.broadcast %322 : vector<1x32xf32> to vector<16x32xf32>
    %324 = arith.addf %321, %323 : vector<16x32xf32>
    %325 = arith.truncf %324 : vector<16x32xf32> to vector<16x32xbf16>
    %cst_115 = arith.constant dense<0.000000e+00> : vector<16x2048xf32>
    %326 = tpu.matmul %325, %187, %cst_115 {dimension_numbers = #tpu.dot_dimension_numbers<[1], [0], [0], [1], [0, 0, 1, 1], [], []>} : vector<16x32xbf16>, vector<32x2048xbf16>, vector<16x2048xf32> -> vector<16x2048xf32>
    %327 = vector.broadcast %191 : vector<1x2048xf32> to vector<16x2048xf32>
    %328 = arith.addf %326, %327 : vector<16x2048xf32>
    %cst_116 = arith.constant 0.000000e+00 : f32
    %329 = vector.broadcast %cst_116 : f32 to vector<16x2048xf32>
    %330 = arith.maximumf %328, %329 : vector<16x2048xf32>
    %331 = arith.truncf %330 : vector<16x2048xf32> to vector<16x2048xbf16>
    %cst_117 = arith.constant dense<0.000000e+00> : vector<16x32xf32>
    %332 = tpu.matmul %331, %189, %cst_117 {dimension_numbers = #tpu.dot_dimension_numbers<[1], [0], [0], [1], [0, 0, 1, 1], [], []>} : vector<16x2048xbf16>, vector<2048x32xbf16>, vector<16x32xf32> -> vector<16x32xf32>
    %333 = vector.extract_strided_slice %193 {offsets = [6, 0], sizes = [1, 32], strides = [1, 1]} : vector<9x32xf32> to vector<1x32xf32>
    %334 = vector.broadcast %333 : vector<1x32xf32> to vector<16x32xf32>
    %335 = arith.addf %332, %334 : vector<16x32xf32>
    %336 = arith.addf %324, %335 : vector<16x32xf32>
    %cst_118 = arith.constant dense<0.000000e+00> : vector<16xf32>
    %337 = vector.multi_reduction <add>, %336, %cst_118 [1] : vector<16x32xf32> to vector<16xf32>
    %338 = vector.shape_cast %337 : vector<16xf32> to vector<16x1xf32>
    %cst_119 = arith.constant 3.200000e+01 : f32
    %339 = vector.broadcast %cst_119 : f32 to vector<16x1xf32>
    %340 = arith.divf %338, %339 : vector<16x1xf32>
    %341 = vector.broadcast %340 : vector<16x1xf32> to vector<16x32xf32>
    %342 = arith.subf %336, %341 : vector<16x32xf32>
    %343 = arith.mulf %342, %342 : vector<16x32xf32>
    %cst_120 = arith.constant dense<0.000000e+00> : vector<16xf32>
    %344 = vector.multi_reduction <add>, %343, %cst_120 [1] : vector<16x32xf32> to vector<16xf32>
    %345 = vector.shape_cast %344 : vector<16xf32> to vector<16x1xf32>
    %cst_121 = arith.constant 3.200000e+01 : f32
    %346 = vector.broadcast %cst_121 : f32 to vector<16x1xf32>
    %347 = arith.divf %345, %346 : vector<16x1xf32>
    %348 = vector.broadcast %340 : vector<16x1xf32> to vector<16x32xf32>
    %349 = arith.subf %336, %348 : vector<16x32xf32>
    %cst_122 = arith.constant 9.99999974E-6 : f32
    %350 = vector.broadcast %cst_122 : f32 to vector<16x1xf32>
    %351 = arith.addf %347, %350 : vector<16x1xf32>
    %352 = math.rsqrt %351 : vector<16x1xf32>
    %353 = vector.broadcast %352 : vector<16x1xf32> to vector<16x32xf32>
    %354 = arith.mulf %349, %353 : vector<16x32xf32>
    %355 = vector.extract_strided_slice %193 {offsets = [7, 0], sizes = [1, 32], strides = [1, 1]} : vector<9x32xf32> to vector<1x32xf32>
    %356 = vector.broadcast %355 : vector<1x32xf32> to vector<16x32xf32>
    %357 = arith.mulf %354, %356 : vector<16x32xf32>
    %358 = vector.extract_strided_slice %193 {offsets = [8, 0], sizes = [1, 32], strides = [1, 1]} : vector<9x32xf32> to vector<1x32xf32>
    %359 = vector.broadcast %358 : vector<1x32xf32> to vector<16x32xf32>
    %360 = arith.addf %357, %359 : vector<16x32xf32>
    %361 = arith.truncf %360 : vector<16x32xf32> to vector<16x32xbf16>
    %c0_123 = arith.constant 0 : index
    %c0_124 = arith.constant 0 : index
    %362 = vector.load %arg10[%c0_123, %c0_124] : memref<32x128xbf16, #tpu.memory_space<vmem>>, vector<32x128xbf16>
    %cst_125 = arith.constant dense<0.000000e+00> : vector<16x128xf32>
    %363 = tpu.matmul %361, %362, %cst_125 {dimension_numbers = #tpu.dot_dimension_numbers<[1], [0], [0], [1], [0, 0, 1, 1], [], []>} : vector<16x32xbf16>, vector<32x128xbf16>, vector<16x128xf32> -> vector<16x128xf32>
    %c0_126 = arith.constant 0 : index
    %c0_127 = arith.constant 0 : index
    %364 = vector.load %arg11[%c0_126, %c0_127] : memref<1x128xf32, #tpu.memory_space<vmem>>, vector<1x128xf32>
    %365 = vector.broadcast %364 : vector<1x128xf32> to vector<16x128xf32>
    %366 = arith.addf %363, %365 : vector<16x128xf32>
    %c0_128 = arith.constant 0 : index
    %c0_129 = arith.constant 0 : index
    %c0_130 = arith.constant 0 : index
    %367 = vector.load %arg12[%c0_128, %c0_129, %c0_130] : memref<1x16x128xf32, #tpu.memory_space<vmem>>, vector<1x16x128xf32>
    %368 = vector.shape_cast %367 : vector<1x16x128xf32> to vector<16x128xf32>
    %369 = vector.shape_cast %366 : vector<16x128xf32> to vector<1x16x128xf32>
    tpu.vector_store %arg12[%c0_128, %c0_129, %c0_130], %369 {strides = array<i32>} : memref<1x16x128xf32, #tpu.memory_space<vmem>>, vector<1x16x128xf32>,
    return
  }
  func.func @transform_0(%arg0: i32) -> (i32, i32, i32) {
    %c0_i32 = arith.constant 0 : i32
    %c0_i32_0 = arith.constant 0 : i32
    %c0_i32_1 = arith.constant 0 : i32
    return %arg0, %c0_i32, %c0_i32_0 : i32, i32, i32
  }
  func.func @transform_1(%arg0: i32) -> (i32, i32) {
    %c0_i32 = arith.constant 0 : i32
    %c0_i32_0 = arith.constant 0 : i32
    %c0_i32_1 = arith.constant 0 : i32
    return %c0_i32, %c0_i32_0 : i32, i32
  }
  func.func @transform_2(%arg0: i32) -> (i32, i32) {
    %c0_i32 = arith.constant 0 : i32
    %c0_i32_0 = arith.constant 0 : i32
    %c0_i32_1 = arith.constant 0 : i32
    return %c0_i32, %c0_i32_0 : i32, i32
  }
  func.func @transform_3(%arg0: i32) -> (i32, i32, i32) {
    %c0_i32 = arith.constant 0 : i32
    %c0_i32_0 = arith.constant 0 : i32
    %c0_i32_1 = arith.constant 0 : i32
    %c0_i32_2 = arith.constant 0 : i32
    return %c0_i32, %c0_i32_0, %c0_i32_1 : i32, i32, i32
  }
  func.func @transform_4(%arg0: i32) -> (i32, i32, i32) {
    %c0_i32 = arith.constant 0 : i32
    %c0_i32_0 = arith.constant 0 : i32
    %c0_i32_1 = arith.constant 0 : i32
    %c0_i32_2 = arith.constant 0 : i32
    return %c0_i32, %c0_i32_0, %c0_i32_1 : i32, i32, i32
  }
  func.func @transform_5(%arg0: i32) -> (i32, i32, i32) {
    %c0_i32 = arith.constant 0 : i32
    %c0_i32_0 = arith.constant 0 : i32
    %c0_i32_1 = arith.constant 0 : i32
    %c0_i32_2 = arith.constant 0 : i32
    return %c0_i32, %c0_i32_0, %c0_i32_1 : i32, i32, i32
  }
  func.func @transform_6(%arg0: i32) -> (i32, i32, i32) {
    %c0_i32 = arith.constant 0 : i32
    %c0_i32_0 = arith.constant 0 : i32
    %c0_i32_1 = arith.constant 0 : i32
    %c0_i32_2 = arith.constant 0 : i32
    return %c0_i32, %c0_i32_0, %c0_i32_1 : i32, i32, i32
  }
  func.func @transform_7(%arg0: i32) -> (i32, i32, i32) {
    %c0_i32 = arith.constant 0 : i32
    %c0_i32_0 = arith.constant 0 : i32
    %c0_i32_1 = arith.constant 0 : i32
    %c0_i32_2 = arith.constant 0 : i32
    return %c0_i32, %c0_i32_0, %c0_i32_1 : i32, i32, i32
  }
  func.func @transform_8(%arg0: i32) -> (i32, i32, i32) {
    %c0_i32 = arith.constant 0 : i32
    %c0_i32_0 = arith.constant 0 : i32
    %c0_i32_1 = arith.constant 0 : i32
    %c0_i32_2 = arith.constant 0 : i32
    return %c0_i32, %c0_i32_0, %c0_i32_1 : i32, i32, i32
  }
  func.func @transform_9(%arg0: i32) -> (i32, i32) {
    %c0_i32 = arith.constant 0 : i32
    %c0_i32_0 = arith.constant 0 : i32
    %c0_i32_1 = arith.constant 0 : i32
    return %c0_i32, %c0_i32_0 : i32, i32
  }
  func.func @transform_10(%arg0: i32) -> (i32, i32) {
    %c0_i32 = arith.constant 0 : i32
    %c0_i32_0 = arith.constant 0 : i32
    %c0_i32_1 = arith.constant 0 : i32
    return %c0_i32, %c0_i32_0 : i32, i32
  }
  func.func @transform_11(%arg0: i32) -> (i32, i32, i32) {
    %c0_i32 = arith.constant 0 : i32
    %c0_i32_0 = arith.constant 0 : i32
    %c0_i32_1 = arith.constant 0 : i32
    return %arg0, %c0_i32, %c0_i32_0 : i32, i32, i32
  }
}

</mosaic_0001>

<bundles_post_ra>
// kernel: vit_autoencoder_forward.1
= control target key start
LH: loop header
LB: loop body
LE: loop exit
PB: predicated region body
PF: predicated region fallthrough
CT: control target
= control target key end

     0   :  { %s8202_s17 = smov 0   ;;  %s9818_s0 = inlined_call_operand.vmem [shape: f32[2,16,64], index: 0, kind: input, shape index: {}]   ;;  %s9819_s1 = inlined_call_operand.vmem [shape: bf16[64,32], index: 1, kind: input, shape index: {}]   ;;  %s9820_s2 = inlined_call_operand.vmem [shape: f32[16,32], index: 2, kind: input, shape index: {}]   ;;  %s9821_s3 = inlined_call_operand.vmem [shape: bf16[2,32,96], index: 3, kind: input, shape index: {}]   ;;  %s9822_s4 = inlined_call_operand.vmem [shape: bf16[8,8,32], index: 4, kind: input, shape index: {}]   ;;  %s9823_s5 = inlined_call_operand.vmem [shape: bf16[2,32,2048], index: 5, kind: input, shape index: {}]   ;;  %s9824_s6 = inlined_call_operand.vmem [shape: f32[2,1,2048], index: 6, kind: input, shape index: {}]   ;;  %s9825_s7 = inlined_call_operand.vmem [shape: bf16[2,2048,32], index: 7, kind: input, shape index: {}]   ;;  %s9826_s8 = inlined_call_operand.vmem [shape: f32[2,9,32], index: 8, kind: input, shape index: {}]   ;;  %s9827_s9 = inlined_call_operand.vmem [shape: bf16[32,128], index: 9, kind: input, shape index: {}]   ;;  %s9828_s10 = inlined_call_operand.vmem [shape: f32[1,128], index: 10, kind: input, shape index: {}]   ;;  %s9829_s11 = inlined_call_operand.vmem [shape: f32[2,16,128], index: 11, kind: output, shape index: {}]  }
   0x1 LB: > { %s6466_s18 = sadd.s32 4294967295, %s8128_s17   ;;  %p6470_p0 = scmp.ge.s32.totalorder %s8128_s17, 1  ;;  %s8128_s17 = sphi %s8202_s17, %s21_s17  }
   0x2   : > { %p337_p1 = scmp.lt.s32.totalorder %s8128_s17, 3 }
   0x4   : > { %p338_p2 = pnand %p6470_p0, %p337_p1 }
   0x5   : > { %v7773_v0 = vld [vmem:[%s9819_s1] sm:$0xff] (!%p338_p2)   ;;  %v8130_v1 = vmov (!%p338_p2), 0.0   ;;  %v7774_v2 = vld [vmem:[%s9819_s1 + $0x8] sm:$0xff] (!%p338_p2)   ;;  %vm8131_vm0 = vmmov (!%p338_p2), 0   ;;  %p377_p3 = scmp.lt.s32.totalorder (!%p338_p2), %s6466_s18, 1  ;;  %v7775_v3 = vld [vmem:[%s9819_s1 + $0x10] sm:$0xff] (!%p338_p2)   ;;  %v824_v10 = vlaneseq (!%p338_p2) }
   0x6   : > { %341 = sbr.rel (%p338_p2) target bundleno = 8279 (0x2057), region = 64  ;;  %7573 = vmatprep.subr.bf16.mxu0 (!%p338_p2), %v8130_v1  ;;  %7585 = vmatprep.subr.bf16.mxu1 (!%p338_p2), %v8130_v1  ;;  %v7776_v4 = vld [vmem:[%s9819_s1 + $0x18] sm:$0xff] (!%p338_p2)   ;;  %vm425_vm1 = vcmask (!%p338_p2), 523264   ;;  %v7777_v8 = vld [vmem:[%s9821_s3] sm:$0xff] (!%p338_p2)   ;;  %v7778_v9 = vld [vmem:[%s9821_s3 + $0x8] sm:$0xff] (!%p338_p2)   ;;  %s8132_s20 = smov (!%p338_p2), 32  }
   0x7   : > { %7574 = vmatpush3.bf16.msra.mxu0 (!%p338_p2), %v7773_v0  ;;  %7581 = vmatprep.mubr.msk.bf16.mxu0 (!%p338_p2), %vm8131_vm0, %v8130_v1  ;;  %v8253_v11 = vld [vmem:[%s9826_s8] sm:$0xff] (!%p338_p2)  ;;  %v8255_v12 = vshrl.u32 (!%p338_p2), %v824_v10, 7  ;;  %v400_v17 = vld [vmem:[%s9820_s2 + $0x8] sm:$0xff] (!%p338_p2)  ;;  %vm779_vm2 = vcmask (!%p338_p2), 261120   ;;  %s8133_s26 = smov (!%p338_p2), 96   ;;  %s8134_s27 = smov (!%p338_p2), 120  }
   0x8   : > { %7575 = vmatprep.subr.bf16.mxu0 (!%p338_p2), %v8130_v1  ;;  %7589 = vmatprep.mubr.msk.bf16.mxu1 (!%p338_p2), %vm8131_vm0, %v8130_v1  ;;  %v399_v15 = vld [vmem:[%s9820_s2] sm:$0xff] (!%p338_p2)  ;;  %vm898_vm3 = vcmask (!%p338_p2), 1043456   ;;  %vm894_vm4 = vcmask (!%p338_p2), 64512   ;;  %vm943_vm5 = vcmask (!%p338_p2), 130048   ;;  %s8136_s29 = smov (!%p338_p2), 112   ;;  %s8137_s30 = smov (!%p338_p2), 56  }
   0x9   : > { %7586 = vmatpush3.bf16.msra.mxu1 (!%p338_p2), %v7777_v8  ;;  %v8258_v13 = vsub.s32 (!%p338_p2), 1, %v8255_v12  ;;  %v8279_v24 = vsub.s32 (!%p338_p2), 0, %v8255_v12  ;;  %v8313_v57 = vsub.s32 (!%p338_p2), 2, %v8255_v12  ;;  %s9832_s16 = smov (!%p338_p2), 104   ;;  %s8139_s19 = smov (!%p338_p2), 48  }
   0xa   : > { %7587 = vmatprep.subr.bf16.mxu1 (!%p338_p2), %v8130_v1  ;;  %s9831_s23 = smov (!%p338_p2), 40  }
   0xb   : > { %7576 = vmatpush3.bf16.msra.mxu0 (!%p338_p2), %v7774_v2  ;;  %v833_v14 = vrot.slane (!%p338_p2), %v8253_v11, %v8258_v13  ;;  %v827_v26 = vrot.slane (!%p338_p2), %v8253_v11, %v8279_v24  ;;  %v843_v58 = vrot.slane (!%p338_p2), %v8253_v11, %v8313_v57 }
   0xc   : > { %7577 = vmatprep.subr.bf16.mxu0 (!%p338_p2), %v8130_v1 }
   0xd   : > { %s9837_s18 = smov (!%p377_p3, %s6466_s18), 1  ;;  %7588 = vmatpush3.bf16.msra.mxu1 %v7778_v9  ;;  %835 = vrot.lane.b32.xlu0 %v833_v14, %s8132_s20 }
   0xe   : > { %s9830_s25 = sshll.u32 %s9837_s18, 4  ;;  %7593 = vmatprep.subr.bf16.mxu1 %v8130_v1 }
   0xf   : > { %s381_s28 = scalar_lea.vmem %s9818_s0, %s9830_s25  ;;  %7578 = vmatpush3.bf16.msra.mxu0 %v7775_v3 }
  0x10   : > { %v388_v5 = vld [vmem:[%s381_s28] sm:$0xff]  ;;  %v389_v6 = vld [vmem:[%s381_s28 + $0x8] sm:$0xff]  ;;  %7579 = vmatprep.subr.bf16.mxu0 %v8130_v1  ;;  %s8135_s28 = smov 64  }
  0x11   : > { %v390_v7 = vpack.c.bf16 %v389_v6, %v388_v5 }
  0x13   : > { %7580 = vmatpush3.bf16.msra.mxu0 %v7776_v4 }
  0x14   : > { %7599 = vmatprep.subr.bf16.mxu0 %v8130_v1 }
  0x16   : > { %7582 = vmatmul.mubr.msk.bf16.vlgmr.msra.gmra.mrb[0].mxu0 %vm425_vm1, %v390_v7 }
  0x17   : > { %7601 = vmatprep.mubr.msk.bf16.mxu0 %vm8131_vm0, %v8130_v1 }
  0x7f   : > { %v836_v25 = vpop.permute.xlu0 %835 }
  0xe9   : > { %v463_v16 = vpop.f32.mrb[0].mxu0 }
  0xea   : > { %v7583_v18 = vpop.f32.mrb[1].mxu0  ;;  %v8269_v20 = vadd.f32 %v463_v16, %v399_v15 }
  0xeb   : > { %v466_v19 = vpop.f32.mrb[2].mxu0 }
  0xec   : > { %v8271_v21 = vadd.f32 %v466_v19, %v400_v17  ;;  %v7584_v22 = vpop.f32.mrb[3].mxu0 }
  0xee   : > { %v766_v23 = vpack.c.bf16 %v8271_v21, %v8269_v20 }
  0xf0   : > { %7590 = vmatmul.mubr.msk.bf16.vlgmr.msra.gmra.mrb[0].mxu1 %vm779_vm2, %v766_v23 }
  0xf1   : > { %7595 = vmatprep.mubr.msk.bf16.mxu1 %vm8131_vm0, %v8130_v1 }
 0x1c3   : > { %v8283_v27 = vpop.f32.mrb[0].mxu1 }
 0x1c4   : > { %v838_v28 = vadd.f32 %v836_v25, %v8283_v27  ;;  %v7591_v29 = vpop.f32.mrb[1].mxu1  ;;  %v828_v31 = vadd.f32 %v827_v26, %v8283_v27 }
 0x1c5   : > { %v8286_v30 = vpop.f32.mrb[2].mxu1 }
 0x1c6   : > { %v829_v32 = vadd.f32 %v827_v26, %v8286_v30  ;;  %853 = vrot.lane.b32.xlu0 %v838_v28, %s8133_s26  ;;  %v7592_v33 = vpop.f32.mrb[3].mxu1  ;;  %v839_v34 = vadd.f32 %v836_v25, %v8286_v30 }
 0x1c8   : > { %v8292_v35 = vpack.c.bf16 %v829_v32, %v828_v31  ;;  %855 = vrot.lane.b32.xlu1 %v839_v34, %s8133_s26 }
 0x1cc   : > { %1018 = vrot.lane.b32.xlu1 %v8292_v35, %s8134_s27 }
 0x238   : > { %v854_v36 = vpop.permute.xlu0 %853 }
 0x239   : > { %859 = vxpose.xlu0.b32.start [1/2] (short) (narrow) %v854_v36, 32 }
 0x23a   : > { %v856_v37 = vpop.permute.xlu1 %855 }
 0x23d   : > { %860 = vxpose.xlu0.b32.end [2/2] (short) (narrow) %v856_v37, 32 }
 0x23e   : > { %v1019_v44 = vpop.permute.xlu1 %1018 }
 0x2b9   : > { %v875_v38 = vpop.trf.xlu0 }
 0x2bd   : > { %v876_v39 = vpop.trf.xlu0 }
 0x2be   : > { %v891_v40 = vpack.c.bf16 %v876_v39, %v875_v38 }
 0x2c0   : > { %v900_v41 = vsel %vm898_vm3, %v891_v40, 0  ;;  %v1021_v42 = vrot.slane %v891_v40, 4 }
 0x2c1   : > { %7594 = vmatpush3.bf16.msra.mxu1 %v900_v41  ;;  %v8318_v59 = vpop.trf.xlu0 }
 0x2c2   : > { %7605 = vmatprep.subr.bf16.mxu1 %v8130_v1  ;;  %v1026_v43 = vsel %vm898_vm3, %v1021_v42, 0 }
 0x2c4   : > { %7596 = vmatmul.mubr.msk.bf16.vlgmr.msra.gmra.mrb[4].mxu1 %vm894_vm4, %v8292_v35 }
 0x2c5   : > { %7606 = vmatpush3.bf16.msra.mxu1 %v1026_v43  ;;  %7607 = vmatprep.mubr.msk.bf16.mxu1 %vm8131_vm0, %v8130_v1  ;;  %v8320_v60 = vpop.trf.xlu0 }
 0x2c6   : > { %7617 = vmatprep.subr.bf16.mxu1 %v8130_v1 }
 0x2cc   : > { %7608 = vmatmul.mubr.msk.bf16.vlgmr.msra.gmra.mrb[8].mxu1 %vm894_vm4, %v1019_v44 }
 0x2cd   : > { %7619 = vmatprep.mubr.msk.bf16.mxu1 %vm8131_vm0, %v8130_v1 }
 0x397   : > { %v936_v45 = vpop.f32.mrb[4].mxu1 }
 0x398   : > { %v7597_v46 = vpop.f32.mrb[5].mxu1  ;;  %v944_v47 = vsel %vm943_vm5, %v936_v45, -inf }
 0x399   : > { %945 = vmax.xlane.f32.xlu1 %v944_v47  ;;  %v939_v48 = vpop.f32.mrb[6].mxu1  ;;  %v6487_v47 = vld [vmem:[%s9822_s4 + $0x4] sm:$0xf] }
 0x39a   : > { %v7598_v49 = vpop.f32.mrb[7].mxu1  ;;  %v947_v50 = vsel %vm943_vm5, %v939_v48, -inf }
 0x39b   : > { %948 = vmax.xlane.f32.xlu0 %v947_v50 }
 0x39f   : > { %v1062_v51 = vpop.f32.mrb[8].mxu1 }
 0x3a0   : > { %v7609_v52 = vpop.f32.mrb[9].mxu1  ;;  %v1069_v53 = vsel %vm943_vm5, %v1062_v51, -inf }
 0x3a1   : > { %1070 = vmax.xlane.f32.xlu1 %v1069_v53  ;;  %v1065_v54 = vpop.f32.mrb[10].mxu1 }
 0x3a2   : > { %v7610_v55 = vpop.f32.mrb[11].mxu1  ;;  %v1072_v56 = vsel %vm943_vm5, %v1065_v54, -inf }
 0x3a3   : > { %v8359_v55 = vpack.c.bf16 %v8320_v60, %v8318_v59 }
 0x3a5   : > { %1073 = vmax.xlane.f32.xlu1 %v1072_v56 }
 0x3b6   : > { %845 = vrot.lane.b32.xlu1 %v843_v58, %s8135_s28 }
 0x426   : > { %v946_v61 = vpop.xlane.xlu1 %945 }
 0x427   : > { %v950_v62 = vsub.f32 %v936_v45, %v946_v61  ;;  %v1015_v45 = vld [vmem:[%s9822_s4] sm:$0xf] }
 0x428   : > { %v949_v63 = vpop.xlane.xlu0 %948  ;;  %v1193_v46 = vsel %vm898_vm3, %v1015_v45, 0 }
 0x429   : > { %v952_v0 = vmul.f32 1.442695, %v950_v62  ;;  %v951_v2 = vsub.f32 %v939_v48, %v949_v63  ;;  %v1146_v48 = vsel %vm898_vm3, %v6487_v47, 0  ;;  %v1242_v63 = vsel %vm898_vm3, %v8359_v55, 0 }
 0x42a   : > { %7618 = vmatpush3.bf16.msra.mxu1 %v1146_v48 }
 0x42b   : > { %8039 = vpow2.f32 %v952_v0  ;;  %v954_v3 = vmul.f32 1.442695, %v951_v2  ;;  %7629 = vmatprep.subr.bf16.mxu1 %v8130_v1 }
 0x42d   : > { %8041 = vpow2.f32 %v954_v3 }
 0x42e   : > { %v1071_v4 = vpop.xlane.xlu1 %1070 }
 0x42f   : > { %v1075_v5 = vsub.f32 %v1062_v51, %v1071_v4 }
 0x431   : > { %v1077_v6 = vmul.f32 1.442695, %v1075_v5 }
 0x432   : > { %v1074_v7 = vpop.xlane.xlu1 %1073 }
 0x433   : > { %8043 = vpow2.f32 %v1077_v6  ;;  %v1076_v8 = vsub.f32 %v1065_v54, %v1074_v7 }
 0x435   : > { %v8040_v9 = vpop.eup %8039  ;;  %v1079_v10 = vmul.f32 1.442695, %v1076_v8 }
 0x436   : > { %v846_v14 = vpop.permute.xlu1 %845  ;;  %v956_v15 = vsel %vm943_vm5, %v8040_v9, 0.0 }
 0x437   : > { %v8042_v16 = vpop.eup %8041  ;;  %8045 = vpow2.f32 %v1079_v10  ;;  %v848_v17 = vadd.f32 %v846_v14, %v8283_v27  ;;  %v849_v18 = vadd.f32 %v846_v14, %v8286_v30  ;;  %957 = vadd.xlane.f32.xlu1 %v956_v15 }
 0x438   : > { %v959_v19 = vsel %vm943_vm5, %v8042_v16, 0.0 }
 0x439   : > { %v8326_v22 = vpack.c.bf16 %v849_v18, %v848_v17  ;;  %960 = vadd.xlane.f32.xlu0 %v959_v19 }
 0x43d   : > { %v8044_v23 = vpop.eup %8043 }
 0x43e   : > { %v1081_v25 = vsel %vm943_vm5, %v8044_v23, 0.0 }
 0x43f   : > { %1082 = vadd.xlane.f32.xlu0 %v1081_v25 }
 0x441   : > { %v8046_v26 = vpop.eup %8045 }
 0x442   : > { %v1084_v28 = vsel %vm943_vm5, %v8046_v26, 0.0 }
 0x443   : > { %1085 = vadd.xlane.f32.xlu0 %v1084_v28 }
 0x448   : > { %968 = vrot.lane.b32.xlu1 %v8326_v22, %s8135_s28 }
 0x44c   : > { %1236 = vrot.lane.b32.xlu1 %v8292_v35, %s8136_s29 }
 0x459   : > { %1092 = vrot.lane.b32.xlu0 %v8326_v22, %s8137_s30 }
 0x4c4   : > { %v958_v27 = vpop.xlane.xlu1 %957 }
 0x4c5   : > { %8047 = vrcp.f32 %v958_v27 }
 0x4c6   : > { %v961_v29 = vpop.xlane.xlu0 %960 }
 0x4c7   : > { %8049 = vrcp.f32 %v961_v29 }
 0x4c8   : > { %v969_v30 = vpop.permute.xlu1 %968 }
 0x4c9   : > { %7600 = vmatpush3.bf16.msra.mxu0 %v969_v30 }
 0x4ca   : > { %7611 = vmatprep.subr.bf16.mxu0 %v8130_v1 }
 0x4cc   : > { %v1083_v31 = vpop.xlane.xlu0 %1082  ;;  %v1237_v0 = vpop.permute.xlu1 %1236 }
 0x4cd   : > { %8051 = vrcp.f32 %v1083_v31 }
 0x4cf   : > { %v8048_v32 = vpop.eup %8047 }
 0x4d0   : > { %v1086_v33 = vpop.xlane.xlu0 %1085  ;;  %v964_v36 = vmul.f32 %v8048_v32, %v8040_v9 }
 0x4d1   : > { %v8050_v34 = vpop.eup %8049  ;;  %8053 = vrcp.f32 %v1086_v33 }
 0x4d2   : > { %v965_v37 = vmul.f32 %v8050_v34, %v8042_v16 }
 0x4d4   : > { %v1093_v38 = vpop.permute.xlu0 %1092  ;;  %v966_v39 = vpack.c.bf16 %v965_v37, %v964_v36 }
 0x4d6   : > { %7602 = vmatmul.mubr.msk.bf16.vlgmr.msra.gmra.mrb[4].mxu0 %vm943_vm5, %v966_v39  ;;  %v1410_v39 = vrot.slane %v8359_v55, 4 }
 0x4d7   : > { %7612 = vmatpush3.bf16.msra.mxu0 %v1093_v38  ;;  %7613 = vmatprep.mubr.msk.bf16.mxu0 %vm8131_vm0, %v8130_v1  ;;  %v8052_v40 = vpop.eup %8051 }
 0x4d8   : > { %7623 = vmatprep.subr.bf16.mxu0 %v8130_v1  ;;  %v1089_v42 = vmul.f32 %v8052_v40, %v8044_v23 }
 0x4db   : > { %v8054_v41 = vpop.eup %8053 }
 0x4dc   : > { %v1090_v43 = vmul.f32 %v8054_v41, %v8046_v26 }
 0x4de   : > { %v1091_v44 = vpack.c.bf16 %v1090_v43, %v1089_v42 }
 0x4e0   : > { %7614 = vmatmul.mubr.msk.bf16.vlgmr.msra.gmra.mrb[8].mxu0 %vm943_vm5, %v1091_v44  ;;  %v6492_v44 = vld [vmem:[%s9822_s4 + $0x8] sm:$0xf] }
 0x4e1   : > { %7625 = vmatprep.mubr.msk.bf16.mxu0 %vm8131_vm0, %v8130_v1  ;;  %7624 = vmatpush3.bf16.msra.mxu0 %v1193_v46  ;;  %v1362_v45 = vsel %vm898_vm3, %v6492_v44, 0 }
 0x4e2   : > { %7635 = vmatprep.subr.bf16.mxu0 %v8130_v1 }
 0x5a9   : > { %v1008_v49 = vpop.f32.mrb[4].mxu0 }
 0x5aa   : > { %v7603_v50 = vpop.f32.mrb[5].mxu0 }
 0x5ab   : > { %v1011_v51 = vpop.f32.mrb[6].mxu0 }
 0x5ac   : > { %v1016_v52 = vpack.c.bf16 %v1011_v51, %v1008_v49  ;;  %v7604_v53 = vpop.f32.mrb[7].mxu0 }
 0x5ae   : > { %7626 = vmatmul.mubr.msk.bf16.vlgmr.msra.gmra.mrb[12].mxu0 %vm894_vm4, %v1016_v52 }
 0x5af   : > { %7637 = vmatprep.mubr.msk.bf16.mxu0 %vm8131_vm0, %v8130_v1 }
 0x5b3   : > { %v1132_v54 = vpop.f32.mrb[8].mxu0 }
 0x5b4   : > { %v7615_v56 = vpop.f32.mrb[9].mxu0 }
 0x5b5   : > { %v1135_v58 = vpop.f32.mrb[10].mxu0 }
 0x5b6   : > { %v1141_v61 = vpack.c.bf16 %v1135_v58, %v1132_v54  ;;  %v7616_v62 = vpop.f32.mrb[11].mxu0 }
 0x5b8   : > { %7620 = vmatmul.mubr.msk.bf16.vlgmr.msra.gmra.mrb[12].mxu1 %vm894_vm4, %v1141_v61 }
 0x5b9   : > { %7630 = vmatpush3.bf16.msra.mxu1 %v1242_v63  ;;  %7631 = vmatprep.mubr.msk.bf16.mxu1 %vm8131_vm0, %v8130_v1 }
 0x5ba   : > { %7641 = vmatprep.subr.bf16.mxu1 %v8130_v1 }
 0x5c0   : > { %7632 = vmatmul.mubr.msk.bf16.vlgmr.msra.gmra.mrb[16].mxu1 %vm894_vm4, %v1237_v0 }
 0x5c1   : > { %7643 = vmatprep.mubr.msk.bf16.mxu1 %vm8131_vm0, %v8130_v1  ;;  %7642 = vmatpush3.bf16.msra.mxu1 %v1362_v45 }
 0x5c2   : > { %7653 = vmatprep.subr.bf16.mxu1 %v8130_v1 }
 0x681   : > { %v1229_v59 = vpop.f32.mrb[12].mxu0 }
 0x682   : > { %v7627_v60 = vpop.f32.mrb[13].mxu0 }
 0x683   : > { %v1232_v2 = vpop.f32.mrb[14].mxu0 }
 0x684   : > { %v7628_v3 = vpop.f32.mrb[15].mxu0 }
 0x68b   : > { %v1182_v4 = vpop.f32.mrb[12].mxu1 }
 0x68c   : > { %v8370_v5 = vadd.f32 %v1229_v59, %v1182_v4  ;;  %v7621_v6 = vpop.f32.mrb[13].mxu1 }
 0x68d   : > { %v1185_v7 = vpop.f32.mrb[14].mxu1 }
 0x68e   : > { %v8372_v8 = vadd.f32 %v1232_v2, %v1185_v7  ;;  %v7622_v9 = vpop.f32.mrb[15].mxu1 }
 0x693   : > { %v1278_v10 = vpop.f32.mrb[16].mxu1 }
 0x694   : > { %v7633_v14 = vpop.f32.mrb[17].mxu1  ;;  %v1285_v15 = vsel %vm943_vm5, %v1278_v10, -inf }
 0x695   : > { %1286 = vmax.xlane.f32.xlu1 %v1285_v15  ;;  %v1281_v16 = vpop.f32.mrb[18].mxu1 }
 0x696   : > { %v7634_v17 = vpop.f32.mrb[19].mxu1  ;;  %v1288_v18 = vsel %vm943_vm5, %v1281_v16, -inf }
 0x697   : > { %1289 = vmax.xlane.f32.xlu0 %v1288_v18 }
 0x722   : > { %v1287_v19 = vpop.xlane.xlu1 %1286 }
 0x723   : > { %v1291_v23 = vsub.f32 %v1278_v10, %v1287_v19 }
 0x724   : > { %v1290_v25 = vpop.xlane.xlu0 %1289 }
 0x725   : > { %v1293_v26 = vmul.f32 1.442695, %v1291_v23  ;;  %v1292_v28 = vsub.f32 %v1281_v16, %v1290_v25 }
 0x727   : > { %8055 = vpow2.f32 %v1293_v26  ;;  %v1295_v27 = vmul.f32 1.442695, %v1292_v28 }
 0x729   : > { %8057 = vpow2.f32 %v1295_v27 }
 0x731   : > { %v8056_v29 = vpop.eup %8055 }
 0x732   : > { %v1297_v30 = vsel %vm943_vm5, %v8056_v29, 0.0 }
 0x733   : > { %v8058_v31 = vpop.eup %8057  ;;  %1298 = vadd.xlane.f32.xlu0 %v1297_v30 }
 0x734   : > { %v1300_v32 = vsel %vm943_vm5, %v8058_v31, 0.0 }
 0x735   : > { %1301 = vadd.xlane.f32.xlu1 %v1300_v32  ;;  %v8415_v32 = vsub.s32 3, %v8255_v12 }
 0x746   : > { %1407 = vrot.lane.b32.xlu1 %v8292_v35, %s9832_s16  ;;  %v1415_v35 = vsel %vm898_vm3, %v1410_v39, 0  ;;  %s9834_s16 = smov 40  }
 0x749   : > { %1308 = vrot.lane.b32.xlu0 %v8326_v22, %s8139_s19 }
 0x7c0   : > { %v1299_v33 = vpop.xlane.xlu0 %1298 }
 0x7c1   : > { %8059 = vrcp.f32 %v1299_v33  ;;  %v1583_v33 = vrot.slane %v8253_v11, %v8415_v32 }
 0x7c2   : > { %v1302_v34 = vpop.xlane.xlu1 %1301 }
 0x7c3   : > { %8061 = vrcp.f32 %v1302_v34 }
 0x7c4   : > { %v1309_v36 = vpop.permute.xlu0 %1308 }
 0x7c5   : > { %7636 = vmatpush3.bf16.msra.mxu0 %v1309_v36 }
 0x7c6   : > { %7647 = vmatprep.subr.bf16.mxu0 %v8130_v1  ;;  %v1408_v43 = vpop.permute.xlu1 %1407 }
 0x7cb   : > { %v8060_v37 = vpop.eup %8059 }
 0x7cc   : > { %v1305_v40 = vmul.f32 %v8060_v37, %v8056_v29 }
 0x7cd   : > { %v8062_v38 = vpop.eup %8061 }
 0x7ce   : > { %v1306_v41 = vmul.f32 %v8062_v38, %v8058_v31 }
 0x7d0   : > { %v1307_v42 = vpack.c.bf16 %v1306_v41, %v1305_v40 }
 0x7d2   : > { %7638 = vmatmul.mubr.msk.bf16.vlgmr.msra.gmra.mrb[16].mxu0 %vm943_vm5, %v1307_v42 }
 0x7d3   : > { %7648 = vmatpush3.bf16.msra.mxu0 %v1415_v35  ;;  %7649 = vmatprep.mubr.msk.bf16.mxu0 %vm8131_vm0, %v8130_v1 }
 0x7d4   : > { %7659 = vmatprep.subr.bf16.mxu0 %v8130_v1 }
 0x7da   : > { %7650 = vmatmul.mubr.msk.bf16.vlgmr.msra.gmra.mrb[20].mxu0 %vm894_vm4, %v1408_v43 }
 0x7db   : > { %7661 = vmatprep.mubr.msk.bf16.mxu0 %vm8131_vm0, %v8130_v1 }
 0x8a5   : > { %v1348_v46 = vpop.f32.mrb[16].mxu0 }
 0x8a6   : > { %v7639_v47 = vpop.f32.mrb[17].mxu0 }
 0x8a7   : > { %v1351_v48 = vpop.f32.mrb[18].mxu0 }
 0x8a8   : > { %v1357_v49 = vpack.c.bf16 %v1351_v48, %v1348_v46  ;;  %v7640_v50 = vpop.f32.mrb[19].mxu0 }
 0x8aa   : > { %7644 = vmatmul.mubr.msk.bf16.vlgmr.msra.gmra.mrb[20].mxu1 %vm894_vm4, %v1357_v49 }
 0x8ab   : > { %7655 = vmatprep.mubr.msk.bf16.mxu1 %vm8131_vm0, %v8130_v1 }
 0x8ad   : > { %v1451_v51 = vpop.f32.mrb[20].mxu0 }
 0x8ae   : > { %v7651_v52 = vpop.f32.mrb[21].mxu0  ;;  %v1458_v53 = vsel %vm943_vm5, %v1451_v51, -inf }
 0x8af   : > { %1459 = vmax.xlane.f32.xlu1 %v1458_v53  ;;  %v1454_v54 = vpop.f32.mrb[22].mxu0 }
 0x8b0   : > { %v7652_v55 = vpop.f32.mrb[23].mxu0  ;;  %v1461_v56 = vsel %vm943_vm5, %v1454_v54, -inf }
 0x8b1   : > { %1462 = vmax.xlane.f32.xlu0 %v1461_v56  ;;  %v475_v55 = vld [vmem:[%s9823_s5 + $0x8] sm:$0xff] }
 0x93c   : > { %v1460_v58 = vpop.xlane.xlu1 %1459 }
 0x93d   : > { %v1464_v61 = vsub.f32 %v1451_v51, %v1460_v58  ;;  %v483_v58 = vld [vmem:[%s9823_s5 + $0x48] sm:$0xff] }
 0x93e   : > { %v1463_v62 = vpop.xlane.xlu0 %1462 }
 0x93f   : > { %v1466_v63 = vmul.f32 1.442695, %v1464_v61  ;;  %v1465_v0 = vsub.f32 %v1454_v54, %v1463_v62  ;;  %v482_v54 = vld [vmem:[%s9823_s5 + $0x40] sm:$0xff]  ;;  %v6500_v62 = vcombine.low %v475_v55, %v483_v58 }
 0x941   : > { %8063 = vpow2.f32 %v1466_v63  ;;  %v1468_v59 = vmul.f32 1.442695, %v1465_v0  ;;  %v6501_v63 = vcombine.high %v475_v55, %v483_v58  ;;  %v490_v0 = vld [vmem:[%s9823_s5 + $0x80] sm:$0xff]  ;;  %v503_v58 = vld [vmem:[%s9823_s5 + $0xe8] sm:$0xff] }
 0x942   : > { %v502_v55 = vld [vmem:[%s9823_s5 + $0xe0] sm:$0xff] }
 0x943   : > { %8065 = vpow2.f32 %v1468_v59  ;;  %v498_v59 = vld [vmem:[%s9823_s5 + $0xc0] sm:$0xff] }
 0x94b   : > { %v8064_v60 = vpop.eup %8063 }
 0x94c   : > { %v1470_v2 = vsel %vm943_vm5, %v8064_v60, 0.0 }
 0x94d   : > { %v8066_v3 = vpop.eup %8065  ;;  %1471 = vadd.xlane.f32.xlu0 %v1470_v2  ;;  %v6515_v2 = vcombine.high %v490_v0, %v498_v59 }
 0x94e   : > { %v1473_v4 = vsel %vm943_vm5, %v8066_v3, 0.0 }
 0x94f   : > { %1474 = vadd.xlane.f32.xlu1 %v1473_v4  ;;  %v6514_v4 = vcombine.low %v490_v0, %v498_v59  ;;  %v480_v59 = vld [vmem:[%s9823_s5 + $0x30] sm:$0xff] }
 0x963   : > { %1481 = vrot.lane.b32.xlu0 %v8326_v22, %s9831_s23  ;;  %v6496_v22 = vld [vmem:[%s9822_s4 + $0xc] sm:$0xf] }
 0x97d   : > { %v1398_v6 = vpop.f32.mrb[20].mxu1 }
 0x97e   : > { %v1405_v7 = vadd.f32 %v1398_v6, %v8370_v5  ;;  %v7645_v9 = vpop.f32.mrb[21].mxu1  ;;  %v1535_v5 = vsel %vm898_vm3, %v6496_v22, 0 }
 0x97f   : > { %v1401_v10 = vpop.f32.mrb[22].mxu1  ;;  %7660 = vmatpush3.bf16.msra.mxu0 %v1535_v5  ;;  %v476_v9 = vld [vmem:[%s9823_s5 + $0x10] sm:$0xff] }
 0x980   : > { %v1406_v14 = vadd.f32 %v1401_v10, %v8372_v8  ;;  %v7646_v15 = vpop.f32.mrb[23].mxu1  ;;  %1916 = vmatprep.subr.bf16.mxu0 %v6501_v63  ;;  %v484_v10 = vld [vmem:[%s9823_s5 + $0x50] sm:$0xff] }
 0x981   : > { %v8141_v15 = vmov 0  }
 0x9da   : > { %v1472_v16 = vpop.xlane.xlu0 %1471 }
 0x9db   : > { %8067 = vrcp.f32 %v1472_v16  ;;  %v6503_v16 = vcombine.high %v476_v9, %v484_v10 }
 0x9dc   : > { %v1475_v17 = vpop.xlane.xlu1 %1474 }
 0x9dd   : > { %8069 = vrcp.f32 %v1475_v17  ;;  %v485_v17 = vld [vmem:[%s9823_s5 + $0x58] sm:$0xff] }
 0x9de   : > { %v1482_v18 = vpop.permute.xlu0 %1481 }
 0x9df   : > { %7654 = vmatpush3.bf16.msra.mxu1 %v1482_v18  ;;  %v6502_v18 = vcombine.low %v476_v9, %v484_v10  ;;  %v496_v10 = vld [vmem:[%s9823_s5 + $0xb0] sm:$0xff] }
 0x9e5   : > { %v8068_v19 = vpop.eup %8067 }
 0x9e6   : > { %v1478_v25 = vmul.f32 %v8068_v19, %v8064_v60  ;;  %v491_v60 = vld [vmem:[%s9823_s5 + $0x88] sm:$0xff] }
 0x9e7   : > { %v8070_v23 = vpop.eup %8069 }
 0x9e8   : > { %v1479_v26 = vmul.f32 %v8070_v23, %v8066_v3  ;;  %v499_v3 = vld [vmem:[%s9823_s5 + $0xc8] sm:$0xff] }
 0x9e9   : > { %v6516_v6 = vcombine.low %v491_v60, %v499_v3 }
 0x9ea   : > { %v1480_v28 = vpack.c.bf16 %v1479_v26, %v1478_v25 }
 0x9ec   : > { %7656 = vmatmul.mubr.msk.bf16.vlgmr.msra.gmra.mrb[24].mxu1 %vm943_vm5, %v1480_v28 }
 0x9ed   : > { %1905 = vmatprep.mubr.bf16.mxu1 %v8141_v15 }
 0xabf   : > { %v1521_v8 = vpop.f32.mrb[24].mxu1 }
 0xac0   : > { %v7657_v27 = vpop.f32.mrb[25].mxu1 }
 0xac1   : > { %v1524_v29 = vpop.f32.mrb[26].mxu1  ;;  %v8464_v27 = vsub.s32 4, %v8255_v12 }
 0xac2   : > { %v1530_v30 = vpack.c.bf16 %v1524_v29, %v1521_v8  ;;  %v7658_v31 = vpop.f32.mrb[27].mxu1 }
 0xac4   : > { %7662 = vmatmul.mubr.msk.bf16.vlgmr.msra.gmra.mrb[24].mxu0 %vm894_vm4, %v1530_v30  ;;  %v8469_v30 = vld [vmem:[%s9826_s8] sm:$0xff] }
 0xac5   : > { %1917 = vmatpush1.bf16.msra.mxu0 %v6500_v62  ;;  %1948 = vmatprep.mubr.bf16.mxu0 %v8141_v15  ;;  %v1618_v31 = vrot.slane %v8469_v30, %v8464_v27 }
 0xb97   : > { %v1571_v34 = vpop.f32.mrb[24].mxu0 }
 0xb98   : > { %v1578_v36 = vadd.f32 %v1571_v34, %v1405_v7  ;;  %v7663_v37 = vpop.f32.mrb[25].mxu0  ;;  %v6517_v7 = vcombine.high %v491_v60, %v499_v3  ;;  %v488_v60 = vld [vmem:[%s9823_s5 + $0x70] sm:$0xff]  ;;  %v489_v3 = vld [vmem:[%s9823_s5 + $0x78] sm:$0xff] }
 0xb99   : > { %v1574_v38 = vpop.f32.mrb[26].mxu0 }
 0xb9a   : > { %v1584_v39 = vadd.f32 %v1583_v33, %v1578_v36  ;;  %v1579_v40 = vadd.f32 %v1574_v38, %v1406_v14  ;;  %v7664_v41 = vpop.f32.mrb[27].mxu0  ;;  %1918 = vmatprep.subr.bf16.mxu0 %v6517_v7  ;;  %v477_v14 = vld [vmem:[%s9823_s5 + $0x18] sm:$0xff]  ;;  %v6511_v7 = vcombine.high %v480_v59, %v488_v60 }
 0xb9b   : > { %1919 = vmatpush1.bf16.msra.mxu0 %v6516_v6  ;;  %v6504_v19 = vcombine.low %v477_v14, %v485_v17  ;;  %v6505_v23 = vcombine.high %v477_v14, %v485_v17  ;;  %v492_v41 = vld [vmem:[%s9823_s5 + $0x90] sm:$0xff]  ;;  %v505_v17 = vld [vmem:[%s9823_s5 + $0xf8] sm:$0xff] }
 0xb9c   : > { %v1585_v42 = vadd.f32 %v1583_v33, %v1579_v40  ;;  %v1586_v35 = vadd.f32 %v1584_v39, %v8269_v20  ;;  %v8474_v33 = vsub.s32 5, %v8255_v12  ;;  %v504_v14 = vld [vmem:[%s9823_s5 + $0xf0] sm:$0xff] }
 0xb9d   : > { %2002 = vmatprep.subr.bf16.mxu0 %v6505_v23  ;;  %v6527_v23 = vcombine.high %v496_v10, %v504_v14 }
 0xb9e   : > { %v1588_v43 = vsel %vm779_vm2, %v1586_v35, 0.0  ;;  %v1587_v44 = vadd.f32 %v1585_v42, %v8271_v21  ;;  %v474_v21 = vld [vmem:[%s9823_s5] sm:$0xff]  ;;  %v1624_v37 = vrot.slane %v8469_v30, %v8474_v33  ;;  %v500_v42 = vld [vmem:[%s9823_s5 + $0xd0] sm:$0xff] }
 0xb9f   : > { %1589 = vadd.xlane.f32.xlu1 %v1588_v43  ;;  %v6499_v56 = vcombine.high %v474_v21, %v482_v54  ;;  %v6498_v61 = vcombine.low %v474_v21, %v482_v54  ;;  %v501_v43 = vld [vmem:[%s9823_s5 + $0xd8] sm:$0xff]  ;;  %v494_v54 = vld [vmem:[%s9823_s5 + $0xa0] sm:$0xff] }
 0xba0   : > { %v1591_v45 = vsel %vm779_vm2, %v1587_v44, 0.0  ;;  %v6523_v63 = vcombine.high %v494_v54, %v502_v55 }
 0xba1   : > { %1873 = vmatprep.subr.bf16.mxu1 %v6499_v56  ;;  %v495_v56 = vld [vmem:[%s9823_s5 + $0xa8] sm:$0xff] }
 0xba2   : > { %1874 = vmatpush1.bf16.msra.mxu1 %v6498_v61  ;;  %v6525_v0 = vcombine.high %v495_v56, %v503_v58  ;;  %v6524_v6 = vcombine.low %v495_v56, %v503_v58  ;;  %v7807_v56 = vld [vmem:[%s9825_s7 + $0x78] sm:$0xff]  }
 0xba3   : > { %1592 = vadd.xlane.f32.xlu1 %v1591_v45  ;;  %1875 = vmatprep.subr.bf16.mxu1 %v6515_v2  ;;  %v481_v2 = vld [vmem:[%s9823_s5 + $0x38] sm:$0xff] }
 0xba4   : > { %v6513_v9 = vcombine.high %v481_v2, %v489_v3  ;;  %v7808_v58 = vld [vmem:[%s9825_s7 + $0xf8] sm:$0xff]  }
 0xba6   : > { %1876 = vmatpush1.bf16.msra.mxu1 %v6514_v4  ;;  %v6522_v4 = vcombine.low %v494_v54, %v502_v55  ;;  %v7805_v54 = vld [vmem:[%s9825_s7 + $0x30] sm:$0xff]  }
 0xba7   : > { %1959 = vmatprep.subr.bf16.mxu1 %v6503_v16  ;;  %v497_v16 = vld [vmem:[%s9823_s5 + $0xb8] sm:$0xff]  ;;  %v7806_v55 = vld [vmem:[%s9825_s7 + $0xb0] sm:$0xff]  }
 0xc2c   : > { %v1590_v46 = vpop.xlane.xlu1 %1589 }
 0xc2d   : > { %v1595_v11 = vmul.f32 0.03125, %v1590_v46 }
 0xc2f   : > { %v1597_v47 = vsub.f32 %v1586_v35, %v1595_v11  ;;  %v493_v35 = vld [vmem:[%s9823_s5 + $0x98] sm:$0xff]  ;;  %v6519_v11 = vcombine.high %v492_v41, %v500_v42 }
 0xc30   : > { %v1593_v48 = vpop.xlane.xlu1 %1592 }
 0xc31   : > { %v1596_v49 = vmul.f32 0.03125, %v1593_v48  ;;  %v1599_v50 = vmul.f32 %v1597_v47, %v1597_v47  ;;  %v478_v48 = vld [vmem:[%s9823_s5 + $0x20] sm:$0xff] }
 0xc33   : > { %v1598_v51 = vsub.f32 %v1587_v44, %v1596_v49  ;;  %v1601_v52 = vsel %vm779_vm2, %v1599_v50, 0.0  ;;  %v486_v49 = vld [vmem:[%s9823_s5 + $0x60] sm:$0xff]  ;;  %v479_v50 = vld [vmem:[%s9823_s5 + $0x28] sm:$0xff] }
 0xc34   : > { %1602 = vadd.xlane.f32.xlu1 %v1601_v52  ;;  %v6518_v52 = vcombine.low %v492_v41, %v500_v42  ;;  %v6506_v61 = vcombine.low %v478_v48, %v486_v49  ;;  %v7790_v41 = vld [vmem:[%s9825_s7 + $0x90] sm:$0xff]   ;;  %v7791_v42 = vld [vmem:[%s9825_s7 + $0x58] sm:$0xff]  }
 0xc35   : > { %v1600_v53 = vmul.f32 %v1598_v51, %v1598_v51 }
 0xc37   : > { %v1604_v20 = vsel %vm779_vm2, %v1600_v53, 0.0  ;;  %v6520_v53 = vcombine.low %v493_v35, %v501_v43 }
 0xc38   : > { %1605 = vadd.xlane.f32.xlu1 %v1604_v20  ;;  %v6507_v20 = vcombine.high %v478_v48, %v486_v49  ;;  %v7797_v48 = vld [vmem:[%s9825_s7 + $0x20] sm:$0xff]  }
 0xc39   : > { %v7798_v49 = vld [vmem:[%s9825_s7 + $0xa0] sm:$0xff]  }
 0xcc1   : > { %v1603_v25 = vpop.xlane.xlu1 %1602 }
 0xcc2   : > { %v1607_v26 = vmul.f32 0.03125, %v1603_v25  ;;  %v6529_v25 = vcombine.high %v497_v16, %v505_v17 }
 0xcc4   : > { %v1609_v28 = vadd.f32 1e-05, %v1607_v26  ;;  %v6526_v26 = vcombine.low %v496_v10, %v504_v14  ;;  %v8681_v10 = vsub.s32 7, %v8255_v12 }
 0xcc5   : > { %v1606_v22 = vpop.xlane.xlu1 %1605 }
 0xcc6   : > { %8071 = vrsqrt.f32 %v1609_v28  ;;  %v1608_v5 = vmul.f32 0.03125, %v1606_v22  ;;  %v6528_v28 = vcombine.low %v497_v16, %v505_v17  ;;  %v7779_v22 = vld [vmem:[%s9825_s7 + $0x40] sm:$0xff]  }
 0xcc8   : > { %v1610_v8 = vadd.f32 1e-05, %v1608_v5  ;;  %v7780_v5 = vld [vmem:[%s9825_s7 + $0xc0] sm:$0xff]  }
 0xcca   : > { %8073 = vrsqrt.f32 %v1610_v8  ;;  %v7781_v8 = vld [vmem:[%s9825_s7] sm:$0xff]  }
 0xcd0   : > { %v8072_v29 = vpop.eup %8071 }
 0xcd1   : > { %v1613_v34 = vmul.f32 %v8072_v29, %v1597_v47  ;;  %v6521_v47 = vcombine.high %v493_v35, %v501_v43  ;;  %v7782_v29 = vld [vmem:[%s9825_s7 + $0x80] sm:$0xff]   ;;  %v7792_v35 = vld [vmem:[%s9825_s7 + $0xd8] sm:$0xff]  }
 0xcd2   : > { %v7793_v43 = vld [vmem:[%s9825_s7 + $0x18] sm:$0xff]  }
 0xcd3   : > { %v1619_v38 = vmul.f32 %v1618_v31, %v1613_v34  ;;  %v7784_v34 = vld [vmem:[%s9825_s7 + $0xc8] sm:$0xff]  }
 0xcd4   : > { %v8074_v36 = vpop.eup %8073 }
 0xcd5   : > { %v1614_v39 = vmul.f32 %v8074_v36, %v1598_v51  ;;  %v8490_v44 = vadd.f32 %v1624_v37, %v1619_v38  ;;  %v487_v51 = vld [vmem:[%s9823_s5 + $0x68] sm:$0xff]  ;;  %v7787_v38 = vld [vmem:[%s9825_s7 + $0x50] sm:$0xff]  }
 0xcd6   : > { %v6509_v21 = vcombine.high %v479_v50, %v487_v51  ;;  %v6508_v62 = vcombine.low %v479_v50, %v487_v51  ;;  %v7785_v36 = vld [vmem:[%s9825_s7 + $0x8] sm:$0xff]  }
 0xcd7   : > { %v1620_v40 = vmul.f32 %v1618_v31, %v1614_v39  ;;  %v7783_v31 = vld [vmem:[%s9825_s7 + $0x48] sm:$0xff]   ;;  %v7788_v39 = vld [vmem:[%s9825_s7 + $0xd0] sm:$0xff]  }
 0xcd8   : > { %v7799_v50 = vld [vmem:[%s9825_s7 + $0x68] sm:$0xff]  }
 0xcd9   : > { %v8492_v45 = vadd.f32 %v1624_v37, %v1620_v40  ;;  %v7786_v37 = vld [vmem:[%s9825_s7 + $0x88] sm:$0xff]   ;;  %v7789_v40 = vld [vmem:[%s9825_s7 + $0x10] sm:$0xff]  }
 0xcda   : > { %v7800_v51 = vld [vmem:[%s9825_s7 + $0xe8] sm:$0xff]  }
 0xcdb   : > { %v8496_v46 = vpack.c.bf16 %v8492_v45, %v8490_v44 }
 0xcdd   : > { %6530 = vmatmul.mubr.msk.bf16.vlgmr.msra.gmra.mrb[28].mxu1 %vm779_vm2, %v8496_v46  ;;  %6531 = vmatmul.mubr.msk.bf16.vlgmr.msra.gmra.mrb[28].mxu0 %vm779_vm2, %v8496_v46 }
 0xcde   : > { %1960 = vmatpush1.bf16.msra.mxu1 %v6502_v18  ;;  %2003 = vmatpush1.bf16.msra.mxu0 %v6504_v19  ;;  %v6510_v18 = vcombine.low %v480_v59, %v488_v60  ;;  %v6512_v19 = vcombine.low %v481_v2, %v489_v3  ;;  %v762_v59 = vld [vmem:[%s9824_s6] sm:$0xff] }
 0xcdf   : > { %1961 = vmatprep.subr.bf16.mxu1 %v6519_v11  ;;  %2004 = vmatprep.subr.bf16.mxu0 %v6521_v47  ;;  %v7795_v11 = vld [vmem:[%s9825_s7 + $0x60] sm:$0xff]   ;;  %v1633_v60 = vrot.slane %v762_v59, %v8279_v24  ;;  %v1641_v2 = vrot.slane %v762_v59, %v8313_v57  ;;  %v1637_v3 = vrot.slane %v762_v59, %v8258_v13 }
 0xce0   : > { %1991 = vmatprep.mubr.bf16.mxu1 %v8141_v15  ;;  %2034 = vmatprep.mubr.bf16.mxu0 %v8141_v15  ;;  %v7796_v47 = vld [vmem:[%s9825_s7 + $0xe0] sm:$0xff]  }
 0xce2   : > { %1962 = vmatpush1.bf16.msra.mxu1 %v6518_v52  ;;  %2005 = vmatpush1.bf16.msra.mxu0 %v6520_v53  ;;  %v7801_v52 = vld [vmem:[%s9825_s7 + $0x28] sm:$0xff]  }
 0xce3   : > { %2045 = vmatprep.subr.bf16.mxu1 %v6507_v20  ;;  %2088 = vmatprep.subr.bf16.mxu0 %v6509_v21  ;;  %v7802_v53 = vld [vmem:[%s9825_s7 + $0xa8] sm:$0xff]   ;;  %v7803_v20 = vld [vmem:[%s9825_s7 + $0x70] sm:$0xff]  }
 0xce4   : > { %v7804_v21 = vld [vmem:[%s9825_s7 + $0xf0] sm:$0xff]  }
 0xce5   : > { %6532 = vmatmul.mubr.msk.bf16.vlgmr.msra.gmra.mrb[32].mxu1 %vm779_vm2, %v8496_v46  ;;  %6533 = vmatmul.mubr.msk.bf16.vlgmr.msra.gmra.mrb[32].mxu0 %vm779_vm2, %v8496_v46 }
 0xce6   : > { %2046 = vmatpush1.bf16.msra.mxu1 %v6506_v61  ;;  %2089 = vmatpush1.bf16.msra.mxu0 %v6508_v62  ;;  %v7809_v61 = vld [vmem:[%s9825_s7 + $0x38] sm:$0xff]  }
 0xce7   : > { %2047 = vmatprep.subr.bf16.mxu1 %v6523_v63  ;;  %2090 = vmatprep.subr.bf16.mxu0 %v6525_v0  ;;  %v7810_v62 = vld [vmem:[%s9825_s7 + $0xb8] sm:$0xff]   ;;  %v7811_v63 = vld [vmem:[%s9825_s7 + $0x140] sm:$0xff]  }
 0xce8   : > { %2077 = vmatprep.mubr.bf16.mxu1 %v8141_v15  ;;  %2120 = vmatprep.mubr.bf16.mxu0 %v8141_v15  ;;  %v7812_v0 = vld [vmem:[%s9825_s7 + $0x1c0] sm:$0xff]  }
 0xcea   : > { %2048 = vmatpush1.bf16.msra.mxu1 %v6522_v4  ;;  %2091 = vmatpush1.bf16.msra.mxu0 %v6524_v6  ;;  %v1645_v4 = vrot.slane %v762_v59, %v8415_v32  ;;  %v8678_v6 = vsub.s32 6, %v8255_v12  ;;  %v1653_v12 = vrot.slane %v762_v59, %v8474_v33 }
 0xceb   : > { %2131 = vmatprep.subr.bf16.mxu1 %v6511_v7  ;;  %2174 = vmatprep.subr.bf16.mxu0 %v6513_v9 }
 0xced   : > { %6534 = vmatmul.mubr.msk.bf16.vlgmr.msra.gmra.mrb[36].mxu1 %vm779_vm2, %v8496_v46  ;;  %6535 = vmatmul.mubr.msk.bf16.vlgmr.msra.gmra.mrb[36].mxu0 %vm779_vm2, %v8496_v46 }
 0xcee   : > { %2132 = vmatpush1.bf16.msra.mxu1 %v6510_v18  ;;  %2175 = vmatpush1.bf16.msra.mxu0 %v6512_v19 }
 0xcef   : > { %2133 = vmatprep.subr.bf16.mxu1 %v6527_v23  ;;  %2176 = vmatprep.subr.bf16.mxu0 %v6529_v25 }
 0xcf0   : > { %2163 = vmatprep.mubr.bf16.mxu1 %v8141_v15  ;;  %2206 = vmatprep.mubr.bf16.mxu0 %v8141_v15 }
 0xcf2   : > { %2134 = vmatpush1.bf16.msra.mxu1 %v6526_v26  ;;  %2177 = vmatpush1.bf16.msra.mxu0 %v6528_v28 }
 0xcf3   : > { %7191 = vmatprep.subr.bf16.mxu1 %v7779_v22  ;;  %7213 = vmatprep.subr.bf16.mxu0 %v7780_v5 }
 0xcf5   : > { %6536 = vmatmul.mubr.msk.bf16.vlgmr.msra.gmra.mrb[40].mxu1 %vm779_vm2, %v8496_v46  ;;  %6537 = vmatmul.mubr.msk.bf16.vlgmr.msra.gmra.mrb[40].mxu0 %vm779_vm2, %v8496_v46  ;;  %v7794_v46 = vld [vmem:[%s9825_s7 + $0x98] sm:$0xff]  }
 0xcf6   : > { %7192 = vmatpush3.bf16.msra.mxu1 %v7781_v8  ;;  %7214 = vmatpush3.bf16.msra.mxu0 %v7782_v29  ;;  %v1649_v29 = vrot.slane %v762_v59, %v8464_v27 }
 0xcf7   : > { %7193 = vmatprep.subr.bf16.mxu1 %v7783_v31  ;;  %7215 = vmatprep.subr.bf16.mxu0 %v7784_v34  ;;  %v1657_v31 = vrot.slane %v762_v59, %v8678_v6 }
 0xcfa   : > { %7194 = vmatpush3.bf16.msra.mxu1 %v7785_v36  ;;  %7216 = vmatpush3.bf16.msra.mxu0 %v7786_v37  ;;  %v1661_v37 = vrot.slane %v762_v59, %v8681_v10 }
 0xcfb   : > { %7195 = vmatprep.subr.bf16.mxu1 %v7787_v38  ;;  %7217 = vmatprep.subr.bf16.mxu0 %v7788_v39 }
 0xcfe   : > { %7196 = vmatpush3.bf16.msra.mxu1 %v7789_v40  ;;  %7218 = vmatpush3.bf16.msra.mxu0 %v7790_v41 }
 0xcff   : > { %7197 = vmatprep.subr.bf16.mxu1 %v7791_v42  ;;  %7219 = vmatprep.subr.bf16.mxu0 %v7792_v35 }
 0xd02   : > { %7198 = vmatpush3.bf16.msra.mxu1 %v7793_v43  ;;  %7220 = vmatpush3.bf16.msra.mxu0 %v7794_v46 }
 0xd03   : > { %7199 = vmatprep.subr.bf16.mxu1 %v7795_v11  ;;  %7221 = vmatprep.subr.bf16.mxu0 %v7796_v47  ;;  %v8690_v11 = vld [vmem:[%s9824_s6 + $0x8] sm:$0xff] }
 0xd06   : > { %7200 = vmatpush3.bf16.msra.mxu1 %v7797_v48  ;;  %7222 = vmatpush3.bf16.msra.mxu0 %v7798_v49 }
 0xd07   : > { %7201 = vmatprep.subr.bf16.mxu1 %v7799_v50  ;;  %7223 = vmatprep.subr.bf16.mxu0 %v7800_v51 }
 0xd0a   : > { %7202 = vmatpush3.bf16.msra.mxu1 %v7801_v52  ;;  %7224 = vmatpush3.bf16.msra.mxu0 %v7802_v53  ;;  %v7813_v53 = vld [vmem:[%s9825_s7 + $0x100] sm:$0xff]  }
 0xd0b   : > { %7203 = vmatprep.subr.bf16.mxu1 %v7803_v20  ;;  %7225 = vmatprep.subr.bf16.mxu0 %v7804_v21  ;;  %v7814_v20 = vld [vmem:[%s9825_s7 + $0x180] sm:$0xff]  }
 0xd0e   : > { %7204 = vmatpush3.bf16.msra.mxu1 %v7805_v54  ;;  %7226 = vmatpush3.bf16.msra.mxu0 %v7806_v55 }
 0xd0f   : > { %7205 = vmatprep.subr.bf16.mxu1 %v7807_v56  ;;  %7227 = vmatprep.subr.bf16.mxu0 %v7808_v58  ;;  %v7815_v58 = vld [vmem:[%s9825_s7 + $0x148] sm:$0xff]  }
 0xd12   : > { %7206 = vmatpush3.bf16.msra.mxu1 %v7809_v61  ;;  %7228 = vmatpush3.bf16.msra.mxu0 %v7810_v62  ;;  %v7816_v61 = vld [vmem:[%s9825_s7 + $0x1c8] sm:$0xff]   ;;  %v1665_v62 = vrot.slane %v8690_v11, %v8279_v24 }
 0xd13   : > { %7235 = vmatprep.subr.bf16.mxu1 %v7811_v63  ;;  %7257 = vmatprep.subr.bf16.mxu0 %v7812_v0 }
 0xdb0   : > { %v1907_v7 = vpop.f32.mrb[28].mxu1  ;;  %v1950_v9 = vpop.f32.mrb[28].mxu0 }
 0xdb1   : > { %v1908_v14 = vadd.f32 %v1907_v7, %v1633_v60  ;;  %v1951_v16 = vadd.f32 %v1950_v9, %v1641_v2  ;;  %v1909_v17 = vpop.f32.mrb[29].mxu1  ;;  %v1952_v18 = vpop.f32.mrb[29].mxu0 }
 0xdb2   : > { %v1910_v19 = vadd.f32 %v1909_v17, %v1637_v3  ;;  %v1953_v23 = vadd.f32 %v1952_v18, %v1645_v4  ;;  %v1911_v25 = vpop.f32.mrb[30].mxu1  ;;  %v1954_v26 = vpop.f32.mrb[30].mxu0  ;;  %v7817_v18 = vld [vmem:[%s9825_s7 + $0x108] sm:$0xff]  }
 0xdb3   : > { %v1912_v28 = vadd.f32 %v1911_v25, %v1633_v60  ;;  %v1955_v22 = vadd.f32 %v1954_v26, %v1641_v2  ;;  %v1913_v5 = vpop.f32.mrb[31].mxu1  ;;  %v1956_v8 = vpop.f32.mrb[31].mxu0  ;;  %v2217_v38 = vmax.f32 %v1908_v14, 0.0  ;;  %v2219_v39 = vmax.f32 %v1951_v16, 0.0 }
 0xdb4   : > { %v1914_v34 = vadd.f32 %v1913_v5, %v1637_v3  ;;  %v1957_v36 = vadd.f32 %v1956_v8, %v1645_v4  ;;  %v2218_v42 = vmax.f32 %v1910_v19, 0.0  ;;  %v2220_v35 = vmax.f32 %v1953_v23, 0.0  ;;  %v7818_v19 = vld [vmem:[%s9825_s7 + $0x188] sm:$0xff]   ;;  %v7819_v5 = vld [vmem:[%s9825_s7 + $0x150] sm:$0xff]  }
 0xdb5   : > { %v2233_v40 = vmax.f32 %v1912_v28, 0.0  ;;  %v2235_v41 = vmax.f32 %v1955_v22, 0.0  ;;  %v1673_v2 = vrot.slane %v8690_v11, %v8313_v57  ;;  %v1669_v14 = vrot.slane %v8690_v11, %v8258_v13  ;;  %v7820_v8 = vld [vmem:[%s9825_s7 + $0x1d0] sm:$0xff]  }
 0xdb6   : > { %v2234_v43 = vmax.f32 %v1914_v34, 0.0  ;;  %v2236_v46 = vmax.f32 %v1957_v36, 0.0  ;;  %v1677_v23 = vrot.slane %v8690_v11, %v8415_v32 }
 0xdb7   : > { %v2249_v47 = vpack.c.bf16 %v2233_v40, %v2217_v38  ;;  %v2251_v48 = vpack.c.bf16 %v2235_v41, %v2219_v39 }
 0xdb8   : > { %v2250_v49 = vpack.c.bf16 %v2234_v43, %v2218_v42  ;;  %v2252_v50 = vpack.c.bf16 %v2236_v46, %v2220_v35  ;;  %v1993_v51 = vpop.f32.mrb[32].mxu1  ;;  %v2036_v52 = vpop.f32.mrb[32].mxu0  ;;  %v7821_v42 = vld [vmem:[%s9825_s7 + $0x110] sm:$0xff]  }
 0xdb9   : > { %v1994_v21 = vadd.f32 %v1993_v51, %v1649_v29  ;;  %v2037_v54 = vadd.f32 %v2036_v52, %v1657_v31  ;;  %v1995_v55 = vpop.f32.mrb[33].mxu1  ;;  %v2038_v56 = vpop.f32.mrb[33].mxu0  ;;  %v7822_v35 = vld [vmem:[%s9825_s7 + $0x190] sm:$0xff]  }
 0xdba   : > { %v1996_v63 = vadd.f32 %v1995_v55, %v1653_v12  ;;  %v2039_v0 = vadd.f32 %v2038_v56, %v1661_v37  ;;  %v1997_v59 = vpop.f32.mrb[34].mxu1  ;;  %v2040_v60 = vpop.f32.mrb[34].mxu0  ;;  %3069 = vmatprep.mubr.bf16.mxu1 %v2250_v49  ;;  %3110 = vmatprep.mubr.bf16.mxu0 %v2252_v50  ;;  %v7823_v49 = vld [vmem:[%s9825_s7 + $0x158] sm:$0xff]  }
 0xdbb   : > { %v1998_v3 = vadd.f32 %v1997_v59, %v1649_v29  ;;  %v2041_v4 = vadd.f32 %v2040_v60, %v1657_v31  ;;  %v1999_v7 = vpop.f32.mrb[35].mxu1  ;;  %v2042_v9 = vpop.f32.mrb[35].mxu0  ;;  %3070 = vmatmul.mubr.bf16.vlgmr.msra.gmra.mrb[44].mxu1 %v2249_v47  ;;  %3111 = vmatmul.mubr.bf16.vlgmr.msra.gmra.mrb[44].mxu0 %v2251_v48  ;;  %v2221_v25 = vmax.f32 %v1994_v21, 0.0  ;;  %v2223_v26 = vmax.f32 %v2037_v54, 0.0  ;;  %v7824_v50 = vld [vmem:[%s9825_s7 + $0x1d8] sm:$0xff]  }
 0xdbc   : > { %v2000_v16 = vadd.f32 %v1999_v7, %v1653_v12  ;;  %v2043_v17 = vadd.f32 %v2042_v9, %v1661_v37  ;;  %7236 = vmatpush3.bf16.msra.mxu1 %v7813_v53  ;;  %7258 = vmatpush3.bf16.msra.mxu0 %v7814_v20  ;;  %v2222_v29 = vmax.f32 %v1996_v63, 0.0  ;;  %v2224_v31 = vmax.f32 %v2039_v0, 0.0  ;;  %v7825_v60 = vld [vmem:[%s9825_s7 + $0x118] sm:$0xff]  }
 0xdbd   : > { %v2237_v28 = vmax.f32 %v1998_v3, 0.0  ;;  %v2239_v22 = vmax.f32 %v2041_v4, 0.0  ;;  %7237 = vmatprep.subr.bf16.mxu1 %v7815_v58  ;;  %7259 = vmatprep.subr.bf16.mxu0 %v7816_v61  ;;  %v1681_v21 = vrot.slane %v8690_v11, %v8464_v27  ;;  %v1689_v61 = vrot.slane %v8690_v11, %v8678_v6 }
 0xdbe   : > { %v2238_v34 = vmax.f32 %v2000_v16, 0.0  ;;  %v2240_v36 = vmax.f32 %v2043_v17, 0.0  ;;  %v1685_v63 = vrot.slane %v8690_v11, %v8474_v33  ;;  %v7828_v16 = vld [vmem:[%s9825_s7 + $0x1e0] sm:$0xff]  }
 0xdbf   : > { %v8724_v12 = vpack.c.bf16 %v2237_v28, %v2221_v25  ;;  %v8726_v37 = vpack.c.bf16 %v2239_v22, %v2223_v26 }
 0xdc0   : > { %v2254_v38 = vpack.c.bf16 %v2238_v34, %v2222_v29  ;;  %v2256_v39 = vpack.c.bf16 %v2240_v36, %v2224_v31  ;;  %7238 = vmatpush3.bf16.msra.mxu1 %v7817_v18  ;;  %7260 = vmatpush3.bf16.msra.mxu0 %v7818_v19  ;;  %v2079_v40 = vpop.f32.mrb[36].mxu1  ;;  %v2122_v41 = vpop.f32.mrb[36].mxu0  ;;  %v7830_v29 = vld [vmem:[%s9825_s7 + $0x1a0] sm:$0xff]  }
 0xdc1   : > { %v2080_v43 = vadd.f32 %v2079_v40, %v1665_v62  ;;  %v2123_v46 = vadd.f32 %v2122_v41, %v1673_v2  ;;  %v2081_v47 = vpop.f32.mrb[37].mxu1  ;;  %v2124_v48 = vpop.f32.mrb[37].mxu0  ;;  %7239 = vmatprep.subr.bf16.mxu1 %v7819_v5  ;;  %7261 = vmatprep.subr.bf16.mxu0 %v7820_v8  ;;  %v7829_v8 = vld [vmem:[%s9825_s7 + $0x120] sm:$0xff]   ;;  %v7832_v40 = vld [vmem:[%s9825_s7 + $0x1e8] sm:$0xff]  }
 0xdc2   : > { %v2082_v51 = vadd.f32 %v2081_v47, %v1669_v14  ;;  %v2125_v52 = vadd.f32 %v2124_v48, %v1677_v23  ;;  %v2083_v53 = vpop.f32.mrb[38].mxu1  ;;  %v2126_v20 = vpop.f32.mrb[38].mxu0  ;;  %3151 = vmatprep.mubr.bf16.mxu1 %v2254_v38  ;;  %3192 = vmatprep.mubr.bf16.mxu0 %v2256_v39  ;;  %v7831_v39 = vld [vmem:[%s9825_s7 + $0x168] sm:$0xff]  }
 0xdc3   : > { %v2084_v54 = vadd.f32 %v2083_v53, %v1665_v62  ;;  %v2127_v55 = vadd.f32 %v2126_v20, %v1673_v2  ;;  %v2085_v56 = vpop.f32.mrb[39].mxu1  ;;  %v2128_v58 = vpop.f32.mrb[39].mxu0  ;;  %v7826_v62 = vld [vmem:[%s9825_s7 + $0x198] sm:$0xff]   ;;  %v1693_v2 = vrot.slane %v8690_v11, %v8681_v10  ;;  %v2225_v3 = vmax.f32 %v2080_v43, 0.0  ;;  %v7834_v53 = vld [vmem:[%s9825_s7 + $0x1a8] sm:$0xff]  }
 0xdc4   : > { %v2086_v0 = vadd.f32 %v2085_v56, %v1669_v14  ;;  %v2129_v59 = vadd.f32 %v2128_v58, %v1677_v23  ;;  %7240 = vmatpush3.bf16.msra.mxu1 %v7821_v42  ;;  %7262 = vmatpush3.bf16.msra.mxu0 %v7822_v35  ;;  %v2227_v4 = vmax.f32 %v2123_v46, 0.0  ;;  %v7827_v14 = vld [vmem:[%s9825_s7 + $0x160] sm:$0xff]   ;;  %v2226_v17 = vmax.f32 %v2082_v51, 0.0  ;;  %v7836_v58 = vld [vmem:[%s9825_s7 + $0x1f0] sm:$0xff]  }
 0xdc5   : > { %v2241_v7 = vmax.f32 %v2084_v54, 0.0  ;;  %v2243_v9 = vmax.f32 %v2127_v55, 0.0  ;;  %7241 = vmatprep.subr.bf16.mxu1 %v7823_v49  ;;  %7263 = vmatprep.subr.bf16.mxu0 %v7824_v50  ;;  %v2228_v18 = vmax.f32 %v2125_v52, 0.0  ;;  %v7833_v52 = vld [vmem:[%s9825_s7 + $0x128] sm:$0xff]  }
 0xdc6   : > { %v2242_v19 = vmax.f32 %v2086_v0, 0.0  ;;  %v2244_v23 = vmax.f32 %v2129_v59, 0.0 }
 0xdc7   : > { %v8760_v25 = vpack.c.bf16 %v2241_v7, %v2225_v3  ;;  %v8762_v11 = vpack.c.bf16 %v2243_v9, %v2227_v4  ;;  %v7837_v4 = vld [vmem:[%s9825_s7 + $0x130] sm:$0xff]   ;;  %v7839_v9 = vld [vmem:[%s9825_s7 + $0x178] sm:$0xff]  }
 0xdc8   : > { %v8764_v26 = vpack.c.bf16 %v2242_v19, %v2226_v17  ;;  %v8766_v28 = vpack.c.bf16 %v2244_v23, %v2228_v18  ;;  %7242 = vmatpush3.bf16.msra.mxu1 %v7825_v60  ;;  %7264 = vmatpush3.bf16.msra.mxu0 %v7826_v62  ;;  %v2165_v22 = vpop.f32.mrb[40].mxu1  ;;  %v2208_v5 = vpop.f32.mrb[40].mxu0  ;;  %v7838_v7 = vld [vmem:[%s9825_s7 + $0x1b0] sm:$0xff]   ;;  %v7842_v17 = vld [vmem:[%s9825_s7 + $0x1b8] sm:$0xff]   ;;  %v7843_v18 = vld [vmem:[%s9825_s7 + $0x240] sm:$0xff]  }
 0xdc9   : > { %v2166_v31 = vadd.f32 %v2165_v22, %v1681_v21  ;;  %v2209_v34 = vadd.f32 %v2208_v5, %v1689_v61  ;;  %v2167_v36 = vpop.f32.mrb[41].mxu1  ;;  %v2210_v38 = vpop.f32.mrb[41].mxu0  ;;  %7243 = vmatprep.subr.bf16.mxu1 %v7827_v14  ;;  %7265 = vmatprep.subr.bf16.mxu0 %v7828_v16  ;;  %v7840_v14 = vld [vmem:[%s9825_s7 + $0x1f8] sm:$0xff]   ;;  %v7844_v19 = vld [vmem:[%s9825_s7 + $0x2c0] sm:$0xff]   ;;  %v7847_v5 = vld [vmem:[%s9825_s7 + $0x248] sm:$0xff]  }
 0xdca   : > { %v2168_v41 = vadd.f32 %v2167_v36, %v1685_v63  ;;  %v2211_v42 = vadd.f32 %v2210_v38, %v1693_v2  ;;  %v2169_v35 = vpop.f32.mrb[42].mxu1  ;;  %v2212_v43 = vpop.f32.mrb[42].mxu0  ;;  %v7841_v16 = vld [vmem:[%s9825_s7 + $0x138] sm:$0xff]   ;;  %v7845_v23 = vld [vmem:[%s9825_s7 + $0x200] sm:$0xff]  }
 0xdcb   : > { %v2170_v46 = vadd.f32 %v2169_v35, %v1681_v21  ;;  %v2213_v47 = vadd.f32 %v2212_v43, %v1689_v61  ;;  %v2171_v48 = vpop.f32.mrb[43].mxu1  ;;  %v2214_v49 = vpop.f32.mrb[43].mxu0  ;;  %v2229_v20 = vmax.f32 %v2166_v31, 0.0  ;;  %v2231_v54 = vmax.f32 %v2209_v34, 0.0  ;;  %v7835_v21 = vld [vmem:[%s9825_s7 + $0x170] sm:$0xff]   ;;  %v7846_v22 = vld [vmem:[%s9825_s7 + $0x280] sm:$0xff]  }
 0xdcc   : > { %v2172_v50 = vadd.f32 %v2171_v48, %v1685_v63  ;;  %v2215_v51 = vadd.f32 %v2214_v49, %v1693_v2  ;;  %7244 = vmatpush3.bf16.msra.mxu1 %v7829_v8  ;;  %7266 = vmatpush3.bf16.msra.mxu0 %v7830_v29  ;;  %v2230_v61 = vmax.f32 %v2168_v41, 0.0  ;;  %v2232_v63 = vmax.f32 %v2211_v42, 0.0  ;;  %v7848_v8 = vld [vmem:[%s9825_s7 + $0x2c8] sm:$0xff]   ;;  %v7855_v34 = vld [vmem:[%s9825_s7 + $0x258] sm:$0xff]   ;;  %v7860_v41 = vld [vmem:[%s9825_s7 + $0x2e0] sm:$0xff]  }
 0xdcd   : > { %v2245_v55 = vmax.f32 %v2170_v46, 0.0  ;;  %v2247_v56 = vmax.f32 %v2213_v47, 0.0  ;;  %7245 = vmatprep.subr.bf16.mxu1 %v7831_v39  ;;  %7267 = vmatprep.subr.bf16.mxu0 %v7832_v40  ;;  %v7849_v29 = vld [vmem:[%s9825_s7 + $0x208] sm:$0xff]   ;;  %v7856_v36 = vld [vmem:[%s9825_s7 + $0x2d8] sm:$0xff]   ;;  %v7859_v40 = vld [vmem:[%s9825_s7 + $0x260] sm:$0xff]  }
 0xdce   : > { %v2246_v0 = vmax.f32 %v2172_v50, 0.0  ;;  %v2248_v59 = vmax.f32 %v2215_v51, 0.0  ;;  %v7850_v31 = vld [vmem:[%s9825_s7 + $0x288] sm:$0xff]   ;;  %v7857_v38 = vld [vmem:[%s9825_s7 + $0x218] sm:$0xff]   ;;  %v7861_v42 = vld [vmem:[%s9825_s7 + $0x220] sm:$0xff]  }
 0xdcf   : > { %v8792_v60 = vpack.c.bf16 %v2245_v55, %v2229_v20  ;;  %v8794_v62 = vpack.c.bf16 %v2247_v56, %v2231_v54  ;;  %v7858_v39 = vld [vmem:[%s9825_s7 + $0x298] sm:$0xff]   ;;  %v7862_v35 = vld [vmem:[%s9825_s7 + $0x2a0] sm:$0xff]   ;;  %v7863_v43 = vld [vmem:[%s9825_s7 + $0x268] sm:$0xff]  }
 0xdd0   : > { %v8796_v2 = vpack.c.bf16 %v2246_v0, %v2230_v61  ;;  %v8798_v3 = vpack.c.bf16 %v2248_v59, %v2232_v63  ;;  %7246 = vmatpush3.bf16.msra.mxu1 %v7833_v52  ;;  %7268 = vmatpush3.bf16.msra.mxu0 %v7834_v53  ;;  %v7864_v46 = vld [vmem:[%s9825_s7 + $0x2e8] sm:$0xff]   ;;  %v7867_v49 = vld [vmem:[%s9825_s7 + $0x270] sm:$0xff]   ;;  %v7871_v53 = vld [vmem:[%s9825_s7 + $0x278] sm:$0xff]  }
 0xdd1   : > { %7247 = vmatprep.subr.bf16.mxu1 %v7835_v21  ;;  %7269 = vmatprep.subr.bf16.mxu0 %v7836_v58  ;;  %v7865_v47 = vld [vmem:[%s9825_s7 + $0x228] sm:$0xff]   ;;  %v7868_v50 = vld [vmem:[%s9825_s7 + $0x2f0] sm:$0xff]   ;;  %v7872_v20 = vld [vmem:[%s9825_s7 + $0x2f8] sm:$0xff]  }
 0xdd2   : > { %v7866_v48 = vld [vmem:[%s9825_s7 + $0x2a8] sm:$0xff]   ;;  %v7869_v51 = vld [vmem:[%s9825_s7 + $0x230] sm:$0xff]   ;;  %v7873_v54 = vld [vmem:[%s9825_s7 + $0x238] sm:$0xff]  }
 0xdd3   : > { %v7870_v52 = vld [vmem:[%s9825_s7 + $0x2b0] sm:$0xff]   ;;  %v7874_v55 = vld [vmem:[%s9825_s7 + $0x2b8] sm:$0xff]   ;;  %v7875_v56 = vld [vmem:[%s9825_s7 + $0x340] sm:$0xff]  }
 0xdd4   : > { %7248 = vmatpush3.bf16.msra.mxu1 %v7837_v4  ;;  %7270 = vmatpush3.bf16.msra.mxu0 %v7838_v7  ;;  %v7876_v21 = vld [vmem:[%s9825_s7 + $0x3c0] sm:$0xff]   ;;  %v7879_v63 = vld [vmem:[%s9825_s7 + $0x348] sm:$0xff]   ;;  %v7886_v7 = vld [vmem:[%s9825_s7 + $0x390] sm:$0xff]  }
 0xdd5   : > { %7249 = vmatprep.subr.bf16.mxu1 %v7839_v9  ;;  %7271 = vmatprep.subr.bf16.mxu0 %v7840_v14  ;;  %v7877_v58 = vld [vmem:[%s9825_s7 + $0x300] sm:$0xff]   ;;  %v7880_v0 = vld [vmem:[%s9825_s7 + $0x3c8] sm:$0xff]   ;;  %v7888_v9 = vld [vmem:[%s9825_s7 + $0x3d8] sm:$0xff]  }
 0xdd6   : > { %v7878_v61 = vld [vmem:[%s9825_s7 + $0x380] sm:$0xff]   ;;  %v7881_v59 = vld [vmem:[%s9825_s7 + $0x308] sm:$0xff]   ;;  %v7889_v14 = vld [vmem:[%s9825_s7 + $0x318] sm:$0xff]  }
 0xdd7   : > { %v7882_v4 = vld [vmem:[%s9825_s7 + $0x388] sm:$0xff]  }
 0xdd8   : > { %7250 = vmatpush3.bf16.msra.mxu1 %v7841_v16  ;;  %7272 = vmatpush3.bf16.msra.mxu0 %v7842_v17  ;;  %v7890_v16 = vld [vmem:[%s9825_s7 + $0x398] sm:$0xff]   ;;  %v7891_v17 = vld [vmem:[%s9825_s7 + $0x360] sm:$0xff]  }
 0xdd9   : > { %7279 = vmatprep.subr.bf16.mxu1 %v7843_v18  ;;  %7301 = vmatprep.subr.bf16.mxu0 %v7844_v19  ;;  %v7892_v18 = vld [vmem:[%s9825_s7 + $0x3e0] sm:$0xff]  }
 0xdda   : > { %v7893_v19 = vld [vmem:[%s9825_s7 + $0x320] sm:$0xff]  }
 0xddb   : > { %3152 = vmatmul.mubr.bf16.vlgmr.msra.gmra.mrb[48].mxu1 %v8724_v12  ;;  %3193 = vmatmul.mubr.bf16.vlgmr.msra.gmra.mrb[48].mxu0 %v8726_v37  ;;  %v7851_v12 = vld [vmem:[%s9825_s7 + $0x250] sm:$0xff]  }
 0xddc   : > { %7280 = vmatpush3.bf16.msra.mxu1 %v7845_v23  ;;  %3233 = vmatprep.mubr.bf16.mxu1 %v8764_v26  ;;  %v7852_v37 = vld [vmem:[%s9825_s7 + $0x2d0] sm:$0xff]   ;;  %v7894_v23 = vld [vmem:[%s9825_s7 + $0x3a0] sm:$0xff]  }
 0xddd   : > { %7302 = vmatpush3.bf16.msra.mxu0 %v7846_v22  ;;  %3274 = vmatprep.mubr.bf16.mxu0 %v8766_v28  ;;  %v7853_v26 = vld [vmem:[%s9825_s7 + $0x210] sm:$0xff]   ;;  %v7895_v22 = vld [vmem:[%s9825_s7 + $0x368] sm:$0xff]  }
 0xdde   : > { %7281 = vmatprep.subr.bf16.mxu1 %v7847_v5  ;;  %7303 = vmatprep.subr.bf16.mxu0 %v7848_v8  ;;  %v7854_v28 = vld [vmem:[%s9825_s7 + $0x290] sm:$0xff]   ;;  %v7896_v5 = vld [vmem:[%s9825_s7 + $0x3e8] sm:$0xff]  }
 0xddf   : > { %v7897_v8 = vld [vmem:[%s9825_s7 + $0x328] sm:$0xff]  }
 0xde0   : > { %7282 = vmatpush3.bf16.msra.mxu1 %v7849_v29  ;;  %v7898_v29 = vld [vmem:[%s9825_s7 + $0x3a8] sm:$0xff]  }
 0xde1   : > { %7304 = vmatpush3.bf16.msra.mxu0 %v7850_v31  ;;  %7283 = vmatprep.subr.bf16.mxu1 %v7851_v12  ;;  %v7899_v31 = vld [vmem:[%s9825_s7 + $0x370] sm:$0xff]  }
 0xde2   : > { %7305 = vmatprep.subr.bf16.mxu0 %v7852_v37  ;;  %v7900_v12 = vld [vmem:[%s9825_s7 + $0x3f0] sm:$0xff]  }
 0xde3   : > { %v7901_v37 = vld [vmem:[%s9825_s7 + $0x330] sm:$0xff]  }
 0xde4   : > { %7284 = vmatpush3.bf16.msra.mxu1 %v7853_v26  ;;  %v7902_v26 = vld [vmem:[%s9825_s7 + $0x3b0] sm:$0xff]  }
 0xde5   : > { %7306 = vmatpush3.bf16.msra.mxu0 %v7854_v28  ;;  %7285 = vmatprep.subr.bf16.mxu1 %v7855_v34  ;;  %v7903_v28 = vld [vmem:[%s9825_s7 + $0x378] sm:$0xff]  }
 0xde6   : > { %7307 = vmatprep.subr.bf16.mxu0 %v7856_v36  ;;  %v7904_v34 = vld [vmem:[%s9825_s7 + $0x3f8] sm:$0xff]  }
 0xde7   : > { %v7905_v36 = vld [vmem:[%s9825_s7 + $0x338] sm:$0xff]  }
 0xde8   : > { %7286 = vmatpush3.bf16.msra.mxu1 %v7857_v38  ;;  %v7906_v38 = vld [vmem:[%s9825_s7 + $0x3b8] sm:$0xff]  }
 0xde9   : > { %7308 = vmatpush3.bf16.msra.mxu0 %v7858_v39  ;;  %7287 = vmatprep.subr.bf16.mxu1 %v7859_v40 }
 0xdea   : > { %7309 = vmatprep.subr.bf16.mxu0 %v7860_v41  ;;  %v2268_v41 = vrot.slane %v8469_v30, %v8678_v6 }
 0xdec   : > { %7288 = vmatpush3.bf16.msra.mxu1 %v7861_v42 }
 0xded   : > { %7310 = vmatpush3.bf16.msra.mxu0 %v7862_v35  ;;  %7289 = vmatprep.subr.bf16.mxu1 %v7863_v43 }
 0xdee   : > { %7311 = vmatprep.subr.bf16.mxu0 %v7864_v46 }
 0xdf0   : > { %7290 = vmatpush3.bf16.msra.mxu1 %v7865_v47 }
 0xdf1   : > { %7312 = vmatpush3.bf16.msra.mxu0 %v7866_v48  ;;  %7291 = vmatprep.subr.bf16.mxu1 %v7867_v49 }
 0xdf2   : > { %7313 = vmatprep.subr.bf16.mxu0 %v7868_v50 }
 0xdf4   : > { %7292 = vmatpush3.bf16.msra.mxu1 %v7869_v51 }
 0xdf5   : > { %7314 = vmatpush3.bf16.msra.mxu0 %v7870_v52  ;;  %7293 = vmatprep.subr.bf16.mxu1 %v7871_v53 }
 0xdf6   : > { %7315 = vmatprep.subr.bf16.mxu0 %v7872_v20 }
 0xdf8   : > { %7294 = vmatpush3.bf16.msra.mxu1 %v7873_v54 }
 0xdf9   : > { %7316 = vmatpush3.bf16.msra.mxu0 %v7874_v55  ;;  %7323 = vmatprep.subr.bf16.mxu1 %v7875_v56 }
 0xdfa   : > { %7345 = vmatprep.subr.bf16.mxu0 %v7876_v21 }
 0xdfb   : > { %3234 = vmatmul.mubr.bf16.vlgmr.msra.gmra.mrb[52].mxu1 %v8760_v25  ;;  %v7883_v25 = vld [vmem:[%s9825_s7 + $0x350] sm:$0xff]  }
 0xdfc   : > { %3275 = vmatmul.mubr.bf16.vlgmr.msra.gmra.mrb[52].mxu0 %v8762_v11  ;;  %7324 = vmatpush3.bf16.msra.mxu1 %v7877_v58  ;;  %v7884_v11 = vld [vmem:[%s9825_s7 + $0x3d0] sm:$0xff]  }
 0xdfd   : > { %3315 = vmatprep.mubr.bf16.mxu1 %v8796_v2  ;;  %7346 = vmatpush3.bf16.msra.mxu0 %v7878_v61  ;;  %v7885_v2 = vld [vmem:[%s9825_s7 + $0x310] sm:$0xff]  }
 0xdfe   : > { %3356 = vmatprep.mubr.bf16.mxu0 %v8798_v3  ;;  %7325 = vmatprep.subr.bf16.mxu1 %v7879_v63  ;;  %v7887_v3 = vld [vmem:[%s9825_s7 + $0x358] sm:$0xff]  }
 0xdff   : > { %7347 = vmatprep.subr.bf16.mxu0 %v7880_v0 }
 0xe00   : > { %7326 = vmatpush3.bf16.msra.mxu1 %v7881_v59 }
 0xe01   : > { %7348 = vmatpush3.bf16.msra.mxu0 %v7882_v4  ;;  %7327 = vmatprep.subr.bf16.mxu1 %v7883_v25 }
 0xe02   : > { %7349 = vmatprep.subr.bf16.mxu0 %v7884_v11 }
 0xe04   : > { %7328 = vmatpush3.bf16.msra.mxu1 %v7885_v2 }
 0xe05   : > { %7350 = vmatpush3.bf16.msra.mxu0 %v7886_v7  ;;  %7329 = vmatprep.subr.bf16.mxu1 %v7887_v3 }
 0xe06   : > { %7351 = vmatprep.subr.bf16.mxu0 %v7888_v9 }
 0xe08   : > { %7330 = vmatpush3.bf16.msra.mxu1 %v7889_v14 }
 0xe09   : > { %7352 = vmatpush3.bf16.msra.mxu0 %v7890_v16  ;;  %7331 = vmatprep.subr.bf16.mxu1 %v7891_v17 }
 0xe0a   : > { %7353 = vmatprep.subr.bf16.mxu0 %v7892_v18 }
 0xe0c   : > { %7332 = vmatpush3.bf16.msra.mxu1 %v7893_v19 }
 0xe0d   : > { %7354 = vmatpush3.bf16.msra.mxu0 %v7894_v23  ;;  %7333 = vmatprep.subr.bf16.mxu1 %v7895_v22 }
 0xe0e   : > { %7355 = vmatprep.subr.bf16.mxu0 %v7896_v5 }
 0xe10   : > { %7334 = vmatpush3.bf16.msra.mxu1 %v7897_v8 }
 0xe11   : > { %7356 = vmatpush3.bf16.msra.mxu0 %v7898_v29  ;;  %7335 = vmatprep.subr.bf16.mxu1 %v7899_v31 }
 0xe12   : > { %7357 = vmatprep.subr.bf16.mxu0 %v7900_v12 }
 0xe14   : > { %7336 = vmatpush3.bf16.msra.mxu1 %v7901_v37 }
 0xe15   : > { %7358 = vmatpush3.bf16.msra.mxu0 %v7902_v26  ;;  %7337 = vmatprep.subr.bf16.mxu1 %v7903_v28 }
 0xe16   : > { %7359 = vmatprep.subr.bf16.mxu0 %v7904_v34 }
 0xe18   : > { %7338 = vmatpush3.bf16.msra.mxu1 %v7905_v36 }
 0xe19   : > { %7360 = vmatpush3.bf16.msra.mxu0 %v7906_v38  ;;  %7665 = vmatprep.subr.bf16.mxu1 %v8130_v1 }
 0xe1a   : > { %7673 = vmatprep.subr.bf16.mxu0 %v8130_v1 }
 0xe1b   : > { %3316 = vmatmul.mubr.bf16.vlgmr.msra.gmra.mrb[56].mxu1 %v8792_v60 }
 0xe1c   : > { %3357 = vmatmul.mubr.bf16.vlgmr.msra.gmra.mrb[56].mxu0 %v8794_v62  ;;  %7669 = vmatprep.mubr.msk.bf16.mxu1 %vm8131_vm0, %v8130_v1 }
 0xe1d   : > { %7675 = vmatprep.mubr.msk.bf16.mxu0 %vm8131_vm0, %v8130_v1 }
 0xe8e   : > { %v7207_v39 = vpop.f32.mrb[44].mxu1  ;;  %v7229_v40 = vpop.f32.mrb[44].mxu0 }
 0xe8f   : > { %v7208_v42 = vpop.f32.mrb[45].mxu1  ;;  %v7230_v35 = vpop.f32.mrb[45].mxu0 }
 0xe90   : > { %v7209_v43 = vadd.f32 %v7208_v42, %v7207_v39  ;;  %v7231_v46 = vadd.f32 %v7230_v35, %v7229_v40  ;;  %v7210_v47 = vpop.f32.mrb[46].mxu1  ;;  %v7232_v48 = vpop.f32.mrb[46].mxu0 }
 0xe91   : > { %v7211_v60 = vpop.f32.mrb[47].mxu1  ;;  %v7233_v49 = vpop.f32.mrb[47].mxu0 }
 0xe92   : > { %v3072_v62 = vadd.f32 %v7209_v43, %v2268_v41  ;;  %v7212_v50 = vadd.f32 %v7211_v60, %v7210_v47  ;;  %v7234_v51 = vadd.f32 %v7233_v49, %v7232_v48 }
 0xe94   : > { %v3113_v52 = vadd.f32 %v7231_v46, %v3072_v62  ;;  %v3075_v53 = vadd.f32 %v7212_v50, %v2268_v41 }
 0xe96   : > { %v3116_v20 = vadd.f32 %v7234_v51, %v3075_v53 }
 0xeae   : > { %v7251_v54 = vpop.f32.mrb[48].mxu1  ;;  %v7273_v55 = vpop.f32.mrb[48].mxu0 }
 0xeaf   : > { %v7252_v56 = vpop.f32.mrb[49].mxu1  ;;  %v7274_v21 = vpop.f32.mrb[49].mxu0 }
 0xeb0   : > { %v7253_v58 = vadd.f32 %v7252_v56, %v7251_v54  ;;  %v7275_v30 = vadd.f32 %v7274_v21, %v7273_v55  ;;  %v7254_v61 = vpop.f32.mrb[50].mxu1  ;;  %v7276_v63 = vpop.f32.mrb[50].mxu0 }
 0xeb1   : > { %v7255_v0 = vpop.f32.mrb[51].mxu1  ;;  %v7277_v59 = vpop.f32.mrb[51].mxu0 }
 0xeb2   : > { %v3154_v4 = vadd.f32 %v7253_v58, %v3113_v52  ;;  %v7256_v25 = vadd.f32 %v7255_v0, %v7254_v61  ;;  %v7278_v11 = vadd.f32 %v7277_v59, %v7276_v63  ;;  %v7908_v59 = vld [vmem:[%s9821_s3 + $0x18] sm:$0xff]  }
 0xeb4   : > { %v3195_v2 = vadd.f32 %v7275_v30, %v3154_v4  ;;  %v3157_v7 = vadd.f32 %v7256_v25, %v3116_v20  ;;  %v9044_v4 = vld [vmem:[%s9826_s8 + $0x10] sm:$0xff] }
 0xeb5   : > { %v3772_v25 = vrot.slane %v9044_v4, %v8258_v13 }
 0xeb6   : > { %v3198_v3 = vadd.f32 %v7278_v11, %v3157_v7 }
 0xece   : > { %v7295_v9 = vpop.f32.mrb[52].mxu1 }
 0xecf   : > { %v7317_v14 = vpop.f32.mrb[52].mxu0  ;;  %v7296_v16 = vpop.f32.mrb[53].mxu1 }
 0xed0   : > { %v7297_v17 = vadd.f32 %v7296_v16, %v7295_v9  ;;  %v7318_v18 = vpop.f32.mrb[53].mxu0  ;;  %v7298_v19 = vpop.f32.mrb[54].mxu1 }
 0xed1   : > { %v7319_v23 = vadd.f32 %v7318_v18, %v7317_v14  ;;  %v7320_v22 = vpop.f32.mrb[54].mxu0  ;;  %v7299_v5 = vpop.f32.mrb[55].mxu1 }
 0xed2   : > { %v3236_v8 = vadd.f32 %v7297_v17, %v3195_v2  ;;  %v7300_v29 = vadd.f32 %v7299_v5, %v7298_v19  ;;  %v7321_v31 = vpop.f32.mrb[55].mxu0  ;;  %v8120_v17 = vld [vmem:[%s9826_s8] sm:$0xff] }
 0xed3   : > { %v7322_v12 = vadd.f32 %v7321_v31, %v7320_v22  ;;  %v3396_v18 = vrot.slane %v8120_v17, %v8681_v10 }
 0xed4   : > { %v3277_v37 = vadd.f32 %v7319_v23, %v3236_v8  ;;  %v3239_v26 = vadd.f32 %v7300_v29, %v3198_v3  ;;  %v6666_v8 = vld [vmem:[%s9826_s8 + $0x8] ss:$0 sm:$0xff] }
 0xed6   : > { %v3280_v28 = vadd.f32 %v7322_v12, %v3239_v26 }
 0xeee   : > { %v7339_v34 = vpop.f32.mrb[56].mxu1 }
 0xeef   : > { %v7361_v36 = vpop.f32.mrb[56].mxu0  ;;  %v7340_v38 = vpop.f32.mrb[57].mxu1 }
 0xef0   : > { %v7341_v39 = vadd.f32 %v7340_v38, %v7339_v34  ;;  %v7362_v40 = vpop.f32.mrb[57].mxu0  ;;  %v7342_v41 = vpop.f32.mrb[58].mxu1 }
 0xef1   : > { %v7363_v42 = vadd.f32 %v7362_v40, %v7361_v36  ;;  %v7364_v35 = vpop.f32.mrb[58].mxu0  ;;  %v7343_v43 = vpop.f32.mrb[59].mxu1 }
 0xef2   : > { %v3318_v46 = vadd.f32 %v7341_v39, %v3277_v37  ;;  %v7344_v47 = vadd.f32 %v7343_v43, %v7342_v41  ;;  %v7365_v48 = vpop.f32.mrb[59].mxu0 }
 0xef3   : > { %v7366_v60 = vadd.f32 %v7365_v48, %v7364_v35 }
 0xef4   : > { %v3359_v49 = vadd.f32 %v7363_v42, %v3318_v46  ;;  %v3321_v62 = vadd.f32 %v7344_v47, %v3280_v28  ;;  %v3766_v28 = vrot.slane %v9044_v4, %v8279_v24 }
 0xef6   : > { %v3362_v50 = vadd.f32 %v7366_v60, %v3321_v62  ;;  %v3365_v51 = vadd.f32 %v3359_v49, %v8490_v44 }
 0xef8   : > { %v3367_v52 = vsel %vm779_vm2, %v3365_v51, 0.0  ;;  %v3366_v53 = vadd.f32 %v3362_v50, %v8492_v45  ;;  %v7907_v45 = vld [vmem:[%s9821_s3 + $0x10] sm:$0xff]  }
 0xef9   : > { %3368 = vadd.xlane.f32.xlu1 %v3367_v52  ;;  %7666 = vmatpush3.bf16.msra.mxu1 %v7907_v45  ;;  %v3782_v45 = vrot.slane %v9044_v4, %v8313_v57 }
 0xefa   : > { %v3370_v20 = vsel %vm779_vm2, %v3366_v53, 0.0  ;;  %7667 = vmatprep.subr.bf16.mxu1 %v8130_v1 }
 0xefb   : > { %3371 = vadd.xlane.f32.xlu0 %v3370_v20 }
 0xefd   : > { %7668 = vmatpush3.bf16.msra.mxu1 %v7908_v59 }
 0xefe   : > { %7679 = vmatprep.subr.bf16.mxu1 %v8130_v1 }
 0xf86   : > { %v3369_v54 = vpop.xlane.xlu1 %3368 }
 0xf87   : > { %v3373_v55 = vmul.f32 0.03125, %v3369_v54 }
 0xf88   : > { %v3372_v56 = vpop.xlane.xlu0 %3371 }
 0xf89   : > { %v3375_v21 = vsub.f32 %v3365_v51, %v3373_v55  ;;  %v3374_v58 = vmul.f32 0.03125, %v3372_v56 }
 0xf8b   : > { %v3376_v30 = vsub.f32 %v3366_v53, %v3374_v58  ;;  %v3377_v61 = vmul.f32 %v3375_v21, %v3375_v21 }
 0xf8d   : > { %v3379_v63 = vsel %vm779_vm2, %v3377_v61, 0.0  ;;  %v3378_v0 = vmul.f32 %v3376_v30, %v3376_v30 }
 0xf8e   : > { %3380 = vadd.xlane.f32.xlu1 %v3379_v63 }
 0xf8f   : > { %v3382_v44 = vsel %vm779_vm2, %v3378_v0, 0.0 }
 0xf92   : > { %3383 = vadd.xlane.f32.xlu1 %v3382_v44 }
 0xfa3   : > { %3774 = vrot.lane.b32.xlu1 %v3772_v25, %s8132_s20 }
0x101b   : > { %v3381_v11 = vpop.xlane.xlu1 %3380 }
0x101c   : > { %v3385_v2 = vmul.f32 0.03125, %v3381_v11 }
0x101e   : > { %v3387_v7 = vadd.f32 1e-05, %v3385_v2 }
0x101f   : > { %v3384_v3 = vpop.xlane.xlu1 %3383 }
0x1020   : > { %8075 = vrsqrt.f32 %v3387_v7  ;;  %v3386_v9 = vmul.f32 0.03125, %v3384_v3 }
0x1022   : > { %v3388_v14 = vadd.f32 1e-05, %v3386_v9 }
0x1023   : > { %v3775_v26 = vpop.permute.xlu1 %3774 }
0x1024   : > { %8077 = vrsqrt.f32 %v3388_v14 }
0x102a   : > { %v8076_v16 = vpop.eup %8075 }
0x102b   : > { %v3391_v19 = vmul.f32 %v8076_v16, %v3375_v21 }
0x102d   : > { %v3397_v22 = vmul.f32 %v3396_v18, %v3391_v19 }
0x102e   : > { %v8078_v23 = vpop.eup %8077 }
0x102f   : > { %v3392_v5 = vmul.f32 %v8078_v23, %v3376_v30  ;;  %v9057_v31 = vadd.f32 %v6666_v8, %v3397_v22 }
0x1031   : > { %v3398_v29 = vmul.f32 %v3396_v18, %v3392_v5 }
0x1033   : > { %v9059_v12 = vadd.f32 %v6666_v8, %v3398_v29 }
0x1035   : > { %v3706_v37 = vpack.c.bf16 %v9059_v12, %v9057_v31 }
0x1037   : > { %7670 = vmatmul.mubr.msk.bf16.vlgmr.msra.gmra.mrb[60].mxu1 %vm779_vm2, %v3706_v37 }
0x1038   : > { %7681 = vmatprep.mubr.msk.bf16.mxu1 %vm8131_vm0, %v8130_v1 }
0x110a   : > { %v9068_v34 = vpop.f32.mrb[60].mxu1 }
0x110b   : > { %v3777_v36 = vadd.f32 %v3775_v26, %v9068_v34  ;;  %v7671_v38 = vpop.f32.mrb[61].mxu1  ;;  %v3767_v40 = vadd.f32 %v3766_v28, %v9068_v34 }
0x110c   : > { %v9071_v39 = vpop.f32.mrb[62].mxu1 }
0x110d   : > { %v3768_v41 = vadd.f32 %v3766_v28, %v9071_v39  ;;  %v7672_v42 = vpop.f32.mrb[63].mxu1  ;;  %3792 = vrot.lane.b32.xlu1 %v3777_v36, %s8133_s26  ;;  %v3778_v35 = vadd.f32 %v3775_v26, %v9071_v39 }
0x110f   : > { %v9077_v43 = vpack.c.bf16 %v3768_v41, %v3767_v40 }
0x1111   : > { %3955 = vrot.lane.b32.xlu0 %v9077_v43, %s8134_s27  ;;  %3794 = vrot.lane.b32.xlu1 %v3778_v35, %s8133_s26 }
0x117f   : > { %v3793_v46 = vpop.permute.xlu1 %3792 }
0x1180   : > { %3798 = vxpose.xlu1.b32.start [1/2] (short) (narrow) %v3793_v46, 32 }
0x1183   : > { %v3795_v47 = vpop.permute.xlu1 %3794  ;;  %v3956_v52 = vpop.permute.xlu0 %3955 }
0x1184   : > { %3799 = vxpose.xlu1.b32.end [2/2] (short) (narrow) %v3795_v47, 32 }
0x1200   : > { %v3814_v48 = vpop.trf.xlu1 }
0x1204   : > { %v3815_v60 = vpop.trf.xlu1 }
0x1205   : > { %v3830_v49 = vpack.c.bf16 %v3815_v60, %v3814_v48 }
0x1207   : > { %v3837_v62 = vsel %vm898_vm3, %v3830_v49, 0  ;;  %v3958_v50 = vrot.slane %v3830_v49, 4 }
0x1208   : > { %7674 = vmatpush3.bf16.msra.mxu0 %v3837_v62  ;;  %v9100_v59 = vpop.trf.xlu1 }
0x1209   : > { %7685 = vmatprep.subr.bf16.mxu0 %v8130_v1  ;;  %v3963_v51 = vsel %vm898_vm3, %v3958_v50, 0 }
0x120b   : > { %7676 = vmatmul.mubr.msk.bf16.vlgmr.msra.gmra.mrb[60].mxu0 %vm894_vm4, %v9077_v43 }
0x120c   : > { %7686 = vmatpush3.bf16.msra.mxu0 %v3963_v51  ;;  %7687 = vmatprep.mubr.msk.bf16.mxu0 %vm8131_vm0, %v8130_v1  ;;  %v9102_v25 = vpop.trf.xlu1 }
0x120d   : > { %7697 = vmatprep.subr.bf16.mxu0 %v8130_v1 }
0x1213   : > { %7688 = vmatmul.mubr.msk.bf16.vlgmr.msra.gmra.mrb[64].mxu0 %vm894_vm4, %v3956_v52 }
0x1214   : > { %7699 = vmatprep.mubr.msk.bf16.mxu0 %vm8131_vm0, %v8130_v1 }
0x12de   : > { %v3873_v53 = vpop.f32.mrb[60].mxu0 }
0x12df   : > { %v7677_v20 = vpop.f32.mrb[61].mxu0  ;;  %v3880_v54 = vsel %vm943_vm5, %v3873_v53, -inf }
0x12e0   : > { %3881 = vmax.xlane.f32.xlu0 %v3880_v54  ;;  %v3876_v55 = vpop.f32.mrb[62].mxu0 }
0x12e1   : > { %v7678_v56 = vpop.f32.mrb[63].mxu0  ;;  %v3883_v21 = vsel %vm943_vm5, %v3876_v55, -inf }
0x12e2   : > { %3884 = vmax.xlane.f32.xlu1 %v3883_v21  ;;  %v6968_v21 = vld [vmem:[%s9822_s4 + $0x10] sm:$0xf] }
0x12e6   : > { %v3999_v58 = vpop.f32.mrb[64].mxu0 }
0x12e7   : > { %v7689_v30 = vpop.f32.mrb[65].mxu0  ;;  %v4006_v61 = vsel %vm943_vm5, %v3999_v58, -inf }
0x12e8   : > { %4007 = vmax.xlane.f32.xlu0 %v4006_v61  ;;  %v4002_v63 = vpop.f32.mrb[66].mxu0  ;;  %v6971_v30 = vld [vmem:[%s9822_s4 + $0x14] sm:$0xf] }
0x12e9   : > { %v7690_v0 = vpop.f32.mrb[67].mxu0  ;;  %v4009_v44 = vsel %vm943_vm5, %v4002_v63, -inf  ;;  %v4083_v61 = vsel %vm898_vm3, %v6971_v30, 0 }
0x12ea   : > { %7698 = vmatpush3.bf16.msra.mxu0 %v4083_v61 }
0x12eb   : > { %7709 = vmatprep.subr.bf16.mxu0 %v8130_v1 }
0x12ec   : > { %4010 = vmax.xlane.f32.xlu0 %v4009_v44 }
0x1302   : > { %3784 = vrot.lane.b32.xlu0 %v3782_v45, %s8135_s28 }
0x136d   : > { %v3882_v11 = vpop.xlane.xlu0 %3881 }
0x136e   : > { %v3886_v2 = vsub.f32 %v3873_v53, %v3882_v11 }
0x136f   : > { %v3885_v7 = vpop.xlane.xlu1 %3884 }
0x1370   : > { %v3888_v3 = vmul.f32 1.442695, %v3886_v2  ;;  %v3887_v9 = vsub.f32 %v3876_v55, %v3885_v7  ;;  %v3831_v7 = vpack.c.bf16 %v9102_v25, %v9100_v59 }
0x1372   : > { %8079 = vpow2.f32 %v3888_v3  ;;  %v3890_v14 = vmul.f32 1.442695, %v3887_v9 }
0x1374   : > { %8081 = vpow2.f32 %v3890_v14 }
0x1375   : > { %v4008_v16 = vpop.xlane.xlu0 %4007 }
0x1376   : > { %v4012_v17 = vsub.f32 %v3999_v58, %v4008_v16  ;;  %v4130_v58 = vsel %vm898_vm3, %v6968_v21, 0 }
0x1378   : > { %v4014_v18 = vmul.f32 1.442695, %v4012_v17  ;;  %v4179_v17 = vsel %vm898_vm3, %v3831_v7, 0 }
0x1379   : > { %v4011_v19 = vpop.xlane.xlu0 %4010 }
0x137a   : > { %8083 = vpow2.f32 %v4014_v18  ;;  %v4013_v23 = vsub.f32 %v4002_v63, %v4011_v19 }
0x137c   : > { %v8080_v22 = vpop.eup %8079  ;;  %v4016_v5 = vmul.f32 1.442695, %v4013_v23 }
0x137d   : > { %v3785_v8 = vpop.permute.xlu0 %3784  ;;  %v3892_v29 = vsel %vm943_vm5, %v8080_v22, 0.0 }
0x137e   : > { %v8082_v37 = vpop.eup %8081  ;;  %8085 = vpow2.f32 %v4016_v5  ;;  %v3787_v26 = vadd.f32 %v3785_v8, %v9068_v34  ;;  %v3788_v28 = vadd.f32 %v3785_v8, %v9071_v39  ;;  %3893 = vadd.xlane.f32.xlu0 %v3892_v29 }
0x137f   : > { %v3895_v36 = vsel %vm943_vm5, %v8082_v37, 0.0 }
0x1380   : > { %v9108_v38 = vpack.c.bf16 %v3788_v28, %v3787_v26  ;;  %3896 = vadd.xlane.f32.xlu1 %v3895_v36 }
0x1384   : > { %v8084_v40 = vpop.eup %8083 }
0x1385   : > { %v4018_v41 = vsel %vm943_vm5, %v8084_v40, 0.0 }
0x1386   : > { %4019 = vadd.xlane.f32.xlu1 %v4018_v41 }
0x1388   : > { %v8086_v42 = vpop.eup %8085 }
0x1389   : > { %v4021_v35 = vsel %vm943_vm5, %v8086_v42, 0.0 }
0x138a   : > { %4022 = vadd.xlane.f32.xlu1 %v4021_v35 }
0x1394   : > { %4029 = vrot.lane.b32.xlu0 %v9108_v38, %s8137_s30  ;;  %s9833_s30 = smov 104  }
0x139b   : > { %3904 = vrot.lane.b32.xlu1 %v9108_v38, %s8135_s28 }
0x139f   : > { %4173 = vrot.lane.b32.xlu1 %v9077_v43, %s8136_s29 }
0x140b   : > { %v3894_v34 = vpop.xlane.xlu0 %3893 }
0x140c   : > { %8087 = vrcp.f32 %v3894_v34 }
0x140d   : > { %v3897_v39 = vpop.xlane.xlu1 %3896 }
0x140e   : > { %8089 = vrcp.f32 %v3897_v39 }
0x140f   : > { %v4030_v52 = vpop.permute.xlu0 %4029 }
0x1413   : > { %v4020_v46 = vpop.xlane.xlu1 %4019 }
0x1414   : > { %8091 = vrcp.f32 %v4020_v46 }
0x1416   : > { %v8088_v47 = vpop.eup %8087 }
0x1417   : > { %v4023_v48 = vpop.xlane.xlu1 %4022  ;;  %v3900_v62 = vmul.f32 %v8088_v47, %v8080_v22 }
0x1418   : > { %v8090_v60 = vpop.eup %8089  ;;  %8093 = vrcp.f32 %v4023_v48 }
0x1419   : > { %v3901_v49 = vmul.f32 %v8090_v60, %v8082_v37 }
0x141b   : > { %v3905_v50 = vpop.permute.xlu1 %3904  ;;  %v3902_v51 = vpack.c.bf16 %v3901_v49, %v3900_v62 }
0x141c   : > { %7680 = vmatpush3.bf16.msra.mxu1 %v3905_v50 }
0x141d   : > { %7691 = vmatprep.subr.bf16.mxu1 %v8130_v1 }
0x141e   : > { %v8092_v53 = vpop.eup %8091 }
0x141f   : > { %7682 = vmatmul.mubr.msk.bf16.vlgmr.msra.gmra.mrb[64].mxu1 %vm943_vm5, %v3902_v51  ;;  %v4026_v54 = vmul.f32 %v8092_v53, %v8084_v40  ;;  %v4174_v18 = vpop.permute.xlu1 %4173 }
0x1420   : > { %7692 = vmatpush3.bf16.msra.mxu1 %v4030_v52  ;;  %7693 = vmatprep.mubr.msk.bf16.mxu1 %vm8131_vm0, %v8130_v1 }
0x1421   : > { %7703 = vmatprep.subr.bf16.mxu1 %v8130_v1 }
0x1422   : > { %v8094_v20 = vpop.eup %8093 }
0x1423   : > { %v4027_v55 = vmul.f32 %v8094_v20, %v8086_v42 }
0x1425   : > { %v4028_v56 = vpack.c.bf16 %v4027_v55, %v4026_v54 }
0x1427   : > { %7694 = vmatmul.mubr.msk.bf16.vlgmr.msra.gmra.mrb[68].mxu1 %vm943_vm5, %v4028_v56  ;;  %v4347_v56 = vrot.slane %v3831_v7, 4 }
0x1428   : > { %7705 = vmatprep.mubr.msk.bf16.mxu1 %vm8131_vm0, %v8130_v1  ;;  %7704 = vmatpush3.bf16.msra.mxu1 %v4130_v58 }
0x1429   : > { %7715 = vmatprep.subr.bf16.mxu1 %v8130_v1  ;;  %v4352_v61 = vsel %vm898_vm3, %v4347_v56, 0 }
0x14f2   : > { %v3944_v63 = vpop.f32.mrb[64].mxu1 }
0x14f3   : > { %v7683_v0 = vpop.f32.mrb[65].mxu1 }
0x14f4   : > { %v3947_v44 = vpop.f32.mrb[66].mxu1 }
0x14f5   : > { %v3953_v45 = vpack.c.bf16 %v3947_v44, %v3944_v63  ;;  %v7684_v11 = vpop.f32.mrb[67].mxu1  ;;  %v6976_v63 = vld [vmem:[%s9822_s4 + $0x18] sm:$0xf] }
0x14f6   : > { %v4299_v0 = vsel %vm898_vm3, %v6976_v63, 0 }
0x14f7   : > { %7706 = vmatmul.mubr.msk.bf16.vlgmr.msra.gmra.mrb[72].mxu1 %vm894_vm4, %v3953_v45 }
0x14f8   : > { %7717 = vmatprep.mubr.msk.bf16.mxu1 %vm8131_vm0, %v8130_v1 }
0x14fa   : > { %v4069_v2 = vpop.f32.mrb[68].mxu1 }
0x14fb   : > { %v7695_v3 = vpop.f32.mrb[69].mxu1 }
0x14fc   : > { %v4072_v9 = vpop.f32.mrb[70].mxu1 }
0x14fd   : > { %v4078_v14 = vpack.c.bf16 %v4072_v9, %v4069_v2  ;;  %v7696_v16 = vpop.f32.mrb[71].mxu1 }
0x14ff   : > { %7700 = vmatmul.mubr.msk.bf16.vlgmr.msra.gmra.mrb[68].mxu0 %vm894_vm4, %v4078_v14 }
0x1500   : > { %7710 = vmatpush3.bf16.msra.mxu0 %v4179_v17  ;;  %7711 = vmatprep.mubr.msk.bf16.mxu0 %vm8131_vm0, %v8130_v1 }
0x1501   : > { %7721 = vmatprep.subr.bf16.mxu0 %v8130_v1 }
0x1507   : > { %7712 = vmatmul.mubr.msk.bf16.vlgmr.msra.gmra.mrb[72].mxu0 %vm894_vm4, %v4174_v18 }
0x1508   : > { %7723 = vmatprep.mubr.msk.bf16.mxu0 %vm8131_vm0, %v8130_v1  ;;  %7722 = vmatpush3.bf16.msra.mxu0 %v4299_v0 }
0x1509   : > { %7733 = vmatprep.subr.bf16.mxu0 %v8130_v1 }
0x15ca   : > { %v4166_v59 = vpop.f32.mrb[72].mxu1 }
0x15cb   : > { %v7707_v25 = vpop.f32.mrb[73].mxu1 }
0x15cc   : > { %v4169_v19 = vpop.f32.mrb[74].mxu1 }
0x15cd   : > { %v7708_v23 = vpop.f32.mrb[75].mxu1 }
0x15d2   : > { %v4119_v22 = vpop.f32.mrb[68].mxu0 }
0x15d3   : > { %v9149_v5 = vadd.f32 %v4166_v59, %v4119_v22  ;;  %v7701_v8 = vpop.f32.mrb[69].mxu0 }
0x15d4   : > { %v4122_v29 = vpop.f32.mrb[70].mxu0 }
0x15d5   : > { %v9151_v37 = vadd.f32 %v4169_v19, %v4122_v29  ;;  %v7702_v26 = vpop.f32.mrb[71].mxu0 }
0x15da   : > { %v4215_v28 = vpop.f32.mrb[72].mxu0 }
0x15db   : > { %v7713_v36 = vpop.f32.mrb[73].mxu0  ;;  %v4222_v40 = vsel %vm943_vm5, %v4215_v28, -inf }
0x15dc   : > { %4223 = vmax.xlane.f32.xlu1 %v4222_v40  ;;  %v4218_v41 = vpop.f32.mrb[74].mxu0 }
0x15dd   : > { %v7714_v42 = vpop.f32.mrb[75].mxu0  ;;  %v4225_v35 = vsel %vm943_vm5, %v4218_v41, -inf }
0x15de   : > { %4226 = vmax.xlane.f32.xlu0 %v4225_v35 }
0x1669   : > { %v4224_v34 = vpop.xlane.xlu1 %4223 }
0x166a   : > { %v4228_v39 = vsub.f32 %v4215_v28, %v4224_v34 }
0x166b   : > { %v4227_v46 = vpop.xlane.xlu0 %4226 }
0x166c   : > { %v4230_v47 = vmul.f32 1.442695, %v4228_v39  ;;  %v4229_v48 = vsub.f32 %v4218_v41, %v4227_v46 }
0x166e   : > { %8095 = vpow2.f32 %v4230_v47  ;;  %v4232_v60 = vmul.f32 1.442695, %v4229_v48 }
0x1670   : > { %8097 = vpow2.f32 %v4232_v60 }
0x1678   : > { %v8096_v49 = vpop.eup %8095 }
0x1679   : > { %v4234_v62 = vsel %vm943_vm5, %v8096_v49, 0.0 }
0x167a   : > { %v8098_v50 = vpop.eup %8097  ;;  %4235 = vadd.xlane.f32.xlu1 %v4234_v62 }
0x167b   : > { %v4237_v51 = vsel %vm943_vm5, %v8098_v50, 0.0 }
0x167c   : > { %4238 = vadd.xlane.f32.xlu0 %v4237_v51 }
0x168b   : > { %4245 = vrot.lane.b32.xlu1 %v9108_v38, %s8139_s19 }
0x1692   : > { %4344 = vrot.lane.b32.xlu0 %v9077_v43, %s9833_s30  ;;  %s9835_s30 = sshll.u32 %s9837_s18, 4 }
0x1707   : > { %v4236_v52 = vpop.xlane.xlu1 %4235 }
0x1708   : > { %8099 = vrcp.f32 %v4236_v52 }
0x1709   : > { %v4239_v53 = vpop.xlane.xlu0 %4238 }
0x170a   : > { %8101 = vrcp.f32 %v4239_v53 }
0x170b   : > { %v4246_v20 = vpop.permute.xlu1 %4245 }
0x170c   : > { %7716 = vmatpush3.bf16.msra.mxu1 %v4246_v20 }
0x170d   : > { %7727 = vmatprep.subr.bf16.mxu1 %v8130_v1  ;;  %v4345_v43 = vpop.permute.xlu0 %4344 }
0x1712   : > { %v8100_v54 = vpop.eup %8099 }
0x1713   : > { %v4242_v21 = vmul.f32 %v8100_v54, %v8096_v49 }
0x1714   : > { %v8102_v55 = vpop.eup %8101 }
0x1715   : > { %v4243_v58 = vmul.f32 %v8102_v55, %v8098_v50  ;;  %v4520_v55 = vrot.slane %v9044_v4, %v8415_v32 }
0x1717   : > { %v4244_v30 = vpack.c.bf16 %v4243_v58, %v4242_v21 }
0x1719   : > { %7718 = vmatmul.mubr.msk.bf16.vlgmr.msra.gmra.mrb[76].mxu1 %vm943_vm5, %v4244_v30 }
0x171a   : > { %7728 = vmatpush3.bf16.msra.mxu1 %v4352_v61  ;;  %7729 = vmatprep.mubr.msk.bf16.mxu1 %vm8131_vm0, %v8130_v1 }
0x171b   : > { %7739 = vmatprep.subr.bf16.mxu1 %v8130_v1 }
0x1721   : > { %7730 = vmatmul.mubr.msk.bf16.vlgmr.msra.gmra.mrb[80].mxu1 %vm894_vm4, %v4345_v43 }
0x1722   : > { %7741 = vmatprep.mubr.msk.bf16.mxu1 %vm8131_vm0, %v8130_v1 }
0x17ec   : > { %v4285_v44 = vpop.f32.mrb[76].mxu1 }
0x17ed   : > { %v7719_v45 = vpop.f32.mrb[77].mxu1 }
0x17ee   : > { %v4288_v11 = vpop.f32.mrb[78].mxu1 }
0x17ef   : > { %v4294_v2 = vpack.c.bf16 %v4288_v11, %v4285_v44  ;;  %v7720_v7 = vpop.f32.mrb[79].mxu1 }
0x17f1   : > { %7724 = vmatmul.mubr.msk.bf16.vlgmr.msra.gmra.mrb[76].mxu0 %vm894_vm4, %v4294_v2 }
0x17f2   : > { %7735 = vmatprep.mubr.msk.bf16.mxu0 %vm8131_vm0, %v8130_v1 }
0x17f4   : > { %v4388_v3 = vpop.f32.mrb[80].mxu1 }
0x17f5   : > { %v7731_v9 = vpop.f32.mrb[81].mxu1  ;;  %v4395_v14 = vsel %vm943_vm5, %v4388_v3, -inf }
0x17f6   : > { %4396 = vmax.xlane.f32.xlu1 %v4395_v14  ;;  %v4391_v16 = vpop.f32.mrb[82].mxu1 }
0x17f7   : > { %v7732_v17 = vpop.f32.mrb[83].mxu1  ;;  %v4398_v18 = vsel %vm943_vm5, %v4391_v16, -inf }
0x17f8   : > { %4399 = vmax.xlane.f32.xlu0 %v4398_v18 }
0x1883   : > { %v4397_v59 = vpop.xlane.xlu1 %4396 }
0x1884   : > { %v4401_v25 = vsub.f32 %v4388_v3, %v4397_v59 }
0x1885   : > { %v4400_v19 = vpop.xlane.xlu0 %4399 }
0x1886   : > { %v4403_v23 = vmul.f32 1.442695, %v4401_v25  ;;  %v4402_v22 = vsub.f32 %v4391_v16, %v4400_v19  ;;  %v6679_v19 = vld [vmem:[%s9823_s5 + $0x140] sm:$0xff] }
0x1888   : > { %8103 = vpow2.f32 %v4403_v23  ;;  %v4405_v8 = vmul.f32 1.442695, %v4402_v22  ;;  %v6672_v23 = vld [vmem:[%s9823_s5 + $0x108] sm:$0xff] }
0x188a   : > { %8105 = vpow2.f32 %v4405_v8  ;;  %v6680_v8 = vld [vmem:[%s9823_s5 + $0x148] sm:$0xff] }
0x1892   : > { %v8104_v29 = vpop.eup %8103 }
0x1893   : > { %v4407_v26 = vsel %vm943_vm5, %v8104_v29, 0.0 }
0x1894   : > { %v8106_v28 = vpop.eup %8105  ;;  %4408 = vadd.xlane.f32.xlu1 %v4407_v26  ;;  %v6984_v26 = vcombine.low %v6672_v23, %v6680_v8 }
0x1895   : > { %v4410_v36 = vsel %vm943_vm5, %v8106_v28, 0.0 }
0x1896   : > { %4411 = vadd.xlane.f32.xlu0 %v4410_v36  ;;  %v6687_v36 = vld [vmem:[%s9823_s5 + $0x180] sm:$0xff] }
0x18a5   : > { %4418 = vrot.lane.b32.xlu1 %v9108_v38, %s9834_s16  ;;  %v6980_v38 = vld [vmem:[%s9822_s4 + $0x1c] sm:$0xf]  ;;  %s386_s16 = scalar_lea.vmem %s9829_s11, %s9835_s30 }
0x18c4   : > { %v4335_v40 = vpop.f32.mrb[76].mxu0 }
0x18c5   : > { %v4342_v41 = vadd.f32 %v4335_v40, %v9149_v5  ;;  %v7725_v42 = vpop.f32.mrb[77].mxu0  ;;  %v4472_v5 = vsel %vm898_vm3, %v6980_v38, 0  ;;  %v6695_v40 = vld [vmem:[%s9823_s5 + $0x1c0] sm:$0xff] }
0x18c6   : > { %v4338_v35 = vpop.f32.mrb[78].mxu0  ;;  %7740 = vmatpush3.bf16.msra.mxu1 %v4472_v5  ;;  %v6999_v42 = vcombine.high %v6687_v36, %v6695_v40 }
0x18c7   : > { %v4343_v34 = vadd.f32 %v4338_v35, %v9151_v37  ;;  %v7726_v39 = vpop.f32.mrb[79].mxu0  ;;  %v6696_v35 = vld [vmem:[%s9823_s5 + $0x1c8] sm:$0xff] }
0x1921   : > { %v4409_v46 = vpop.xlane.xlu1 %4408 }
0x1922   : > { %8107 = vrcp.f32 %v4409_v46 }
0x1923   : > { %v4412_v47 = vpop.xlane.xlu0 %4411 }
0x1924   : > { %8109 = vrcp.f32 %v4412_v47  ;;  %v6673_v47 = vld [vmem:[%s9823_s5 + $0x110] sm:$0xff] }
0x1925   : > { %v4419_v48 = vpop.permute.xlu1 %4418 }
0x1926   : > { %7734 = vmatpush3.bf16.msra.mxu0 %v4419_v48  ;;  %v6681_v48 = vld [vmem:[%s9823_s5 + $0x150] sm:$0xff] }
0x192c   : > { %v8108_v60 = vpop.eup %8107 }
0x192d   : > { %v4415_v62 = vmul.f32 %v8108_v60, %v8104_v29  ;;  %v6674_v60 = vld [vmem:[%s9823_s5 + $0x118] sm:$0xff] }
0x192e   : > { %v8110_v49 = vpop.eup %8109 }
0x192f   : > { %v4416_v50 = vmul.f32 %v8110_v49, %v8106_v28  ;;  %v6985_v28 = vcombine.high %v6672_v23, %v6680_v8  ;;  %v6986_v49 = vcombine.low %v6673_v47, %v6681_v48  ;;  %v6699_v23 = vld [vmem:[%s9823_s5 + $0x1e0] sm:$0xff]  ;;  %v6700_v8 = vld [vmem:[%s9823_s5 + $0x1e8] sm:$0xff] }
0x1931   : > { %v4417_v51 = vpack.c.bf16 %v4416_v50, %v4415_v62  ;;  %4852 = vmatprep.subr.bf16.mxu1 %v6985_v28  ;;  %v6987_v62 = vcombine.high %v6673_v47, %v6681_v48  ;;  %v6682_v50 = vld [vmem:[%s9823_s5 + $0x158] sm:$0xff]  ;;  %v6693_v48 = vld [vmem:[%s9823_s5 + $0x1b0] sm:$0xff] }
0x1932   : > { %v6989_v38 = vcombine.high %v6674_v60, %v6682_v50 }
0x1933   : > { %7736 = vmatmul.mubr.msk.bf16.vlgmr.msra.gmra.mrb[80].mxu0 %vm943_vm5, %v4417_v51  ;;  %v6988_v51 = vcombine.low %v6674_v60, %v6682_v50  ;;  %v6701_v60 = vld [vmem:[%s9823_s5 + $0x1f0] sm:$0xff] }
0x1934   : > { %4841 = vmatprep.mubr.bf16.mxu0 %v8141_v15 }
0x1a06   : > { %v4458_v37 = vpop.f32.mrb[80].mxu0 }
0x1a07   : > { %v7737_v52 = vpop.f32.mrb[81].mxu0 }
0x1a08   : > { %v4461_v53 = vpop.f32.mrb[82].mxu0 }
0x1a09   : > { %v4467_v20 = vpack.c.bf16 %v4461_v53, %v4458_v37  ;;  %v7738_v54 = vpop.f32.mrb[83].mxu0 }
0x1a0b   : > { %7742 = vmatmul.mubr.msk.bf16.vlgmr.msra.gmra.mrb[84].mxu1 %vm894_vm4, %v4467_v20 }
0x1a0c   : > { %4884 = vmatprep.mubr.bf16.mxu1 %v8141_v15  ;;  %4853 = vmatpush1.bf16.msra.mxu1 %v6984_v26 }
0x1ade   : > { %v4508_v56 = vpop.f32.mrb[84].mxu1 }
0x1adf   : > { %v4515_v21 = vadd.f32 %v4508_v56, %v4342_v41  ;;  %v7743_v58 = vpop.f32.mrb[85].mxu1  ;;  %v6688_v41 = vld [vmem:[%s9823_s5 + $0x188] sm:$0xff]  ;;  %v4554_v56 = vrot.slane %v9044_v4, %v8464_v27 }
0x1ae0   : > { %v4511_v30 = vpop.f32.mrb[86].mxu1  ;;  %v7000_v39 = vcombine.low %v6688_v41, %v6696_v35  ;;  %v7001_v46 = vcombine.high %v6688_v41, %v6696_v35  ;;  %v6685_v41 = vld [vmem:[%s9823_s5 + $0x170] sm:$0xff]  ;;  %v6686_v35 = vld [vmem:[%s9823_s5 + $0x178] sm:$0xff] }
0x1ae1   : > { %v4521_v61 = vadd.f32 %v4520_v55, %v4515_v21  ;;  %v4516_v43 = vadd.f32 %v4511_v30, %v4343_v34  ;;  %v7744_v63 = vpop.f32.mrb[87].mxu1  ;;  %v6998_v34 = vcombine.low %v6687_v36, %v6695_v40  ;;  %v4560_v30 = vrot.slane %v9044_v4, %v8474_v33  ;;  %v6677_v40 = vld [vmem:[%s9823_s5 + $0x130] sm:$0xff] }
0x1ae2   : > { %4854 = vmatprep.subr.bf16.mxu1 %v7001_v46  ;;  %v6995_v46 = vcombine.high %v6677_v40, %v6685_v41  ;;  %v6994_v50 = vcombine.low %v6677_v40, %v6685_v41 }
0x1ae3   : > { %v4522_v0 = vadd.f32 %v4520_v55, %v4516_v43  ;;  %v4523_v44 = vadd.f32 %v4521_v61, %v9057_v31  ;;  %4855 = vmatpush1.bf16.msra.mxu1 %v7000_v39 }
0x1ae4   : > { %4938 = vmatprep.subr.bf16.mxu1 %v6989_v38  ;;  %v7011_v38 = vcombine.high %v6693_v48, %v6701_v60 }
0x1ae5   : > { %v4525_v45 = vsel %vm779_vm2, %v4523_v44, 0.0  ;;  %v4524_v11 = vadd.f32 %v4522_v0, %v9059_v12  ;;  %v6671_v12 = vld [vmem:[%s9823_s5 + $0x100] sm:$0xff]  ;;  %v6689_v0 = vld [vmem:[%s9823_s5 + $0x190] sm:$0xff] }
0x1ae6   : > { %4526 = vadd.xlane.f32.xlu0 %v4525_v45  ;;  %v6983_v22 = vcombine.high %v6671_v12, %v6679_v19  ;;  %v6982_v29 = vcombine.low %v6671_v12, %v6679_v19  ;;  %v6690_v45 = vld [vmem:[%s9823_s5 + $0x198] sm:$0xff]  ;;  %v6691_v19 = vld [vmem:[%s9823_s5 + $0x1a0] sm:$0xff] }
0x1ae7   : > { %v4528_v2 = vsel %vm779_vm2, %v4524_v11, 0.0  ;;  %v7007_v28 = vcombine.high %v6691_v19, %v6699_v23 }
0x1ae8   : > { %4809 = vmatprep.subr.bf16.mxu0 %v6983_v22  ;;  %v6692_v22 = vld [vmem:[%s9823_s5 + $0x1a8] sm:$0xff] }
0x1ae9   : > { %4810 = vmatpush1.bf16.msra.mxu0 %v6982_v29  ;;  %v7009_v36 = vcombine.high %v6692_v22, %v6700_v8  ;;  %v7008_v39 = vcombine.low %v6692_v22, %v6700_v8  ;;  %v7938_v22 = vld [vmem:[%s9825_s7 + $0x4f8] sm:$0xff]  }
0x1aea   : > { %4529 = vadd.xlane.f32.xlu0 %v4528_v2  ;;  %4811 = vmatprep.subr.bf16.mxu0 %v6999_v42  ;;  %v6678_v42 = vld [vmem:[%s9823_s5 + $0x138] sm:$0xff] }
0x1aeb   : > { %v6997_v47 = vcombine.high %v6678_v42, %v6686_v35  ;;  %v7939_v8 = vld [vmem:[%s9825_s7 + $0x438] sm:$0xff]  }
0x1aed   : > { %4812 = vmatpush1.bf16.msra.mxu0 %v6998_v34  ;;  %v7006_v34 = vcombine.low %v6691_v19, %v6699_v23  ;;  %v7936_v19 = vld [vmem:[%s9825_s7 + $0x4b0] sm:$0xff]   ;;  %v7937_v23 = vld [vmem:[%s9825_s7 + $0x478] sm:$0xff]  }
0x1aee   : > { %4895 = vmatprep.subr.bf16.mxu0 %v6987_v62  ;;  %v6702_v62 = vld [vmem:[%s9823_s5 + $0x1f8] sm:$0xff] }
0x1b73   : > { %v4527_v7 = vpop.xlane.xlu0 %4526 }
0x1b74   : > { %v4531_v3 = vmul.f32 0.03125, %v4527_v7 }
0x1b76   : > { %v4533_v9 = vsub.f32 %v4523_v44, %v4531_v3  ;;  %v6697_v44 = vld [vmem:[%s9823_s5 + $0x1d0] sm:$0xff] }
0x1b77   : > { %v4530_v14 = vpop.xlane.xlu0 %4529  ;;  %v7003_v3 = vcombine.high %v6689_v0, %v6697_v44 }
0x1b78   : > { %v4532_v16 = vmul.f32 0.03125, %v4530_v14  ;;  %v4535_v17 = vmul.f32 %v4533_v9, %v4533_v9  ;;  %v6675_v14 = vld [vmem:[%s9823_s5 + $0x120] sm:$0xff] }
0x1b7a   : > { %v4534_v18 = vsub.f32 %v4524_v11, %v4532_v16  ;;  %v4537_v59 = vsel %vm779_vm2, %v4535_v17, 0.0  ;;  %v6698_v11 = vld [vmem:[%s9823_s5 + $0x1d8] sm:$0xff]  ;;  %v6683_v16 = vld [vmem:[%s9823_s5 + $0x160] sm:$0xff]  ;;  %v6676_v17 = vld [vmem:[%s9823_s5 + $0x128] sm:$0xff] }
0x1b7b   : > { %4538 = vadd.xlane.f32.xlu0 %v4537_v59  ;;  %v7002_v59 = vcombine.low %v6689_v0, %v6697_v44  ;;  %v6990_v29 = vcombine.low %v6675_v14, %v6683_v16  ;;  %v7921_v0 = vld [vmem:[%s9825_s7 + $0x458] sm:$0xff]  }
0x1b7c   : > { %v4536_v25 = vmul.f32 %v4534_v18, %v4534_v18  ;;  %v7922_v44 = vld [vmem:[%s9825_s7 + $0x4d8] sm:$0xff]  }
0x1b7e   : > { %v4540_v31 = vsel %vm779_vm2, %v4536_v25, 0.0  ;;  %v7004_v25 = vcombine.low %v6690_v45, %v6698_v11 }
0x1b7f   : > { %4541 = vadd.xlane.f32.xlu0 %v4540_v31  ;;  %v6991_v31 = vcombine.high %v6675_v14, %v6683_v16  ;;  %v7928_v14 = vld [vmem:[%s9825_s7 + $0x4a0] sm:$0xff]   ;;  %v7929_v16 = vld [vmem:[%s9825_s7 + $0x468] sm:$0xff]  }
0x1c08   : > { %v4539_v5 = vpop.xlane.xlu0 %4538 }
0x1c09   : > { %v4543_v37 = vmul.f32 0.03125, %v4539_v5 }
0x1c0b   : > { %v4545_v52 = vadd.f32 1e-05, %v4543_v37  ;;  %v7010_v37 = vcombine.low %v6693_v48, %v6701_v60 }
0x1c0c   : > { %v4542_v53 = vpop.xlane.xlu0 %4541 }
0x1c0d   : > { %8111 = vrsqrt.f32 %v4545_v52  ;;  %v4544_v20 = vmul.f32 0.03125, %v4542_v53  ;;  %v7909_v53 = vld [vmem:[%s9825_s7 + $0x440] sm:$0xff]  }
0x1c0f   : > { %v4546_v54 = vadd.f32 1e-05, %v4544_v20  ;;  %v7910_v20 = vld [vmem:[%s9825_s7 + $0x4c0] sm:$0xff]  }
0x1c11   : > { %8113 = vrsqrt.f32 %v4546_v54  ;;  %v7911_v54 = vld [vmem:[%s9825_s7 + $0x400] sm:$0xff]  }
0x1c17   : > { %v8112_v55 = vpop.eup %8111 }
0x1c18   : > { %v4549_v21 = vmul.f32 %v8112_v55, %v4533_v9  ;;  %v7005_v9 = vcombine.high %v6690_v45, %v6698_v11  ;;  %v7912_v55 = vld [vmem:[%s9825_s7 + $0x480] sm:$0xff]   ;;  %v7923_v45 = vld [vmem:[%s9825_s7 + $0x418] sm:$0xff]  }
0x1c19   : > { %v7924_v11 = vld [vmem:[%s9825_s7 + $0x498] sm:$0xff]  }
0x1c1a   : > { %v4555_v61 = vmul.f32 %v4554_v56, %v4549_v21  ;;  %v7915_v21 = vld [vmem:[%s9825_s7 + $0x408] sm:$0xff]  }
0x1c1b   : > { %v8114_v58 = vpop.eup %8113 }
0x1c1c   : > { %v4550_v43 = vmul.f32 %v8114_v58, %v4534_v18  ;;  %v9254_v4 = vadd.f32 %v4560_v30, %v4555_v61  ;;  %v6684_v18 = vld [vmem:[%s9823_s5 + $0x168] sm:$0xff]  ;;  %v7918_v61 = vld [vmem:[%s9825_s7 + $0x4d0] sm:$0xff]  }
0x1c1d   : > { %v6993_v12 = vcombine.high %v6676_v17, %v6684_v18  ;;  %v6992_v26 = vcombine.low %v6676_v17, %v6684_v18  ;;  %v7916_v58 = vld [vmem:[%s9825_s7 + $0x488] sm:$0xff]  }
0x1c1e   : > { %v4556_v63 = vmul.f32 %v4554_v56, %v4550_v43  ;;  %v7913_v56 = vld [vmem:[%s9825_s7 + $0x448] sm:$0xff]   ;;  %v7919_v43 = vld [vmem:[%s9825_s7 + $0x410] sm:$0xff]  }
0x1c1f   : > { %v7930_v17 = vld [vmem:[%s9825_s7 + $0x4e8] sm:$0xff]  }
0x1c20   : > { %v9256_v2 = vadd.f32 %v4560_v30, %v4556_v63  ;;  %v7917_v30 = vld [vmem:[%s9825_s7 + $0x450] sm:$0xff]   ;;  %v7931_v18 = vld [vmem:[%s9825_s7 + $0x428] sm:$0xff]  }
0x1c21   : > { %v7920_v63 = vld [vmem:[%s9825_s7 + $0x490] sm:$0xff]  }
0x1c22   : > { %v9260_v7 = vpack.c.bf16 %v9256_v2, %v9254_v4 }
0x1c24   : > { %7014 = vmatmul.mubr.msk.bf16.vlgmr.msra.gmra.mrb[84].mxu0 %vm779_vm2, %v9260_v7  ;;  %7015 = vmatmul.mubr.msk.bf16.vlgmr.msra.gmra.mrb[88].mxu1 %vm779_vm2, %v9260_v7 }
0x1c25   : > { %4896 = vmatpush1.bf16.msra.mxu0 %v6986_v49  ;;  %4939 = vmatpush1.bf16.msra.mxu1 %v6988_v51  ;;  %v6694_v49 = vld [vmem:[%s9823_s5 + $0x1b8] sm:$0xff]  ;;  %v6996_v51 = vcombine.low %v6678_v42, %v6686_v35 }
0x1c26   : > { %4897 = vmatprep.subr.bf16.mxu0 %v7003_v3  ;;  %4940 = vmatprep.subr.bf16.mxu1 %v7005_v9  ;;  %v7013_v5 = vcombine.high %v6694_v49, %v6702_v62  ;;  %v7012_v52 = vcombine.low %v6694_v49, %v6702_v62  ;;  %v7926_v3 = vld [vmem:[%s9825_s7 + $0x4e0] sm:$0xff]  }
0x1c27   : > { %4927 = vmatprep.mubr.bf16.mxu0 %v8141_v15  ;;  %4970 = vmatprep.mubr.bf16.mxu1 %v8141_v15  ;;  %v7927_v9 = vld [vmem:[%s9825_s7 + $0x420] sm:$0xff]  }
0x1c29   : > { %4898 = vmatpush1.bf16.msra.mxu0 %v7002_v59  ;;  %4941 = vmatpush1.bf16.msra.mxu1 %v7004_v25  ;;  %v7932_v59 = vld [vmem:[%s9825_s7 + $0x4a8] sm:$0xff]   ;;  %v7933_v25 = vld [vmem:[%s9825_s7 + $0x470] sm:$0xff]  }
0x1c2a   : > { %4981 = vmatprep.subr.bf16.mxu0 %v6991_v31  ;;  %5024 = vmatprep.subr.bf16.mxu1 %v6993_v12  ;;  %v7934_v31 = vld [vmem:[%s9825_s7 + $0x4f0] sm:$0xff]  }
0x1c2b   : > { %v7935_v12 = vld [vmem:[%s9825_s7 + $0x430] sm:$0xff]  }
0x1c2c   : > { %7016 = vmatmul.mubr.msk.bf16.vlgmr.msra.gmra.mrb[88].mxu0 %vm779_vm2, %v9260_v7  ;;  %7017 = vmatmul.mubr.msk.bf16.vlgmr.msra.gmra.mrb[92].mxu1 %vm779_vm2, %v9260_v7 }
0x1c2d   : > { %4982 = vmatpush1.bf16.msra.mxu0 %v6990_v29  ;;  %5025 = vmatpush1.bf16.msra.mxu1 %v6992_v26  ;;  %v7940_v29 = vld [vmem:[%s9825_s7 + $0x4b8] sm:$0xff]   ;;  %v7941_v26 = vld [vmem:[%s9825_s7 + $0x540] sm:$0xff]  }
0x1c2e   : > { %4983 = vmatprep.subr.bf16.mxu0 %v7007_v28  ;;  %5026 = vmatprep.subr.bf16.mxu1 %v7009_v36  ;;  %v7942_v28 = vld [vmem:[%s9825_s7 + $0x5c0] sm:$0xff]   ;;  %v6959_v36 = vld [vmem:[%s9824_s6 + $0x10] sm:$0xff] }
0x1c2f   : > { %5013 = vmatprep.mubr.bf16.mxu0 %v8141_v15  ;;  %5056 = vmatprep.mubr.bf16.mxu1 %v8141_v15  ;;  %v4569_v40 = vrot.slane %v6959_v36, %v8279_v24  ;;  %v4577_v41 = vrot.slane %v6959_v36, %v8313_v57  ;;  %v4573_v42 = vrot.slane %v6959_v36, %v8258_v13 }
0x1c30   : > { %v4581_v35 = vrot.slane %v6959_v36, %v8415_v32 }
0x1c31   : > { %4984 = vmatpush1.bf16.msra.mxu0 %v7006_v34  ;;  %5027 = vmatpush1.bf16.msra.mxu1 %v7008_v39 }
0x1c32   : > { %5067 = vmatprep.subr.bf16.mxu0 %v6995_v46  ;;  %5110 = vmatprep.subr.bf16.mxu1 %v6997_v47 }
0x1c34   : > { %7018 = vmatmul.mubr.msk.bf16.vlgmr.msra.gmra.mrb[92].mxu0 %vm779_vm2, %v9260_v7  ;;  %7019 = vmatmul.mubr.msk.bf16.vlgmr.msra.gmra.mrb[96].mxu1 %vm779_vm2, %v9260_v7 }
0x1c35   : > { %5068 = vmatpush1.bf16.msra.mxu0 %v6994_v50  ;;  %5111 = vmatpush1.bf16.msra.mxu1 %v6996_v51 }
0x1c36   : > { %5069 = vmatprep.subr.bf16.mxu0 %v7011_v38  ;;  %5112 = vmatprep.subr.bf16.mxu1 %v7013_v5 }
0x1c37   : > { %5099 = vmatprep.mubr.bf16.mxu0 %v8141_v15  ;;  %5142 = vmatprep.mubr.bf16.mxu1 %v8141_v15  ;;  %v7914_v15 = vld [vmem:[%s9825_s7 + $0x4c8] sm:$0xff]  }
0x1c39   : > { %5070 = vmatpush1.bf16.msra.mxu0 %v7010_v37  ;;  %5113 = vmatpush1.bf16.msra.mxu1 %v7012_v52 }
0x1c3a   : > { %7394 = vmatprep.subr.bf16.mxu0 %v7909_v53  ;;  %7416 = vmatprep.subr.bf16.mxu1 %v7910_v20  ;;  %v4585_v53 = vrot.slane %v6959_v36, %v8464_v27  ;;  %v4593_v20 = vrot.slane %v6959_v36, %v8678_v6 }
0x1c3c   : > { %7020 = vmatmul.mubr.msk.bf16.vlgmr.msra.gmra.mrb[96].mxu0 %vm779_vm2, %v9260_v7  ;;  %7021 = vmatmul.mubr.msk.bf16.vlgmr.msra.gmra.mrb[100].mxu1 %vm779_vm2, %v9260_v7  ;;  %v7925_v7 = vld [vmem:[%s9825_s7 + $0x460] sm:$0xff]  }
0x1c3d   : > { %7395 = vmatpush3.bf16.msra.mxu0 %v7911_v54  ;;  %7417 = vmatpush3.bf16.msra.mxu1 %v7912_v55 }
0x1c3e   : > { %7396 = vmatprep.subr.bf16.mxu0 %v7913_v56  ;;  %7418 = vmatprep.subr.bf16.mxu1 %v7914_v15  ;;  %v4589_v56 = vrot.slane %v6959_v36, %v8474_v33  ;;  %v4597_v15 = vrot.slane %v6959_v36, %v8681_v10 }
0x1c41   : > { %7397 = vmatpush3.bf16.msra.mxu0 %v7915_v21  ;;  %7419 = vmatpush3.bf16.msra.mxu1 %v7916_v58 }
0x1c42   : > { %7398 = vmatprep.subr.bf16.mxu0 %v7917_v30  ;;  %7420 = vmatprep.subr.bf16.mxu1 %v7918_v61 }
0x1c45   : > { %7399 = vmatpush3.bf16.msra.mxu0 %v7919_v43  ;;  %7421 = vmatpush3.bf16.msra.mxu1 %v7920_v63 }
0x1c46   : > { %7400 = vmatprep.subr.bf16.mxu0 %v7921_v0  ;;  %7422 = vmatprep.subr.bf16.mxu1 %v7922_v44 }
0x1c49   : > { %7401 = vmatpush3.bf16.msra.mxu0 %v7923_v45  ;;  %7423 = vmatpush3.bf16.msra.mxu1 %v7924_v11  ;;  %v9448_v45 = vld [vmem:[%s9824_s6 + $0x18] sm:$0xff] }
0x1c4a   : > { %7402 = vmatprep.subr.bf16.mxu0 %v7925_v7  ;;  %7424 = vmatprep.subr.bf16.mxu1 %v7926_v3  ;;  %v4609_v36 = vrot.slane %v9448_v45, %v8313_v57  ;;  %v7948_v57 = vld [vmem:[%s9825_s7 + $0x588] sm:$0xff]  }
0x1c4d   : > { %7403 = vmatpush3.bf16.msra.mxu0 %v7927_v9  ;;  %7425 = vmatpush3.bf16.msra.mxu1 %v7928_v14 }
0x1c4e   : > { %7404 = vmatprep.subr.bf16.mxu0 %v7929_v16  ;;  %7426 = vmatprep.subr.bf16.mxu1 %v7930_v17  ;;  %v7943_v17 = vld [vmem:[%s9825_s7 + $0x500] sm:$0xff]  }
0x1c51   : > { %7405 = vmatpush3.bf16.msra.mxu0 %v7931_v18  ;;  %7427 = vmatpush3.bf16.msra.mxu1 %v7932_v59  ;;  %v7944_v18 = vld [vmem:[%s9825_s7 + $0x580] sm:$0xff]  }
0x1c52   : > { %7406 = vmatprep.subr.bf16.mxu0 %v7933_v25  ;;  %7428 = vmatprep.subr.bf16.mxu1 %v7934_v31 }
0x1c55   : > { %7407 = vmatpush3.bf16.msra.mxu0 %v7935_v12  ;;  %7429 = vmatpush3.bf16.msra.mxu1 %v7936_v19  ;;  %v7945_v19 = vld [vmem:[%s9825_s7 + $0x548] sm:$0xff]  }
0x1c56   : > { %7408 = vmatprep.subr.bf16.mxu0 %v7937_v23  ;;  %7430 = vmatprep.subr.bf16.mxu1 %v7938_v22  ;;  %v7946_v23 = vld [vmem:[%s9825_s7 + $0x5c8] sm:$0xff]   ;;  %v4601_v22 = vrot.slane %v9448_v45, %v8279_v24 }
0x1c59   : > { %7409 = vmatpush3.bf16.msra.mxu0 %v7939_v8  ;;  %7431 = vmatpush3.bf16.msra.mxu1 %v7940_v29 }
0x1c5a   : > { %7438 = vmatprep.subr.bf16.mxu0 %v7941_v26  ;;  %7460 = vmatprep.subr.bf16.mxu1 %v7942_v28 }
0x1cf7   : > { %v4843_v34 = vpop.f32.mrb[84].mxu0  ;;  %v4886_v39 = vpop.f32.mrb[88].mxu1 }
0x1cf8   : > { %v4844_v46 = vadd.f32 %v4843_v34, %v4569_v40  ;;  %v4887_v47 = vadd.f32 %v4886_v39, %v4577_v41  ;;  %v4845_v48 = vpop.f32.mrb[85].mxu0  ;;  %v4888_v60 = vpop.f32.mrb[89].mxu1  ;;  %v4605_v34 = vrot.slane %v9448_v45, %v8258_v13  ;;  %v7949_v13 = vld [vmem:[%s9825_s7 + $0x550] sm:$0xff]  }
0x1cf9   : > { %v4846_v49 = vadd.f32 %v4845_v48, %v4573_v42  ;;  %v4889_v62 = vadd.f32 %v4888_v60, %v4581_v35  ;;  %v4847_v50 = vpop.f32.mrb[86].mxu0  ;;  %v4890_v51 = vpop.f32.mrb[90].mxu1 }
0x1cfa   : > { %v4848_v38 = vadd.f32 %v4847_v50, %v4569_v40  ;;  %v4891_v5 = vadd.f32 %v4890_v51, %v4577_v41  ;;  %v4849_v37 = vpop.f32.mrb[87].mxu0  ;;  %v4892_v52 = vpop.f32.mrb[91].mxu1  ;;  %v5153_v21 = vmax.f32 %v4844_v46, 0.0  ;;  %v5155_v58 = vmax.f32 %v4887_v47, 0.0  ;;  %v7947_v46 = vld [vmem:[%s9825_s7 + $0x508] sm:$0xff]   ;;  %v7950_v50 = vld [vmem:[%s9825_s7 + $0x5d0] sm:$0xff]  }
0x1cfb   : > { %v4850_v54 = vadd.f32 %v4849_v37, %v4573_v42  ;;  %v4893_v55 = vadd.f32 %v4892_v52, %v4581_v35  ;;  %v5154_v43 = vmax.f32 %v4846_v49, 0.0  ;;  %v5156_v63 = vmax.f32 %v4889_v62, 0.0 }
0x1cfc   : > { %v5169_v30 = vmax.f32 %v4848_v38, 0.0  ;;  %v5171_v61 = vmax.f32 %v4891_v5, 0.0  ;;  %v4613_v47 = vrot.slane %v9448_v45, %v8415_v32 }
0x1cfd   : > { %v5170_v0 = vmax.f32 %v4850_v54, 0.0  ;;  %v5172_v44 = vmax.f32 %v4893_v55, 0.0 }
0x1cfe   : > { %v5185_v11 = vpack.c.bf16 %v5169_v30, %v5153_v21  ;;  %v5187_v7 = vpack.c.bf16 %v5171_v61, %v5155_v58 }
0x1cff   : > { %v5186_v3 = vpack.c.bf16 %v5170_v0, %v5154_v43  ;;  %v5188_v9 = vpack.c.bf16 %v5172_v44, %v5156_v63  ;;  %v4929_v14 = vpop.f32.mrb[88].mxu0  ;;  %v4972_v16 = vpop.f32.mrb[92].mxu1  ;;  %v7953_v43 = vld [vmem:[%s9825_s7 + $0x558] sm:$0xff]  }
0x1d00   : > { %v4930_v59 = vadd.f32 %v4929_v14, %v4585_v53  ;;  %v4973_v25 = vadd.f32 %v4972_v16, %v4593_v20  ;;  %v4931_v31 = vpop.f32.mrb[89].mxu0  ;;  %v4974_v12 = vpop.f32.mrb[93].mxu1  ;;  %v7954_v63 = vld [vmem:[%s9825_s7 + $0x5d8] sm:$0xff]  }
0x1d01   : > { %v4932_v8 = vadd.f32 %v4931_v31, %v4589_v56  ;;  %v4975_v29 = vadd.f32 %v4974_v12, %v4597_v15  ;;  %v4933_v26 = vpop.f32.mrb[90].mxu0  ;;  %v4976_v28 = vpop.f32.mrb[94].mxu1  ;;  %6005 = vmatprep.mubr.bf16.mxu0 %v5186_v3  ;;  %6046 = vmatprep.mubr.bf16.mxu1 %v5188_v9  ;;  %v4617_v3 = vrot.slane %v9448_v45, %v8464_v27  ;;  %v7955_v12 = vld [vmem:[%s9825_s7 + $0x518] sm:$0xff]  }
0x1d02   : > { %v4934_v40 = vadd.f32 %v4933_v26, %v4585_v53  ;;  %v4977_v41 = vadd.f32 %v4976_v28, %v4593_v20  ;;  %v4935_v42 = vpop.f32.mrb[91].mxu0  ;;  %v4978_v35 = vpop.f32.mrb[95].mxu1  ;;  %6006 = vmatmul.mubr.bf16.vlgmr.msra.gmra.mrb[100].mxu0 %v5185_v11  ;;  %6047 = vmatmul.mubr.bf16.vlgmr.msra.gmra.mrb[104].mxu1 %v5187_v7  ;;  %v5157_v48 = vmax.f32 %v4930_v59, 0.0  ;;  %v5159_v60 = vmax.f32 %v4973_v25, 0.0  ;;  %v7956_v27 = vld [vmem:[%s9825_s7 + $0x598] sm:$0xff]   ;;  %v7958_v26 = vld [vmem:[%s9825_s7 + $0x5e0] sm:$0xff]  }
0x1d03   : > { %v4936_v39 = vadd.f32 %v4935_v42, %v4589_v56  ;;  %v4979_v24 = vadd.f32 %v4978_v35, %v4597_v15  ;;  %7439 = vmatpush3.bf16.msra.mxu0 %v7943_v17  ;;  %7461 = vmatpush3.bf16.msra.mxu1 %v7944_v18  ;;  %v5158_v51 = vmax.f32 %v4932_v8, 0.0  ;;  %v5160_v38 = vmax.f32 %v4975_v29, 0.0  ;;  %v7951_v56 = vld [vmem:[%s9825_s7 + $0x510] sm:$0xff]  }
0x1d04   : > { %v5173_v49 = vmax.f32 %v4934_v40, 0.0  ;;  %v5175_v62 = vmax.f32 %v4977_v41, 0.0  ;;  %7440 = vmatprep.subr.bf16.mxu0 %v7945_v19  ;;  %7462 = vmatprep.subr.bf16.mxu1 %v7946_v23  ;;  %v7952_v15 = vld [vmem:[%s9825_s7 + $0x590] sm:$0xff]   ;;  %v4625_v18 = vrot.slane %v9448_v45, %v8678_v6  ;;  %v4621_v59 = vrot.slane %v9448_v45, %v8474_v33  ;;  %v7957_v33 = vld [vmem:[%s9825_s7 + $0x560] sm:$0xff]  }
0x1d05   : > { %v5174_v5 = vmax.f32 %v4936_v39, 0.0  ;;  %v5176_v37 = vmax.f32 %v4979_v24, 0.0  ;;  %v4629_v19 = vrot.slane %v9448_v45, %v8681_v10 }
0x1d06   : > { %v9482_v52 = vpack.c.bf16 %v5173_v49, %v5157_v48  ;;  %v9484_v32 = vpack.c.bf16 %v5175_v62, %v5159_v60  ;;  %v7961_v62 = vld [vmem:[%s9825_s7 + $0x568] sm:$0xff]  }
0x1d07   : > { %v5190_v53 = vpack.c.bf16 %v5174_v5, %v5158_v51  ;;  %v5192_v20 = vpack.c.bf16 %v5176_v37, %v5160_v38  ;;  %7441 = vmatpush3.bf16.msra.mxu0 %v7947_v46  ;;  %7463 = vmatpush3.bf16.msra.mxu1 %v7948_v57  ;;  %v5015_v54 = vpop.f32.mrb[92].mxu0  ;;  %v5058_v55 = vpop.f32.mrb[96].mxu1  ;;  %v7959_v46 = vld [vmem:[%s9825_s7 + $0x520] sm:$0xff]  }
0x1d08   : > { %v5016_v21 = vadd.f32 %v5015_v54, %v4601_v22  ;;  %v5059_v58 = vadd.f32 %v5058_v55, %v4609_v36  ;;  %v5017_v30 = vpop.f32.mrb[93].mxu0  ;;  %v5060_v61 = vpop.f32.mrb[97].mxu1  ;;  %7442 = vmatprep.subr.bf16.mxu0 %v7949_v13  ;;  %7464 = vmatprep.subr.bf16.mxu1 %v7950_v50  ;;  %v7960_v57 = vld [vmem:[%s9825_s7 + $0x5a0] sm:$0xff]   ;;  %v7962_v13 = vld [vmem:[%s9825_s7 + $0x5e8] sm:$0xff]  }
0x1d09   : > { %v5018_v0 = vadd.f32 %v5017_v30, %v4605_v34  ;;  %v5061_v44 = vadd.f32 %v5060_v61, %v4613_v47  ;;  %v5019_v11 = vpop.f32.mrb[94].mxu0  ;;  %v5062_v7 = vpop.f32.mrb[98].mxu1  ;;  %6087 = vmatprep.mubr.bf16.mxu0 %v5190_v53  ;;  %6128 = vmatprep.mubr.bf16.mxu1 %v5192_v20 }
0x1d0a   : > { %v5020_v9 = vadd.f32 %v5019_v11, %v4601_v22  ;;  %v5063_v14 = vadd.f32 %v5062_v7, %v4609_v36  ;;  %v5021_v16 = vpop.f32.mrb[95].mxu0  ;;  %v5064_v17 = vpop.f32.mrb[99].mxu1  ;;  %v5161_v23 = vmax.f32 %v5016_v21, 0.0  ;;  %v5163_v22 = vmax.f32 %v5059_v58, 0.0  ;;  %v7964_v21 = vld [vmem:[%s9825_s7 + $0x5a8] sm:$0xff]  }
0x1d0b   : > { %v5022_v25 = vadd.f32 %v5021_v16, %v4605_v34  ;;  %v5065_v31 = vadd.f32 %v5064_v17, %v4613_v47  ;;  %7443 = vmatpush3.bf16.msra.mxu0 %v7951_v56  ;;  %7465 = vmatpush3.bf16.msra.mxu1 %v7952_v15  ;;  %v5162_v28 = vmax.f32 %v5018_v0, 0.0  ;;  %v5164_v36 = vmax.f32 %v5061_v44, 0.0  ;;  %v7963_v15 = vld [vmem:[%s9825_s7 + $0x528] sm:$0xff]   ;;  %v7966_v0 = vld [vmem:[%s9825_s7 + $0x5f0] sm:$0xff]  }
0x1d0c   : > { %v5177_v8 = vmax.f32 %v5020_v9, 0.0  ;;  %v5179_v29 = vmax.f32 %v5063_v14, 0.0  ;;  %7444 = vmatprep.subr.bf16.mxu0 %v7953_v43  ;;  %7466 = vmatprep.subr.bf16.mxu1 %v7954_v63  ;;  %v7965_v63 = vld [vmem:[%s9825_s7 + $0x570] sm:$0xff]  }
0x1d0d   : > { %v5178_v40 = vmax.f32 %v5022_v25, 0.0  ;;  %v5180_v41 = vmax.f32 %v5065_v31, 0.0  ;;  %v7969_v25 = vld [vmem:[%s9825_s7 + $0x578] sm:$0xff]  }
0x1d0e   : > { %v9518_v42 = vpack.c.bf16 %v5177_v8, %v5161_v23  ;;  %v9520_v45 = vpack.c.bf16 %v5179_v29, %v5163_v22  ;;  %v7970_v31 = vld [vmem:[%s9825_s7 + $0x5f8] sm:$0xff]   ;;  %v7974_v23 = vld [vmem:[%s9825_s7 + $0x6c0] sm:$0xff]   ;;  %v7977_v29 = vld [vmem:[%s9825_s7 + $0x648] sm:$0xff]  }
0x1d0f   : > { %v9522_v35 = vpack.c.bf16 %v5178_v40, %v5162_v28  ;;  %v9524_v34 = vpack.c.bf16 %v5180_v41, %v5164_v36  ;;  %7445 = vmatpush3.bf16.msra.mxu0 %v7955_v12  ;;  %7467 = vmatpush3.bf16.msra.mxu1 %v7956_v27  ;;  %v5101_v39 = vpop.f32.mrb[96].mxu0  ;;  %v5144_v24 = vpop.f32.mrb[100].mxu1  ;;  %v7971_v12 = vld [vmem:[%s9825_s7 + $0x538] sm:$0xff]   ;;  %v7975_v22 = vld [vmem:[%s9825_s7 + $0x600] sm:$0xff]   ;;  %v7980_v28 = vld [vmem:[%s9825_s7 + $0x688] sm:$0xff]  }
0x1d10   : > { %v5102_v47 = vadd.f32 %v5101_v39, %v4617_v3  ;;  %v5145_v48 = vadd.f32 %v5144_v24, %v4625_v18  ;;  %v5103_v60 = vpop.f32.mrb[97].mxu0  ;;  %v5146_v49 = vpop.f32.mrb[101].mxu1  ;;  %7446 = vmatprep.subr.bf16.mxu0 %v7957_v33  ;;  %7468 = vmatprep.subr.bf16.mxu1 %v7958_v26  ;;  %v7972_v27 = vld [vmem:[%s9825_s7 + $0x5b8] sm:$0xff]   ;;  %v7976_v8 = vld [vmem:[%s9825_s7 + $0x680] sm:$0xff]   ;;  %v7978_v33 = vld [vmem:[%s9825_s7 + $0x6c8] sm:$0xff]  }
0x1d11   : > { %v5104_v50 = vadd.f32 %v5103_v60, %v4621_v59  ;;  %v5147_v51 = vadd.f32 %v5146_v49, %v4629_v19  ;;  %v5105_v38 = vpop.f32.mrb[98].mxu0  ;;  %v5148_v5 = vpop.f32.mrb[102].mxu1  ;;  %v7979_v26 = vld [vmem:[%s9825_s7 + $0x608] sm:$0xff]   ;;  %v7983_v36 = vld [vmem:[%s9825_s7 + $0x610] sm:$0xff]   ;;  %v7985_v41 = vld [vmem:[%s9825_s7 + $0x658] sm:$0xff]  }
0x1d12   : > { %v5106_v37 = vadd.f32 %v5105_v38, %v4617_v3  ;;  %v5149_v53 = vadd.f32 %v5148_v5, %v4625_v18  ;;  %v5107_v20 = vpop.f32.mrb[99].mxu0  ;;  %v5150_v54 = vpop.f32.mrb[103].mxu1  ;;  %v5165_v58 = vmax.f32 %v5102_v47, 0.0  ;;  %v5167_v30 = vmax.f32 %v5145_v48, 0.0  ;;  %v7967_v18 = vld [vmem:[%s9825_s7 + $0x530] sm:$0xff]   ;;  %v7988_v39 = vld [vmem:[%s9825_s7 + $0x698] sm:$0xff]  }
0x1d13   : > { %v5108_v55 = vadd.f32 %v5107_v20, %v4621_v59  ;;  %v5151_v56 = vadd.f32 %v5150_v54, %v4629_v19  ;;  %7447 = vmatpush3.bf16.msra.mxu0 %v7959_v46  ;;  %7469 = vmatpush3.bf16.msra.mxu1 %v7960_v57  ;;  %v5166_v44 = vmax.f32 %v5104_v50, 0.0  ;;  %v5168_v11 = vmax.f32 %v5147_v51, 0.0  ;;  %v7968_v59 = vld [vmem:[%s9825_s7 + $0x5b0] sm:$0xff]   ;;  %v7973_v19 = vld [vmem:[%s9825_s7 + $0x640] sm:$0xff]   ;;  %v7993_v48 = vld [vmem:[%s9825_s7 + $0x668] sm:$0xff]  }
0x1d14   : > { %v5181_v61 = vmax.f32 %v5106_v37, 0.0  ;;  %v5183_v43 = vmax.f32 %v5149_v53, 0.0  ;;  %7448 = vmatprep.subr.bf16.mxu0 %v7961_v62  ;;  %7470 = vmatprep.subr.bf16.mxu1 %v7962_v13  ;;  %v7984_v40 = vld [vmem:[%s9825_s7 + $0x690] sm:$0xff]   ;;  %v7989_v24 = vld [vmem:[%s9825_s7 + $0x660] sm:$0xff]   ;;  %v7994_v60 = vld [vmem:[%s9825_s7 + $0x6e8] sm:$0xff]  }
0x1d15   : > { %v5182_v7 = vmax.f32 %v5108_v55, 0.0  ;;  %v5184_v3 = vmax.f32 %v5151_v56, 0.0  ;;  %v7990_v46 = vld [vmem:[%s9825_s7 + $0x6e0] sm:$0xff]   ;;  %v7995_v49 = vld [vmem:[%s9825_s7 + $0x628] sm:$0xff]   ;;  %v7997_v13 = vld [vmem:[%s9825_s7 + $0x670] sm:$0xff]  }
0x1d16   : > { %v9550_v9 = vpack.c.bf16 %v5181_v61, %v5165_v58  ;;  %v9552_v14 = vpack.c.bf16 %v5183_v43, %v5167_v30  ;;  %v7991_v57 = vld [vmem:[%s9825_s7 + $0x620] sm:$0xff]   ;;  %v7996_v62 = vld [vmem:[%s9825_s7 + $0x6a8] sm:$0xff]   ;;  %v7998_v50 = vld [vmem:[%s9825_s7 + $0x6f0] sm:$0xff]  }
0x1d17   : > { %v9554_v16 = vpack.c.bf16 %v5182_v7, %v5166_v44  ;;  %v9556_v17 = vpack.c.bf16 %v5184_v3, %v5168_v11  ;;  %7449 = vmatpush3.bf16.msra.mxu0 %v7963_v15  ;;  %7471 = vmatpush3.bf16.msra.mxu1 %v7964_v21  ;;  %v7992_v47 = vld [vmem:[%s9825_s7 + $0x6a0] sm:$0xff]   ;;  %v7999_v51 = vld [vmem:[%s9825_s7 + $0x630] sm:$0xff]   ;;  %v8001_v5 = vld [vmem:[%s9825_s7 + $0x678] sm:$0xff]  }
0x1d18   : > { %7450 = vmatprep.subr.bf16.mxu0 %v7965_v63  ;;  %7472 = vmatprep.subr.bf16.mxu1 %v7966_v0  ;;  %v8000_v38 = vld [vmem:[%s9825_s7 + $0x6b0] sm:$0xff]   ;;  %v8002_v37 = vld [vmem:[%s9825_s7 + $0x6f8] sm:$0xff]   ;;  %v8005_v54 = vld [vmem:[%s9825_s7 + $0x740] sm:$0xff]  }
0x1d19   : > { %v8003_v53 = vld [vmem:[%s9825_s7 + $0x638] sm:$0xff]   ;;  %v8006_v55 = vld [vmem:[%s9825_s7 + $0x7c0] sm:$0xff]   ;;  %v8009_v21 = vld [vmem:[%s9825_s7 + $0x748] sm:$0xff]  }
0x1d1a   : > { %v8004_v20 = vld [vmem:[%s9825_s7 + $0x6b8] sm:$0xff]   ;;  %v8007_v56 = vld [vmem:[%s9825_s7 + $0x700] sm:$0xff]   ;;  %v8010_v58 = vld [vmem:[%s9825_s7 + $0x7c8] sm:$0xff]  }
0x1d1b   : > { %7451 = vmatpush3.bf16.msra.mxu0 %v7967_v18  ;;  %7473 = vmatpush3.bf16.msra.mxu1 %v7968_v59  ;;  %v8008_v15 = vld [vmem:[%s9825_s7 + $0x780] sm:$0xff]   ;;  %v8011_v30 = vld [vmem:[%s9825_s7 + $0x708] sm:$0xff]   ;;  %v8015_v43 = vld [vmem:[%s9825_s7 + $0x710] sm:$0xff]  }
0x1d1c   : > { %7452 = vmatprep.subr.bf16.mxu0 %v7969_v25  ;;  %7474 = vmatprep.subr.bf16.mxu1 %v7970_v31  ;;  %v8012_v61 = vld [vmem:[%s9825_s7 + $0x788] sm:$0xff]   ;;  %v8016_v63 = vld [vmem:[%s9825_s7 + $0x790] sm:$0xff]   ;;  %v8017_v0 = vld [vmem:[%s9825_s7 + $0x758] sm:$0xff]  }
0x1d1d   : > { %v8018_v44 = vld [vmem:[%s9825_s7 + $0x7d8] sm:$0xff]   ;;  %v8021_v3 = vld [vmem:[%s9825_s7 + $0x760] sm:$0xff]   ;;  %v8025_v59 = vld [vmem:[%s9825_s7 + $0x768] sm:$0xff]  }
0x1d1e   : > { %v8019_v11 = vld [vmem:[%s9825_s7 + $0x718] sm:$0xff]   ;;  %v8024_v18 = vld [vmem:[%s9825_s7 + $0x7a0] sm:$0xff]   ;;  %v8026_v25 = vld [vmem:[%s9825_s7 + $0x7e8] sm:$0xff]  }
0x1d1f   : > { %7453 = vmatpush3.bf16.msra.mxu0 %v7971_v12  ;;  %7475 = vmatpush3.bf16.msra.mxu1 %v7972_v27  ;;  %v8020_v7 = vld [vmem:[%s9825_s7 + $0x798] sm:$0xff]   ;;  %v8027_v31 = vld [vmem:[%s9825_s7 + $0x728] sm:$0xff]   ;;  %v8029_v27 = vld [vmem:[%s9825_s7 + $0x770] sm:$0xff]  }
0x1d20   : > { %7482 = vmatprep.subr.bf16.mxu0 %v7973_v19  ;;  %7504 = vmatprep.subr.bf16.mxu1 %v7974_v23  ;;  %v8028_v12 = vld [vmem:[%s9825_s7 + $0x7a8] sm:$0xff]   ;;  %v8030_v19 = vld [vmem:[%s9825_s7 + $0x7f0] sm:$0xff]  }
0x1d21   : > { %v8031_v23 = vld [vmem:[%s9825_s7 + $0x730] sm:$0xff]  }
0x1d22   : > { %6088 = vmatmul.mubr.bf16.vlgmr.msra.gmra.mrb[104].mxu0 %v9482_v52  ;;  %6129 = vmatmul.mubr.bf16.vlgmr.msra.gmra.mrb[108].mxu1 %v9484_v32  ;;  %v7981_v52 = vld [vmem:[%s9825_s7 + $0x650] sm:$0xff]  }
0x1d23   : > { %7483 = vmatpush3.bf16.msra.mxu0 %v7975_v22  ;;  %6169 = vmatprep.mubr.bf16.mxu0 %v9522_v35  ;;  %v7982_v32 = vld [vmem:[%s9825_s7 + $0x6d0] sm:$0xff]   ;;  %v7986_v35 = vld [vmem:[%s9825_s7 + $0x6d8] sm:$0xff]  }
0x1d24   : > { %7505 = vmatpush3.bf16.msra.mxu1 %v7976_v8  ;;  %6210 = vmatprep.mubr.bf16.mxu1 %v9524_v34  ;;  %v7987_v34 = vld [vmem:[%s9825_s7 + $0x618] sm:$0xff]   ;;  %v8032_v22 = vld [vmem:[%s9825_s7 + $0x7b0] sm:$0xff]  }
0x1d25   : > { %7484 = vmatprep.subr.bf16.mxu0 %v7977_v29  ;;  %7506 = vmatprep.subr.bf16.mxu1 %v7978_v33  ;;  %v8033_v8 = vld [vmem:[%s9825_s7 + $0x778] sm:$0xff]  }
0x1d26   : > { %v8034_v29 = vld [vmem:[%s9825_s7 + $0x7f8] sm:$0xff]  }
0x1d27   : > { %7485 = vmatpush3.bf16.msra.mxu0 %v7979_v26  ;;  %v8035_v33 = vld [vmem:[%s9825_s7 + $0x738] sm:$0xff]  }
0x1d28   : > { %7507 = vmatpush3.bf16.msra.mxu1 %v7980_v28  ;;  %7486 = vmatprep.subr.bf16.mxu0 %v7981_v52  ;;  %v8036_v26 = vld [vmem:[%s9825_s7 + $0x7b8] sm:$0xff]  }
0x1d29   : > { %7508 = vmatprep.subr.bf16.mxu1 %v7982_v32  ;;  %v9784_v32 = vld [vmem:[%s9826_s8 + $0x10] sm:$0xff] }
0x1d2b   : > { %7487 = vmatpush3.bf16.msra.mxu0 %v7983_v36  ;;  %v5204_v36 = vrot.slane %v9784_v32, %v8678_v6 }
0x1d2c   : > { %7509 = vmatpush3.bf16.msra.mxu1 %v7984_v40  ;;  %7488 = vmatprep.subr.bf16.mxu0 %v7985_v41 }
0x1d2d   : > { %7510 = vmatprep.subr.bf16.mxu1 %v7986_v35 }
0x1d2f   : > { %7489 = vmatpush3.bf16.msra.mxu0 %v7987_v34 }
0x1d30   : > { %7511 = vmatpush3.bf16.msra.mxu1 %v7988_v39  ;;  %7490 = vmatprep.subr.bf16.mxu0 %v7989_v24 }
0x1d31   : > { %7512 = vmatprep.subr.bf16.mxu1 %v7990_v46 }
0x1d33   : > { %7491 = vmatpush3.bf16.msra.mxu0 %v7991_v57 }
0x1d34   : > { %7513 = vmatpush3.bf16.msra.mxu1 %v7992_v47  ;;  %7492 = vmatprep.subr.bf16.mxu0 %v7993_v48 }
0x1d35   : > { %7514 = vmatprep.subr.bf16.mxu1 %v7994_v60 }
0x1d37   : > { %7493 = vmatpush3.bf16.msra.mxu0 %v7995_v49 }
0x1d38   : > { %7515 = vmatpush3.bf16.msra.mxu1 %v7996_v62  ;;  %7494 = vmatprep.subr.bf16.mxu0 %v7997_v13 }
0x1d39   : > { %7516 = vmatprep.subr.bf16.mxu1 %v7998_v50 }
0x1d3b   : > { %7495 = vmatpush3.bf16.msra.mxu0 %v7999_v51 }
0x1d3c   : > { %7517 = vmatpush3.bf16.msra.mxu1 %v8000_v38  ;;  %7496 = vmatprep.subr.bf16.mxu0 %v8001_v5 }
0x1d3d   : > { %7518 = vmatprep.subr.bf16.mxu1 %v8002_v37 }
0x1d3f   : > { %7497 = vmatpush3.bf16.msra.mxu0 %v8003_v53 }
0x1d40   : > { %7519 = vmatpush3.bf16.msra.mxu1 %v8004_v20  ;;  %7526 = vmatprep.subr.bf16.mxu0 %v8005_v54 }
0x1d41   : > { %7548 = vmatprep.subr.bf16.mxu1 %v8006_v55 }
0x1d42   : > { %6170 = vmatmul.mubr.bf16.vlgmr.msra.gmra.mrb[108].mxu0 %v9518_v42  ;;  %v8013_v42 = vld [vmem:[%s9825_s7 + $0x750] sm:$0xff]  }
0x1d43   : > { %6211 = vmatmul.mubr.bf16.vlgmr.msra.gmra.mrb[112].mxu1 %v9520_v45  ;;  %7527 = vmatpush3.bf16.msra.mxu0 %v8007_v56  ;;  %v8014_v45 = vld [vmem:[%s9825_s7 + $0x7d0] sm:$0xff]  }
0x1d44   : > { %6251 = vmatprep.mubr.bf16.mxu0 %v9554_v16  ;;  %7549 = vmatpush3.bf16.msra.mxu1 %v8008_v15  ;;  %v8022_v16 = vld [vmem:[%s9825_s7 + $0x7e0] sm:$0xff]  }
0x1d45   : > { %6292 = vmatprep.mubr.bf16.mxu1 %v9556_v17  ;;  %7528 = vmatprep.subr.bf16.mxu0 %v8009_v21  ;;  %v8023_v17 = vld [vmem:[%s9825_s7 + $0x720] sm:$0xff]  }
0x1d46   : > { %7550 = vmatprep.subr.bf16.mxu1 %v8010_v58 }
0x1d47   : > { %7529 = vmatpush3.bf16.msra.mxu0 %v8011_v30 }
0x1d48   : > { %7551 = vmatpush3.bf16.msra.mxu1 %v8012_v61  ;;  %7530 = vmatprep.subr.bf16.mxu0 %v8013_v42 }
0x1d49   : > { %7552 = vmatprep.subr.bf16.mxu1 %v8014_v45 }
0x1d4b   : > { %7531 = vmatpush3.bf16.msra.mxu0 %v8015_v43 }
0x1d4c   : > { %7553 = vmatpush3.bf16.msra.mxu1 %v8016_v63  ;;  %7532 = vmatprep.subr.bf16.mxu0 %v8017_v0 }
0x1d4d   : > { %7554 = vmatprep.subr.bf16.mxu1 %v8018_v44 }
0x1d4f   : > { %7533 = vmatpush3.bf16.msra.mxu0 %v8019_v11 }
0x1d50   : > { %7555 = vmatpush3.bf16.msra.mxu1 %v8020_v7  ;;  %7534 = vmatprep.subr.bf16.mxu0 %v8021_v3 }
0x1d51   : > { %7556 = vmatprep.subr.bf16.mxu1 %v8022_v16 }
0x1d53   : > { %7535 = vmatpush3.bf16.msra.mxu0 %v8023_v17 }
0x1d54   : > { %7557 = vmatpush3.bf16.msra.mxu1 %v8024_v18  ;;  %7536 = vmatprep.subr.bf16.mxu0 %v8025_v59 }
0x1d55   : > { %7558 = vmatprep.subr.bf16.mxu1 %v8026_v25 }
0x1d57   : > { %7537 = vmatpush3.bf16.msra.mxu0 %v8027_v31 }
0x1d58   : > { %7559 = vmatpush3.bf16.msra.mxu1 %v8028_v12  ;;  %7538 = vmatprep.subr.bf16.mxu0 %v8029_v27 }
0x1d59   : > { %7560 = vmatprep.subr.bf16.mxu1 %v8030_v19 }
0x1d5b   : > { %7539 = vmatpush3.bf16.msra.mxu0 %v8031_v23 }
0x1d5c   : > { %7561 = vmatpush3.bf16.msra.mxu1 %v8032_v22  ;;  %7540 = vmatprep.subr.bf16.mxu0 %v8033_v8 }
0x1d5d   : > { %7562 = vmatprep.subr.bf16.mxu1 %v8034_v29 }
0x1d5f   : > { %7541 = vmatpush3.bf16.msra.mxu0 %v8035_v33 }
0x1d60   : > { %7563 = vmatpush3.bf16.msra.mxu1 %v8036_v26  ;;  %7745 = vmatprep.subr.bf16.mxu0 %v8130_v1 }
0x1d62   : > { %6252 = vmatmul.mubr.bf16.vlgmr.msra.gmra.mrb[112].mxu0 %v9550_v9 }
0x1d63   : > { %6293 = vmatmul.mubr.bf16.vlgmr.msra.gmra.mrb[116].mxu1 %v9552_v14  ;;  %7749 = vmatprep.mubr.msk.bf16.mxu0 %vm8131_vm0, %v8130_v1 }
0x1dd5   : > { %v7410_v28 = vpop.f32.mrb[100].mxu0  ;;  %v7432_v52 = vpop.f32.mrb[104].mxu1 }
0x1dd6   : > { %v7411_v40 = vpop.f32.mrb[101].mxu0  ;;  %v7433_v41 = vpop.f32.mrb[105].mxu1 }
0x1dd7   : > { %v7412_v35 = vadd.f32 %v7411_v40, %v7410_v28  ;;  %v7434_v34 = vadd.f32 %v7433_v41, %v7432_v52  ;;  %v7413_v9 = vpop.f32.mrb[102].mxu0  ;;  %v7435_v39 = vpop.f32.mrb[106].mxu1 }
0x1dd8   : > { %v7414_v14 = vpop.f32.mrb[103].mxu0  ;;  %v7436_v24 = vpop.f32.mrb[107].mxu1 }
0x1dd9   : > { %v6008_v46 = vadd.f32 %v7412_v35, %v5204_v36  ;;  %v7415_v57 = vadd.f32 %v7414_v14, %v7413_v9  ;;  %v7437_v47 = vadd.f32 %v7436_v24, %v7435_v39 }
0x1ddb   : > { %v6049_v48 = vadd.f32 %v7434_v34, %v6008_v46  ;;  %v6011_v60 = vadd.f32 %v7415_v57, %v5204_v36 }
0x1ddd   : > { %v6052_v49 = vadd.f32 %v7437_v47, %v6011_v60 }
0x1df5   : > { %v7454_v62 = vpop.f32.mrb[104].mxu0  ;;  %v7476_v13 = vpop.f32.mrb[108].mxu1 }
0x1df6   : > { %v7455_v50 = vpop.f32.mrb[105].mxu0  ;;  %v7477_v51 = vpop.f32.mrb[109].mxu1 }
0x1df7   : > { %v7456_v38 = vadd.f32 %v7455_v50, %v7454_v62  ;;  %v7478_v6 = vadd.f32 %v7477_v51, %v7476_v13  ;;  %v7457_v5 = vpop.f32.mrb[106].mxu0  ;;  %v7479_v37 = vpop.f32.mrb[110].mxu1  ;;  %v8038_v50 = vld [vmem:[%s9827_s9 + $0x8] sm:$0xff]  }
0x1df8   : > { %v7458_v53 = vpop.f32.mrb[107].mxu0  ;;  %v7480_v20 = vpop.f32.mrb[111].mxu1 }
0x1df9   : > { %v6090_v54 = vadd.f32 %v7456_v38, %v6049_v48  ;;  %v7459_v55 = vadd.f32 %v7458_v53, %v7457_v5  ;;  %v7481_v56 = vadd.f32 %v7480_v20, %v7479_v37 }
0x1dfb   : > { %v6131_v15 = vadd.f32 %v7478_v6, %v6090_v54  ;;  %v6093_v21 = vadd.f32 %v7459_v55, %v6052_v49  ;;  %v6332_v54 = vrot.slane %v9784_v32, %v8681_v10 }
0x1dfd   : > { %v6134_v58 = vadd.f32 %v7481_v56, %v6093_v21 }
0x1e15   : > { %v7498_v30 = vpop.f32.mrb[108].mxu0 }
0x1e16   : > { %v7520_v61 = vpop.f32.mrb[112].mxu1  ;;  %v7499_v42 = vpop.f32.mrb[109].mxu0 }
0x1e17   : > { %v7500_v45 = vadd.f32 %v7499_v42, %v7498_v30  ;;  %v7521_v43 = vpop.f32.mrb[113].mxu1  ;;  %v7501_v63 = vpop.f32.mrb[110].mxu0 }
0x1e18   : > { %v7522_v0 = vadd.f32 %v7521_v43, %v7520_v61  ;;  %v7523_v44 = vpop.f32.mrb[114].mxu1  ;;  %v7502_v11 = vpop.f32.mrb[111].mxu0 }
0x1e19   : > { %v6172_v7 = vadd.f32 %v7500_v45, %v6131_v15  ;;  %v7503_v3 = vadd.f32 %v7502_v11, %v7501_v63  ;;  %v7524_v16 = vpop.f32.mrb[115].mxu1  ;;  %v7151_v45 = vld [vmem:[%s9828_s10] ss:$0 sm:$0xff] }
0x1e1a   : > { %v7525_v17 = vadd.f32 %v7524_v16, %v7523_v44 }
0x1e1b   : > { %v6213_v18 = vadd.f32 %v7522_v0, %v6172_v7  ;;  %v6175_v59 = vadd.f32 %v7503_v3, %v6134_v58 }
0x1e1d   : > { %v6216_v25 = vadd.f32 %v7525_v17, %v6175_v59 }
0x1e35   : > { %v7542_v31 = vpop.f32.mrb[112].mxu0 }
0x1e36   : > { %v7564_v12 = vpop.f32.mrb[116].mxu1  ;;  %v7543_v27 = vpop.f32.mrb[113].mxu0 }
0x1e37   : > { %v7544_v19 = vadd.f32 %v7543_v27, %v7542_v31  ;;  %v7565_v23 = vpop.f32.mrb[117].mxu1  ;;  %v7545_v22 = vpop.f32.mrb[114].mxu0 }
0x1e38   : > { %v7566_v8 = vadd.f32 %v7565_v23, %v7564_v12  ;;  %v7567_v29 = vpop.f32.mrb[118].mxu1  ;;  %v7546_v33 = vpop.f32.mrb[115].mxu0 }
0x1e39   : > { %v6254_v26 = vadd.f32 %v7544_v19, %v6213_v18  ;;  %v7547_v28 = vadd.f32 %v7546_v33, %v7545_v22  ;;  %v7568_v52 = vpop.f32.mrb[119].mxu1 }
0x1e3a   : > { %v7569_v36 = vadd.f32 %v7568_v52, %v7567_v29 }
0x1e3b   : > { %v6295_v40 = vadd.f32 %v7566_v8, %v6254_v26  ;;  %v6257_v41 = vadd.f32 %v7547_v28, %v6216_v25 }
0x1e3d   : > { %v6298_v35 = vadd.f32 %v7569_v36, %v6257_v41  ;;  %v6301_v34 = vadd.f32 %v6295_v40, %v9254_v4 }
0x1e3f   : > { %v6303_v9 = vsel %vm779_vm2, %v6301_v34, 0.0  ;;  %v6302_v39 = vadd.f32 %v6298_v35, %v9256_v2  ;;  %v8037_v2 = vld [vmem:[%s9827_s9] sm:$0xff]  }
0x1e40   : > { %6304 = vadd.xlane.f32.xlu1 %v6303_v9  ;;  %7746 = vmatpush3.bf16.msra.mxu0 %v8037_v2 }
0x1e41   : > { %v6306_v14 = vsel %vm779_vm2, %v6302_v39, 0.0  ;;  %7747 = vmatprep.subr.bf16.mxu0 %v8130_v1  ;;  %v7150_v1 = vld [vmem:[%s9826_s8 + $0x18] ss:$0 sm:$0xff] }
0x1e42   : > { %6307 = vadd.xlane.f32.xlu0 %v6306_v14 }
0x1e44   : > { %7748 = vmatpush3.bf16.msra.mxu0 %v8038_v50 }
0x1ecd   : > { %v6305_v24 = vpop.xlane.xlu1 %6304 }
0x1ece   : > { %v6309_v46 = vmul.f32 0.03125, %v6305_v24 }
0x1ecf   : > { %v6308_v57 = vpop.xlane.xlu0 %6307 }
0x1ed0   : > { %v6311_v47 = vsub.f32 %v6301_v34, %v6309_v46  ;;  %v6310_v48 = vmul.f32 0.03125, %v6308_v57 }
0x1ed2   : > { %v6312_v60 = vsub.f32 %v6302_v39, %v6310_v48  ;;  %v6313_v49 = vmul.f32 %v6311_v47, %v6311_v47 }
0x1ed4   : > { %v6315_v62 = vsel %vm779_vm2, %v6313_v49, 0.0  ;;  %v6314_v13 = vmul.f32 %v6312_v60, %v6312_v60 }
0x1ed5   : > { %6316 = vadd.xlane.f32.xlu0 %v6315_v62 }
0x1ed6   : > { %v6318_v4 = vsel %vm779_vm2, %v6314_v13, 0.0 }
0x1ed9   : > { %6319 = vadd.xlane.f32.xlu0 %v6318_v4 }
0x1f62   : > { %v6317_v51 = vpop.xlane.xlu0 %6316 }
0x1f63   : > { %v6321_v38 = vmul.f32 0.03125, %v6317_v51 }
0x1f65   : > { %v6323_v6 = vadd.f32 1e-05, %v6321_v38 }
0x1f66   : > { %v6320_v5 = vpop.xlane.xlu0 %6319 }
0x1f67   : > { %8115 = vrsqrt.f32 %v6323_v6  ;;  %v6322_v37 = vmul.f32 0.03125, %v6320_v5 }
0x1f69   : > { %v6324_v53 = vadd.f32 1e-05, %v6322_v37 }
0x1f6b   : > { %8117 = vrsqrt.f32 %v6324_v53 }
0x1f71   : > { %v8116_v20 = vpop.eup %8115 }
0x1f72   : > { %v6327_v55 = vmul.f32 %v8116_v20, %v6311_v47 }
0x1f74   : > { %v6333_v15 = vmul.f32 %v6332_v54, %v6327_v55 }
0x1f75   : > { %v8118_v56 = vpop.eup %8117 }
0x1f76   : > { %v6328_v21 = vmul.f32 %v8118_v56, %v6312_v60  ;;  %v6339_v30 = vadd.f32 %v7150_v1, %v6333_v15 }
0x1f78   : > { %v6334_v58 = vmul.f32 %v6332_v54, %v6328_v21 }
0x1f7a   : > { %v6340_v61 = vadd.f32 %v7150_v1, %v6334_v58 }
0x1f7c   : > { %v6341_v42 = vpack.c.bf16 %v6340_v61, %v6339_v30 }
0x1f7e   : > { %7750 = vmatmul.mubr.msk.bf16.vlgmr.msra.gmra.mrb[116].mxu0 %vm779_vm2, %v6341_v42 }
0x2051   : > { %v6402_v10 = vpop.f32.mrb[116].mxu0 }
0x2052   : > { %v6403_v32 = vadd.f32 %v7151_v45, %v6402_v10  ;;  %v7751_v43 = vpop.f32.mrb[117].mxu0 }
0x2053   : > { %v6405_v63 = vpop.f32.mrb[118].mxu0 }
0x2054   : > { %6409 = vst [vmem:[%s386_s16] sm:$0xff] %v6403_v32  ;;  %v6406_v0 = vadd.f32 %v7151_v45, %v6405_v63  ;;  %v7752_v44 = vpop.f32.mrb[119].mxu0 }
0x2056   : > { %6410 = vst [vmem:[%s386_s16 + $0x8] sm:$0xff] %v6406_v0 }
0x2057 PF: > { %s21_s17 = sadd.s32 1, %s8128_s17  }
0x2058   : > { %p18_p4 = scmp.ge.s32.totalorder %s21_s17, 4  }
0x205a   :  { %20 = sbr.rel (!%p18_p4) target bundleno = 1 (0x1), region = 106 }

</bundles_post_ra>
